<compile_context>
chip_gen: v6e
topology: v6e:2x2x1
jax: 0.10.0
libtpu: 0.0.40
codegen_flags: <defaults>
</compile_context>

<pallas_src>
import math

import jax
import jax.numpy as jnp
from jax import lax
from jax.experimental import pallas as pl
from jax.experimental.pallas import tpu as pltpu


# ----------------------------------------------------------------------------
# Fused kernel (built per static config: #blocks, batch tile, H, W, C)
# ----------------------------------------------------------------------------
def _make_fused_kernel(n_blocks, bn, h, w, c):
    """Kernel refs (in order):
        x_ref                       : (bn, H, W, C)
        per block: w_ref (3,3,C,C), scale_ref (1,C), bias_ref (1,C)
        wf_ref                      : (4, C, C)
        o_ref                       : (bn, W, C)
        per block scratch: xe_ref (bn, Ho, W+2, C), xo_ref (bn, Ho+1, W+2, C)
    """

    def kernel(*refs):
        x_ref = refs[0]
        blk_refs = refs[1:1 + 3 * n_blocks]
        wf_ref = refs[1 + 3 * n_blocks]
        o_ref = refs[2 + 3 * n_blocks]
        scratch_refs = refs[3 + 3 * n_blocks:]

        src = x_ref                     # ref for block 0, jnp value afterwards
        h_cur = h
        for blk in range(n_blocks):
            w_ref = blk_refs[3 * blk + 0]
            s_ref = blk_refs[3 * blk + 1]
            b_ref = blk_refs[3 * blk + 2]
            xe_ref = scratch_refs[2 * blk + 0]   # rows 2i   (W-halo padded)
            xo_ref = scratch_refs[2 * blk + 1]   # rows 2i-1 (row 0 == H halo)
            ho = h_cur // 2

            # Zero the scratch (covers halo cols 0 / W+1 and the implicit
            # "row -1" at xo[:, 0]), then scatter de-interleaved interior rows.
            xe_ref[...] = jnp.zeros_like(xe_ref)
            xo_ref[...] = jnp.zeros_like(xo_ref)
            for i in range(ho):
                xe_ref[:, i, 1:w + 1, :] = src[:, 2 * i].astype(jnp.float32)
                xo_ref[:, i + 1, 1:w + 1, :] = src[:, 2 * i + 1].astype(jnp.float32)

            xe = xe_ref[...]                         # (bn, ho,   W+2, C)
            xo = xo_ref[...]                         # (bn, ho+1, W+2, C)
            # H-taps for output row i: 2i-1, 2i, 2i+1 -> contiguous slices.
            planes = (xo[:, 0:ho], xe[:, 0:ho], xo[:, 1:ho + 1])

            m = bn * ho * w
            acc = jnp.zeros((m, c), jnp.float32)
            for di in range(3):
                plane = planes[di]                   # (bn, ho, W+2, C)
                for dj in range(3):
                    tap = plane[:, :, dj:dj + w, :].reshape(m, c)
                    acc = acc + jnp.dot(tap, w_ref[di, dj],
                                        preferred_element_type=jnp.float32)
            # Folded BN + ReLU, single epilogue per stage.
            y = jnp.maximum(acc * s_ref[...] + b_ref[...], 0.0)
            src = y.reshape(bn, ho, w, c)
            h_cur = ho

        # Final Conv2d kernel (4, 1), no padding, no bias.  h_cur == 4.
        m = bn * w
        acc = jnp.zeros((m, c), jnp.float32)
        for di in range(h_cur):
            acc = acc + jnp.dot(src[:, di].reshape(m, c), wf_ref[di],
                                preferred_element_type=jnp.float32)
        o_ref[...] = acc.reshape(bn, w, c).astype(o_ref.dtype)

    return kernel


# ----------------------------------------------------------------------------
# Wrapper: layout plumbing + pallas_call
# ----------------------------------------------------------------------------
def seqconvs_forward(x_nchw, blocks, w_final, *, batch_tile=8):
    """Pallas SeqConvs forward. x_nchw: (N, C, H, W) -> (N, C, 1, W)."""
    n, c, h, w = x_nchw.shape
    n_blocks = len(blocks)
    assert h == 4 * (2 ** n_blocks), (h, n_blocks)

    # Batch tile: as large as possible while dividing N (amortizes per-step
    # overhead; 'parallel' lets megacore split the grid).
    bn = max(math.gcd(n, batch_tile), 1)
    grid = (n // bn,)

    x = jnp.transpose(x_nchw, (0, 2, 3, 1))          # NCHW -> NHWC

    in_specs = [pl.BlockSpec((bn, h, w, c), lambda b: (b, 0, 0, 0))]
    args = [x]
    for blk in blocks:
        in_specs += [
            pl.BlockSpec((3, 3, c, c), lambda b: (0, 0, 0, 0)),
            pl.BlockSpec((1, c), lambda b: (0, 0)),
            pl.BlockSpec((1, c), lambda b: (0, 0)),
        ]
        args += [blk["w"], blk["scale"], blk["bias"]]
    in_specs.append(pl.BlockSpec((4, c, c), lambda b: (0, 0, 0)))
    args.append(w_final)

    scratch_shapes = []
    hc = h
    for _ in range(n_blocks):
        ho = hc // 2
        scratch_shapes.append(pltpu.VMEM((bn, ho, w + 2, c), jnp.float32))
        scratch_shapes.append(pltpu.VMEM((bn, ho + 1, w + 2, c), jnp.float32))
        hc = ho

    y = pl.pallas_call(
        _make_fused_kernel(n_blocks, bn, h, w, c),
        out_shape=jax.ShapeDtypeStruct((n, w, c), x.dtype),
        grid=grid,
        in_specs=in_specs,
        out_specs=pl.BlockSpec((bn, w, c), lambda b: (b, 0, 0)),
        scratch_shapes=scratch_shapes,
        compiler_params=pltpu.CompilerParams(
            dimension_semantics=("parallel",)),
    )(*args)

    # (N, W, C) -> (N, C, 1, W) to match the PyTorch module output layout.
    return jnp.transpose(y, (0, 2, 1))[:, :, None, :]


# ----------------------------------------------------------------------------
# Deterministic parameter construction (synthetic; mirrors module __init__)
# ----------------------------------------------------------------------------
def make_seqconvs_params(conv_dim, roi_size, key):
    height = roi_size[0]
    lvl = math.log2(height) - 2
    assert math.isclose(lvl, int(round(lvl)))
    lvl = int(round(lvl))
    eps = 1e-5
    blocks = []
    for _ in range(lvl):
        key, k1, k2, k3, k4, k5 = jax.random.split(key, 6)
        w = 0.1 * jax.random.normal(k1, (3, 3, conv_dim, conv_dim), jnp.float32)
        gamma = 1.0 + 0.1 * jax.random.normal(k2, (conv_dim,), jnp.float32)
        beta = 0.1 * jax.random.normal(k3, (conv_dim,), jnp.float32)
        rmean = 0.1 * jax.random.normal(k4, (conv_dim,), jnp.float32)
        rvar = jnp.abs(1.0 + 0.1 * jax.random.normal(k5, (conv_dim,), jnp.float32))
        scale = gamma / jnp.sqrt(rvar + eps)
        bias = beta - rmean * scale
        blocks.append(dict(w=w,
                           scale=scale.reshape(1, conv_dim),
                           bias=bias.reshape(1, conv_dim)))
    key, kf = jax.random.split(key)
    w_final = 0.1 * jax.random.normal(kf, (4, conv_dim, conv_dim), jnp.float32)
    return blocks, w_final


# ----------------------------------------------------------------------------
# Pure-JAX reference (for correctness check)
# ----------------------------------------------------------------------------
def reference_forward(x_nchw, blocks, w_final):
    x = x_nchw
    for blk in blocks:
        w_oihw = jnp.transpose(blk["w"], (3, 2, 0, 1))
        x = lax.conv_general_dilated(
            x, w_oihw, window_strides=(2, 1), padding=((1, 1), (1, 1)),
            dimension_numbers=("NCHW", "OIHW", "NCHW"))
        x = x * blk["scale"].reshape(1, -1, 1, 1) + blk["bias"].reshape(1, -1, 1, 1)
        x = jnp.maximum(x, 0.0)
    wf_oihw = jnp.transpose(w_final, (2, 1, 0))[..., None]   # (Cout, Cin, 4, 1)
    return lax.conv_general_dilated(
        x, wf_oihw, window_strides=(1, 1), padding="VALID",
        dimension_numbers=("NCHW", "OIHW", "NCHW"))


# ----------------------------------------------------------------------------
if __name__ == "__main__":
    conv_dim = 4
    roi_size = (16, 16)          # height=16 -> 2 downsample blocks + (4,1) conv
    batch = 2

    key = jax.random.PRNGKey(0)
    key, kx = jax.random.split(key)
    x = jax.random.normal(kx, (batch, conv_dim, roi_size[0], roi_size[1]),
                          jnp.float32)

    blocks, w_final = make_seqconvs_params(conv_dim, roi_size, key)

    y = seqconvs_forward(x, blocks, w_final)
    y = jax.block_until_ready(y)

    y_ref = jax.block_until_ready(reference_forward(x, blocks, w_final))

    assert y.shape == (batch, conv_dim, 1, roi_size[1]), y.shape
    assert jnp.allclose(y, y_ref, atol=1e-4, rtol=1e-4), (
        float(jnp.max(jnp.abs(y - y_ref))))

    print("KERNEL_OK")
</pallas_src>

<mosaic_0001>
module attributes {stable_mosaic.version = 11 : i64} {
  func.func @kernel(%arg0: i32, %arg1: memref<2x16x16x4xf32, #tpu.memory_space<vmem>>, %arg2: memref<3x3x4x4xf32, #tpu.memory_space<vmem>>, %arg3: memref<1x4xf32, #tpu.memory_space<vmem>>, %arg4: memref<1x4xf32, #tpu.memory_space<vmem>>, %arg5: memref<3x3x4x4xf32, #tpu.memory_space<vmem>>, %arg6: memref<1x4xf32, #tpu.memory_space<vmem>>, %arg7: memref<1x4xf32, #tpu.memory_space<vmem>>, %arg8: memref<4x4x4xf32, #tpu.memory_space<vmem>>, %arg9: memref<2x16x4xf32, #tpu.memory_space<vmem>>, %arg10: memref<2x8x18x4xf32, #tpu.memory_space<vmem>>, %arg11: memref<2x9x18x4xf32, #tpu.memory_space<vmem>>, %arg12: memref<2x4x18x4xf32, #tpu.memory_space<vmem>>, %arg13: memref<2x5x18x4xf32, #tpu.memory_space<vmem>>) attributes {dimension_semantics = [#tpu.dimension_semantics<parallel>], iteration_bounds = array<i64: 1>, scalar_prefetch = 0 : i64, scratch_operands = 4 : i64, tpu.core_type = #tpu.core_type<tc>, window_params = [{transform_indices = @transform_0, window_bounds = array<i64: 2, 16, 16, 4>}, {pipeline_mode = #tpu.pipeline_mode<synchronous>, transform_indices = @transform_1, window_bounds = array<i64: 3, 3, 4, 4>}, {pipeline_mode = #tpu.pipeline_mode<synchronous>, transform_indices = @transform_2, window_bounds = array<i64: 1, 4>}, {pipeline_mode = #tpu.pipeline_mode<synchronous>, transform_indices = @transform_3, window_bounds = array<i64: 1, 4>}, {pipeline_mode = #tpu.pipeline_mode<synchronous>, transform_indices = @transform_4, window_bounds = array<i64: 3, 3, 4, 4>}, {pipeline_mode = #tpu.pipeline_mode<synchronous>, transform_indices = @transform_5, window_bounds = array<i64: 1, 4>}, {pipeline_mode = #tpu.pipeline_mode<synchronous>, transform_indices = @transform_6, window_bounds = array<i64: 1, 4>}, {pipeline_mode = #tpu.pipeline_mode<synchronous>, transform_indices = @transform_7, window_bounds = array<i64: 4, 4, 4>}, {transform_indices = @transform_8, window_bounds = array<i64: 2, 16, 4>}]} {
    %cst = arith.constant 0.000000e+00 : f32
    %0 = vector.broadcast %cst : f32 to vector<2x8x18x4xf32>
    %c0 = arith.constant 0 : index
    %c0_0 = arith.constant 0 : index
    %c0_1 = arith.constant 0 : index
    %c0_2 = arith.constant 0 : index
    %1 = vector.load %arg10[%c0, %c0_0, %c0_1, %c0_2] : memref<2x8x18x4xf32, #tpu.memory_space<vmem>>, vector<2x8x18x4xf32>
    tpu.vector_store %arg10[%c0, %c0_0, %c0_1, %c0_2], %0 {strides = array<i32>} : memref<2x8x18x4xf32, #tpu.memory_space<vmem>>, vector<2x8x18x4xf32>,
    %cst_3 = arith.constant 0.000000e+00 : f32
    %2 = vector.broadcast %cst_3 : f32 to vector<2x9x18x4xf32>
    %c0_4 = arith.constant 0 : index
    %c0_5 = arith.constant 0 : index
    %c0_6 = arith.constant 0 : index
    %c0_7 = arith.constant 0 : index
    %3 = vector.load %arg11[%c0_4, %c0_5, %c0_6, %c0_7] : memref<2x9x18x4xf32, #tpu.memory_space<vmem>>, vector<2x9x18x4xf32>
    tpu.vector_store %arg11[%c0_4, %c0_5, %c0_6, %c0_7], %2 {strides = array<i32>} : memref<2x9x18x4xf32, #tpu.memory_space<vmem>>, vector<2x9x18x4xf32>,
    %c0_8 = arith.constant 0 : index
    %c0_9 = arith.constant 0 : index
    %c0_10 = arith.constant 0 : index
    %c0_11 = arith.constant 0 : index
    %4 = vector.load %arg1[%c0_8, %c0_9, %c0_10, %c0_11] : memref<2x16x16x4xf32, #tpu.memory_space<vmem>>, vector<2x1x16x4xf32>
    %5 = vector.shape_cast %4 : vector<2x1x16x4xf32> to vector<2x16x4xf32>
    %c0_12 = arith.constant 0 : index
    %c0_13 = arith.constant 0 : index
    %c1 = arith.constant 1 : index
    %c0_14 = arith.constant 0 : index
    %6 = vector.load %arg10[%c0_12, %c0_13, %c1, %c0_14] : memref<2x8x18x4xf32, #tpu.memory_space<vmem>>, vector<2x1x16x4xf32>
    %7 = vector.shape_cast %6 : vector<2x1x16x4xf32> to vector<2x16x4xf32>
    %8 = vector.shape_cast %5 : vector<2x16x4xf32> to vector<2x1x16x4xf32>
    tpu.vector_store %arg10[%c0_12, %c0_13, %c1, %c0_14], %8 {strides = array<i32>} : memref<2x8x18x4xf32, #tpu.memory_space<vmem>>, vector<2x1x16x4xf32>,
    %c0_15 = arith.constant 0 : index
    %c1_16 = arith.constant 1 : index
    %c0_17 = arith.constant 0 : index
    %c0_18 = arith.constant 0 : index
    %9 = vector.load %arg1[%c0_15, %c1_16, %c0_17, %c0_18] : memref<2x16x16x4xf32, #tpu.memory_space<vmem>>, vector<2x1x16x4xf32>
    %10 = vector.shape_cast %9 : vector<2x1x16x4xf32> to vector<2x16x4xf32>
    %c0_19 = arith.constant 0 : index
    %c1_20 = arith.constant 1 : index
    %c1_21 = arith.constant 1 : index
    %c0_22 = arith.constant 0 : index
    %11 = vector.load %arg11[%c0_19, %c1_20, %c1_21, %c0_22] : memref<2x9x18x4xf32, #tpu.memory_space<vmem>>, vector<2x1x16x4xf32>
    %12 = vector.shape_cast %11 : vector<2x1x16x4xf32> to vector<2x16x4xf32>
    %13 = vector.shape_cast %10 : vector<2x16x4xf32> to vector<2x1x16x4xf32>
    tpu.vector_store %arg11[%c0_19, %c1_20, %c1_21, %c0_22], %13 {strides = array<i32>} : memref<2x9x18x4xf32, #tpu.memory_space<vmem>>, vector<2x1x16x4xf32>,
    %c0_23 = arith.constant 0 : index
    %c2 = arith.constant 2 : index
    %c0_24 = arith.constant 0 : index
    %c0_25 = arith.constant 0 : index
    %14 = vector.load %arg1[%c0_23, %c2, %c0_24, %c0_25] : memref<2x16x16x4xf32, #tpu.memory_space<vmem>>, vector<2x1x16x4xf32>
    %15 = vector.shape_cast %14 : vector<2x1x16x4xf32> to vector<2x16x4xf32>
    %c0_26 = arith.constant 0 : index
    %c1_27 = arith.constant 1 : index
    %c1_28 = arith.constant 1 : index
    %c0_29 = arith.constant 0 : index
    %16 = vector.load %arg10[%c0_26, %c1_27, %c1_28, %c0_29] : memref<2x8x18x4xf32, #tpu.memory_space<vmem>>, vector<2x1x16x4xf32>
    %17 = vector.shape_cast %16 : vector<2x1x16x4xf32> to vector<2x16x4xf32>
    %18 = vector.shape_cast %15 : vector<2x16x4xf32> to vector<2x1x16x4xf32>
    tpu.vector_store %arg10[%c0_26, %c1_27, %c1_28, %c0_29], %18 {strides = array<i32>} : memref<2x8x18x4xf32, #tpu.memory_space<vmem>>, vector<2x1x16x4xf32>,
    %c0_30 = arith.constant 0 : index
    %c3 = arith.constant 3 : index
    %c0_31 = arith.constant 0 : index
    %c0_32 = arith.constant 0 : index
    %19 = vector.load %arg1[%c0_30, %c3, %c0_31, %c0_32] : memref<2x16x16x4xf32, #tpu.memory_space<vmem>>, vector<2x1x16x4xf32>
    %20 = vector.shape_cast %19 : vector<2x1x16x4xf32> to vector<2x16x4xf32>
    %c0_33 = arith.constant 0 : index
    %c2_34 = arith.constant 2 : index
    %c1_35 = arith.constant 1 : index
    %c0_36 = arith.constant 0 : index
    %21 = vector.load %arg11[%c0_33, %c2_34, %c1_35, %c0_36] : memref<2x9x18x4xf32, #tpu.memory_space<vmem>>, vector<2x1x16x4xf32>
    %22 = vector.shape_cast %21 : vector<2x1x16x4xf32> to vector<2x16x4xf32>
    %23 = vector.shape_cast %20 : vector<2x16x4xf32> to vector<2x1x16x4xf32>
    tpu.vector_store %arg11[%c0_33, %c2_34, %c1_35, %c0_36], %23 {strides = array<i32>} : memref<2x9x18x4xf32, #tpu.memory_space<vmem>>, vector<2x1x16x4xf32>,
    %c0_37 = arith.constant 0 : index
    %c4 = arith.constant 4 : index
    %c0_38 = arith.constant 0 : index
    %c0_39 = arith.constant 0 : index
    %24 = vector.load %arg1[%c0_37, %c4, %c0_38, %c0_39] : memref<2x16x16x4xf32, #tpu.memory_space<vmem>>, vector<2x1x16x4xf32>
    %25 = vector.shape_cast %24 : vector<2x1x16x4xf32> to vector<2x16x4xf32>
    %c0_40 = arith.constant 0 : index
    %c2_41 = arith.constant 2 : index
    %c1_42 = arith.constant 1 : index
    %c0_43 = arith.constant 0 : index
    %26 = vector.load %arg10[%c0_40, %c2_41, %c1_42, %c0_43] : memref<2x8x18x4xf32, #tpu.memory_space<vmem>>, vector<2x1x16x4xf32>
    %27 = vector.shape_cast %26 : vector<2x1x16x4xf32> to vector<2x16x4xf32>
    %28 = vector.shape_cast %25 : vector<2x16x4xf32> to vector<2x1x16x4xf32>
    tpu.vector_store %arg10[%c0_40, %c2_41, %c1_42, %c0_43], %28 {strides = array<i32>} : memref<2x8x18x4xf32, #tpu.memory_space<vmem>>, vector<2x1x16x4xf32>,
    %c0_44 = arith.constant 0 : index
    %c5 = arith.constant 5 : index
    %c0_45 = arith.constant 0 : index
    %c0_46 = arith.constant 0 : index
    %29 = vector.load %arg1[%c0_44, %c5, %c0_45, %c0_46] : memref<2x16x16x4xf32, #tpu.memory_space<vmem>>, vector<2x1x16x4xf32>
    %30 = vector.shape_cast %29 : vector<2x1x16x4xf32> to vector<2x16x4xf32>
    %c0_47 = arith.constant 0 : index
    %c3_48 = arith.constant 3 : index
    %c1_49 = arith.constant 1 : index
    %c0_50 = arith.constant 0 : index
    %31 = vector.load %arg11[%c0_47, %c3_48, %c1_49, %c0_50] : memref<2x9x18x4xf32, #tpu.memory_space<vmem>>, vector<2x1x16x4xf32>
    %32 = vector.shape_cast %31 : vector<2x1x16x4xf32> to vector<2x16x4xf32>
    %33 = vector.shape_cast %30 : vector<2x16x4xf32> to vector<2x1x16x4xf32>
    tpu.vector_store %arg11[%c0_47, %c3_48, %c1_49, %c0_50], %33 {strides = array<i32>} : memref<2x9x18x4xf32, #tpu.memory_space<vmem>>, vector<2x1x16x4xf32>,
    %c0_51 = arith.constant 0 : index
    %c6 = arith.constant 6 : index
    %c0_52 = arith.constant 0 : index
    %c0_53 = arith.constant 0 : index
    %34 = vector.load %arg1[%c0_51, %c6, %c0_52, %c0_53] : memref<2x16x16x4xf32, #tpu.memory_space<vmem>>, vector<2x1x16x4xf32>
    %35 = vector.shape_cast %34 : vector<2x1x16x4xf32> to vector<2x16x4xf32>
    %c0_54 = arith.constant 0 : index
    %c3_55 = arith.constant 3 : index
    %c1_56 = arith.constant 1 : index
    %c0_57 = arith.constant 0 : index
    %36 = vector.load %arg10[%c0_54, %c3_55, %c1_56, %c0_57] : memref<2x8x18x4xf32, #tpu.memory_space<vmem>>, vector<2x1x16x4xf32>
    %37 = vector.shape_cast %36 : vector<2x1x16x4xf32> to vector<2x16x4xf32>
    %38 = vector.shape_cast %35 : vector<2x16x4xf32> to vector<2x1x16x4xf32>
    tpu.vector_store %arg10[%c0_54, %c3_55, %c1_56, %c0_57], %38 {strides = array<i32>} : memref<2x8x18x4xf32, #tpu.memory_space<vmem>>, vector<2x1x16x4xf32>,
    %c0_58 = arith.constant 0 : index
    %c7 = arith.constant 7 : index
    %c0_59 = arith.constant 0 : index
    %c0_60 = arith.constant 0 : index
    %39 = vector.load %arg1[%c0_58, %c7, %c0_59, %c0_60] : memref<2x16x16x4xf32, #tpu.memory_space<vmem>>, vector<2x1x16x4xf32>
    %40 = vector.shape_cast %39 : vector<2x1x16x4xf32> to vector<2x16x4xf32>
    %c0_61 = arith.constant 0 : index
    %c4_62 = arith.constant 4 : index
    %c1_63 = arith.constant 1 : index
    %c0_64 = arith.constant 0 : index
    %41 = vector.load %arg11[%c0_61, %c4_62, %c1_63, %c0_64] : memref<2x9x18x4xf32, #tpu.memory_space<vmem>>, vector<2x1x16x4xf32>
    %42 = vector.shape_cast %41 : vector<2x1x16x4xf32> to vector<2x16x4xf32>
    %43 = vector.shape_cast %40 : vector<2x16x4xf32> to vector<2x1x16x4xf32>
    tpu.vector_store %arg11[%c0_61, %c4_62, %c1_63, %c0_64], %43 {strides = array<i32>} : memref<2x9x18x4xf32, #tpu.memory_space<vmem>>, vector<2x1x16x4xf32>,
    %c0_65 = arith.constant 0 : index
    %c8 = arith.constant 8 : index
    %c0_66 = arith.constant 0 : index
    %c0_67 = arith.constant 0 : index
    %44 = vector.load %arg1[%c0_65, %c8, %c0_66, %c0_67] : memref<2x16x16x4xf32, #tpu.memory_space<vmem>>, vector<2x1x16x4xf32>
    %45 = vector.shape_cast %44 : vector<2x1x16x4xf32> to vector<2x16x4xf32>
    %c0_68 = arith.constant 0 : index
    %c4_69 = arith.constant 4 : index
    %c1_70 = arith.constant 1 : index
    %c0_71 = arith.constant 0 : index
    %46 = vector.load %arg10[%c0_68, %c4_69, %c1_70, %c0_71] : memref<2x8x18x4xf32, #tpu.memory_space<vmem>>, vector<2x1x16x4xf32>
    %47 = vector.shape_cast %46 : vector<2x1x16x4xf32> to vector<2x16x4xf32>
    %48 = vector.shape_cast %45 : vector<2x16x4xf32> to vector<2x1x16x4xf32>
    tpu.vector_store %arg10[%c0_68, %c4_69, %c1_70, %c0_71], %48 {strides = array<i32>} : memref<2x8x18x4xf32, #tpu.memory_space<vmem>>, vector<2x1x16x4xf32>,
    %c0_72 = arith.constant 0 : index
    %c9 = arith.constant 9 : index
    %c0_73 = arith.constant 0 : index
    %c0_74 = arith.constant 0 : index
    %49 = vector.load %arg1[%c0_72, %c9, %c0_73, %c0_74] : memref<2x16x16x4xf32, #tpu.memory_space<vmem>>, vector<2x1x16x4xf32>
    %50 = vector.shape_cast %49 : vector<2x1x16x4xf32> to vector<2x16x4xf32>
    %c0_75 = arith.constant 0 : index
    %c5_76 = arith.constant 5 : index
    %c1_77 = arith.constant 1 : index
    %c0_78 = arith.constant 0 : index
    %51 = vector.load %arg11[%c0_75, %c5_76, %c1_77, %c0_78] : memref<2x9x18x4xf32, #tpu.memory_space<vmem>>, vector<2x1x16x4xf32>
    %52 = vector.shape_cast %51 : vector<2x1x16x4xf32> to vector<2x16x4xf32>
    %53 = vector.shape_cast %50 : vector<2x16x4xf32> to vector<2x1x16x4xf32>
    tpu.vector_store %arg11[%c0_75, %c5_76, %c1_77, %c0_78], %53 {strides = array<i32>} : memref<2x9x18x4xf32, #tpu.memory_space<vmem>>, vector<2x1x16x4xf32>,
    %c0_79 = arith.constant 0 : index
    %c10 = arith.constant 10 : index
    %c0_80 = arith.constant 0 : index
    %c0_81 = arith.constant 0 : index
    %54 = vector.load %arg1[%c0_79, %c10, %c0_80, %c0_81] : memref<2x16x16x4xf32, #tpu.memory_space<vmem>>, vector<2x1x16x4xf32>
    %55 = vector.shape_cast %54 : vector<2x1x16x4xf32> to vector<2x16x4xf32>
    %c0_82 = arith.constant 0 : index
    %c5_83 = arith.constant 5 : index
    %c1_84 = arith.constant 1 : index
    %c0_85 = arith.constant 0 : index
    %56 = vector.load %arg10[%c0_82, %c5_83, %c1_84, %c0_85] : memref<2x8x18x4xf32, #tpu.memory_space<vmem>>, vector<2x1x16x4xf32>
    %57 = vector.shape_cast %56 : vector<2x1x16x4xf32> to vector<2x16x4xf32>
    %58 = vector.shape_cast %55 : vector<2x16x4xf32> to vector<2x1x16x4xf32>
    tpu.vector_store %arg10[%c0_82, %c5_83, %c1_84, %c0_85], %58 {strides = array<i32>} : memref<2x8x18x4xf32, #tpu.memory_space<vmem>>, vector<2x1x16x4xf32>,
    %c0_86 = arith.constant 0 : index
    %c11 = arith.constant 11 : index
    %c0_87 = arith.constant 0 : index
    %c0_88 = arith.constant 0 : index
    %59 = vector.load %arg1[%c0_86, %c11, %c0_87, %c0_88] : memref<2x16x16x4xf32, #tpu.memory_space<vmem>>, vector<2x1x16x4xf32>
    %60 = vector.shape_cast %59 : vector<2x1x16x4xf32> to vector<2x16x4xf32>
    %c0_89 = arith.constant 0 : index
    %c6_90 = arith.constant 6 : index
    %c1_91 = arith.constant 1 : index
    %c0_92 = arith.constant 0 : index
    %61 = vector.load %arg11[%c0_89, %c6_90, %c1_91, %c0_92] : memref<2x9x18x4xf32, #tpu.memory_space<vmem>>, vector<2x1x16x4xf32>
    %62 = vector.shape_cast %61 : vector<2x1x16x4xf32> to vector<2x16x4xf32>
    %63 = vector.shape_cast %60 : vector<2x16x4xf32> to vector<2x1x16x4xf32>
    tpu.vector_store %arg11[%c0_89, %c6_90, %c1_91, %c0_92], %63 {strides = array<i32>} : memref<2x9x18x4xf32, #tpu.memory_space<vmem>>, vector<2x1x16x4xf32>,
    %c0_93 = arith.constant 0 : index
    %c12 = arith.constant 12 : index
    %c0_94 = arith.constant 0 : index
    %c0_95 = arith.constant 0 : index
    %64 = vector.load %arg1[%c0_93, %c12, %c0_94, %c0_95] : memref<2x16x16x4xf32, #tpu.memory_space<vmem>>, vector<2x1x16x4xf32>
    %65 = vector.shape_cast %64 : vector<2x1x16x4xf32> to vector<2x16x4xf32>
    %c0_96 = arith.constant 0 : index
    %c6_97 = arith.constant 6 : index
    %c1_98 = arith.constant 1 : index
    %c0_99 = arith.constant 0 : index
    %66 = vector.load %arg10[%c0_96, %c6_97, %c1_98, %c0_99] : memref<2x8x18x4xf32, #tpu.memory_space<vmem>>, vector<2x1x16x4xf32>
    %67 = vector.shape_cast %66 : vector<2x1x16x4xf32> to vector<2x16x4xf32>
    %68 = vector.shape_cast %65 : vector<2x16x4xf32> to vector<2x1x16x4xf32>
    tpu.vector_store %arg10[%c0_96, %c6_97, %c1_98, %c0_99], %68 {strides = array<i32>} : memref<2x8x18x4xf32, #tpu.memory_space<vmem>>, vector<2x1x16x4xf32>,
    %c0_100 = arith.constant 0 : index
    %c13 = arith.constant 13 : index
    %c0_101 = arith.constant 0 : index
    %c0_102 = arith.constant 0 : index
    %69 = vector.load %arg1[%c0_100, %c13, %c0_101, %c0_102] : memref<2x16x16x4xf32, #tpu.memory_space<vmem>>, vector<2x1x16x4xf32>
    %70 = vector.shape_cast %69 : vector<2x1x16x4xf32> to vector<2x16x4xf32>
    %c0_103 = arith.constant 0 : index
    %c7_104 = arith.constant 7 : index
    %c1_105 = arith.constant 1 : index
    %c0_106 = arith.constant 0 : index
    %71 = vector.load %arg11[%c0_103, %c7_104, %c1_105, %c0_106] : memref<2x9x18x4xf32, #tpu.memory_space<vmem>>, vector<2x1x16x4xf32>
    %72 = vector.shape_cast %71 : vector<2x1x16x4xf32> to vector<2x16x4xf32>
    %73 = vector.shape_cast %70 : vector<2x16x4xf32> to vector<2x1x16x4xf32>
    tpu.vector_store %arg11[%c0_103, %c7_104, %c1_105, %c0_106], %73 {strides = array<i32>} : memref<2x9x18x4xf32, #tpu.memory_space<vmem>>, vector<2x1x16x4xf32>,
    %c0_107 = arith.constant 0 : index
    %c14 = arith.constant 14 : index
    %c0_108 = arith.constant 0 : index
    %c0_109 = arith.constant 0 : index
    %74 = vector.load %arg1[%c0_107, %c14, %c0_108, %c0_109] : memref<2x16x16x4xf32, #tpu.memory_space<vmem>>, vector<2x1x16x4xf32>
    %75 = vector.shape_cast %74 : vector<2x1x16x4xf32> to vector<2x16x4xf32>
    %c0_110 = arith.constant 0 : index
    %c7_111 = arith.constant 7 : index
    %c1_112 = arith.constant 1 : index
    %c0_113 = arith.constant 0 : index
    %76 = vector.load %arg10[%c0_110, %c7_111, %c1_112, %c0_113] : memref<2x8x18x4xf32, #tpu.memory_space<vmem>>, vector<2x1x16x4xf32>
    %77 = vector.shape_cast %76 : vector<2x1x16x4xf32> to vector<2x16x4xf32>
    %78 = vector.shape_cast %75 : vector<2x16x4xf32> to vector<2x1x16x4xf32>
    tpu.vector_store %arg10[%c0_110, %c7_111, %c1_112, %c0_113], %78 {strides = array<i32>} : memref<2x8x18x4xf32, #tpu.memory_space<vmem>>, vector<2x1x16x4xf32>,
    %c0_114 = arith.constant 0 : index
    %c15 = arith.constant 15 : index
    %c0_115 = arith.constant 0 : index
    %c0_116 = arith.constant 0 : index
    %79 = vector.load %arg1[%c0_114, %c15, %c0_115, %c0_116] : memref<2x16x16x4xf32, #tpu.memory_space<vmem>>, vector<2x1x16x4xf32>
    %80 = vector.shape_cast %79 : vector<2x1x16x4xf32> to vector<2x16x4xf32>
    %c0_117 = arith.constant 0 : index
    %c8_118 = arith.constant 8 : index
    %c1_119 = arith.constant 1 : index
    %c0_120 = arith.constant 0 : index
    %81 = vector.load %arg11[%c0_117, %c8_118, %c1_119, %c0_120] : memref<2x9x18x4xf32, #tpu.memory_space<vmem>>, vector<2x1x16x4xf32>
    %82 = vector.shape_cast %81 : vector<2x1x16x4xf32> to vector<2x16x4xf32>
    %83 = vector.shape_cast %80 : vector<2x16x4xf32> to vector<2x1x16x4xf32>
    tpu.vector_store %arg11[%c0_117, %c8_118, %c1_119, %c0_120], %83 {strides = array<i32>} : memref<2x9x18x4xf32, #tpu.memory_space<vmem>>, vector<2x1x16x4xf32>,
    %c0_121 = arith.constant 0 : index
    %c0_122 = arith.constant 0 : index
    %c0_123 = arith.constant 0 : index
    %c0_124 = arith.constant 0 : index
    %84 = vector.load %arg10[%c0_121, %c0_122, %c0_123, %c0_124] : memref<2x8x18x4xf32, #tpu.memory_space<vmem>>, vector<2x8x18x4xf32>
    %c0_125 = arith.constant 0 : index
    %c0_126 = arith.constant 0 : index
    %c0_127 = arith.constant 0 : index
    %c0_128 = arith.constant 0 : index
    %85 = vector.load %arg11[%c0_125, %c0_126, %c0_127, %c0_128] : memref<2x9x18x4xf32, #tpu.memory_space<vmem>>, vector<2x9x18x4xf32>
    %86 = vector.extract_strided_slice %85 {offsets = [0, 0, 0, 0], sizes = [2, 8, 18, 4], strides = [1, 1, 1, 1]} : vector<2x9x18x4xf32> to vector<2x8x18x4xf32>
    %87 = vector.extract_strided_slice %85 {offsets = [0, 1, 0, 0], sizes = [2, 8, 18, 4], strides = [1, 1, 1, 1]} : vector<2x9x18x4xf32> to vector<2x8x18x4xf32>
    %cst_129 = arith.constant 0.000000e+00 : f32
    %88 = vector.broadcast %cst_129 : f32 to vector<256x4xf32>
    %89 = vector.extract_strided_slice %86 {offsets = [0, 0, 0, 0], sizes = [2, 8, 16, 4], strides = [1, 1, 1, 1]} : vector<2x8x18x4xf32> to vector<2x8x16x4xf32>
    %90 = vector.shape_cast %89 : vector<2x8x16x4xf32> to vector<256x4xf32>
    %c0_130 = arith.constant 0 : index
    %c0_131 = arith.constant 0 : index
    %c0_132 = arith.constant 0 : index
    %c0_133 = arith.constant 0 : index
    %91 = vector.load %arg2[%c0_130, %c0_131, %c0_132, %c0_133] : memref<3x3x4x4xf32, #tpu.memory_space<vmem>>, vector<1x1x4x4xf32>
    %92 = vector.shape_cast %91 : vector<1x1x4x4xf32> to vector<4x4xf32>
    %cst_134 = arith.constant dense<0.000000e+00> : vector<256x4xf32>
    %93 = tpu.matmul %90, %92, %cst_134 {dimension_numbers = #tpu.dot_dimension_numbers<[1], [0], [0], [1], [0, 0, 1, 1], [], []>} : vector<256x4xf32>, vector<4x4xf32>, vector<256x4xf32> -> vector<256x4xf32>
    %94 = arith.addf %88, %93 : vector<256x4xf32>
    %95 = vector.extract_strided_slice %86 {offsets = [0, 0, 1, 0], sizes = [2, 8, 16, 4], strides = [1, 1, 1, 1]} : vector<2x8x18x4xf32> to vector<2x8x16x4xf32>
    %96 = vector.shape_cast %95 : vector<2x8x16x4xf32> to vector<256x4xf32>
    %c0_135 = arith.constant 0 : index
    %c1_136 = arith.constant 1 : index
    %c0_137 = arith.constant 0 : index
    %c0_138 = arith.constant 0 : index
    %97 = vector.load %arg2[%c0_135, %c1_136, %c0_137, %c0_138] : memref<3x3x4x4xf32, #tpu.memory_space<vmem>>, vector<1x1x4x4xf32>
    %98 = vector.shape_cast %97 : vector<1x1x4x4xf32> to vector<4x4xf32>
    %cst_139 = arith.constant dense<0.000000e+00> : vector<256x4xf32>
    %99 = tpu.matmul %96, %98, %cst_139 {dimension_numbers = #tpu.dot_dimension_numbers<[1], [0], [0], [1], [0, 0, 1, 1], [], []>} : vector<256x4xf32>, vector<4x4xf32>, vector<256x4xf32> -> vector<256x4xf32>
    %100 = arith.addf %94, %99 : vector<256x4xf32>
    %101 = vector.extract_strided_slice %86 {offsets = [0, 0, 2, 0], sizes = [2, 8, 16, 4], strides = [1, 1, 1, 1]} : vector<2x8x18x4xf32> to vector<2x8x16x4xf32>
    %102 = vector.shape_cast %101 : vector<2x8x16x4xf32> to vector<256x4xf32>
    %c0_140 = arith.constant 0 : index
    %c2_141 = arith.constant 2 : index
    %c0_142 = arith.constant 0 : index
    %c0_143 = arith.constant 0 : index
    %103 = vector.load %arg2[%c0_140, %c2_141, %c0_142, %c0_143] : memref<3x3x4x4xf32, #tpu.memory_space<vmem>>, vector<1x1x4x4xf32>
    %104 = vector.shape_cast %103 : vector<1x1x4x4xf32> to vector<4x4xf32>
    %cst_144 = arith.constant dense<0.000000e+00> : vector<256x4xf32>
    %105 = tpu.matmul %102, %104, %cst_144 {dimension_numbers = #tpu.dot_dimension_numbers<[1], [0], [0], [1], [0, 0, 1, 1], [], []>} : vector<256x4xf32>, vector<4x4xf32>, vector<256x4xf32> -> vector<256x4xf32>
    %106 = arith.addf %100, %105 : vector<256x4xf32>
    %107 = vector.extract_strided_slice %84 {offsets = [0, 0, 0, 0], sizes = [2, 8, 16, 4], strides = [1, 1, 1, 1]} : vector<2x8x18x4xf32> to vector<2x8x16x4xf32>
    %108 = vector.shape_cast %107 : vector<2x8x16x4xf32> to vector<256x4xf32>
    %c1_145 = arith.constant 1 : index
    %c0_146 = arith.constant 0 : index
    %c0_147 = arith.constant 0 : index
    %c0_148 = arith.constant 0 : index
    %109 = vector.load %arg2[%c1_145, %c0_146, %c0_147, %c0_148] : memref<3x3x4x4xf32, #tpu.memory_space<vmem>>, vector<1x1x4x4xf32>
    %110 = vector.shape_cast %109 : vector<1x1x4x4xf32> to vector<4x4xf32>
    %cst_149 = arith.constant dense<0.000000e+00> : vector<256x4xf32>
    %111 = tpu.matmul %108, %110, %cst_149 {dimension_numbers = #tpu.dot_dimension_numbers<[1], [0], [0], [1], [0, 0, 1, 1], [], []>} : vector<256x4xf32>, vector<4x4xf32>, vector<256x4xf32> -> vector<256x4xf32>
    %112 = arith.addf %106, %111 : vector<256x4xf32>
    %113 = vector.extract_strided_slice %84 {offsets = [0, 0, 1, 0], sizes = [2, 8, 16, 4], strides = [1, 1, 1, 1]} : vector<2x8x18x4xf32> to vector<2x8x16x4xf32>
    %114 = vector.shape_cast %113 : vector<2x8x16x4xf32> to vector<256x4xf32>
    %c1_150 = arith.constant 1 : index
    %c1_151 = arith.constant 1 : index
    %c0_152 = arith.constant 0 : index
    %c0_153 = arith.constant 0 : index
    %115 = vector.load %arg2[%c1_150, %c1_151, %c0_152, %c0_153] : memref<3x3x4x4xf32, #tpu.memory_space<vmem>>, vector<1x1x4x4xf32>
    %116 = vector.shape_cast %115 : vector<1x1x4x4xf32> to vector<4x4xf32>
    %cst_154 = arith.constant dense<0.000000e+00> : vector<256x4xf32>
    %117 = tpu.matmul %114, %116, %cst_154 {dimension_numbers = #tpu.dot_dimension_numbers<[1], [0], [0], [1], [0, 0, 1, 1], [], []>} : vector<256x4xf32>, vector<4x4xf32>, vector<256x4xf32> -> vector<256x4xf32>
    %118 = arith.addf %112, %117 : vector<256x4xf32>
    %119 = vector.extract_strided_slice %84 {offsets = [0, 0, 2, 0], sizes = [2, 8, 16, 4], strides = [1, 1, 1, 1]} : vector<2x8x18x4xf32> to vector<2x8x16x4xf32>
    %120 = vector.shape_cast %119 : vector<2x8x16x4xf32> to vector<256x4xf32>
    %c1_155 = arith.constant 1 : index
    %c2_156 = arith.constant 2 : index
    %c0_157 = arith.constant 0 : index
    %c0_158 = arith.constant 0 : index
    %121 = vector.load %arg2[%c1_155, %c2_156, %c0_157, %c0_158] : memref<3x3x4x4xf32, #tpu.memory_space<vmem>>, vector<1x1x4x4xf32>
    %122 = vector.shape_cast %121 : vector<1x1x4x4xf32> to vector<4x4xf32>
    %cst_159 = arith.constant dense<0.000000e+00> : vector<256x4xf32>
    %123 = tpu.matmul %120, %122, %cst_159 {dimension_numbers = #tpu.dot_dimension_numbers<[1], [0], [0], [1], [0, 0, 1, 1], [], []>} : vector<256x4xf32>, vector<4x4xf32>, vector<256x4xf32> -> vector<256x4xf32>
    %124 = arith.addf %118, %123 : vector<256x4xf32>
    %125 = vector.extract_strided_slice %87 {offsets = [0, 0, 0, 0], sizes = [2, 8, 16, 4], strides = [1, 1, 1, 1]} : vector<2x8x18x4xf32> to vector<2x8x16x4xf32>
    %126 = vector.shape_cast %125 : vector<2x8x16x4xf32> to vector<256x4xf32>
    %c2_160 = arith.constant 2 : index
    %c0_161 = arith.constant 0 : index
    %c0_162 = arith.constant 0 : index
    %c0_163 = arith.constant 0 : index
    %127 = vector.load %arg2[%c2_160, %c0_161, %c0_162, %c0_163] : memref<3x3x4x4xf32, #tpu.memory_space<vmem>>, vector<1x1x4x4xf32>
    %128 = vector.shape_cast %127 : vector<1x1x4x4xf32> to vector<4x4xf32>
    %cst_164 = arith.constant dense<0.000000e+00> : vector<256x4xf32>
    %129 = tpu.matmul %126, %128, %cst_164 {dimension_numbers = #tpu.dot_dimension_numbers<[1], [0], [0], [1], [0, 0, 1, 1], [], []>} : vector<256x4xf32>, vector<4x4xf32>, vector<256x4xf32> -> vector<256x4xf32>
    %130 = arith.addf %124, %129 : vector<256x4xf32>
    %131 = vector.extract_strided_slice %87 {offsets = [0, 0, 1, 0], sizes = [2, 8, 16, 4], strides = [1, 1, 1, 1]} : vector<2x8x18x4xf32> to vector<2x8x16x4xf32>
    %132 = vector.shape_cast %131 : vector<2x8x16x4xf32> to vector<256x4xf32>
    %c2_165 = arith.constant 2 : index
    %c1_166 = arith.constant 1 : index
    %c0_167 = arith.constant 0 : index
    %c0_168 = arith.constant 0 : index
    %133 = vector.load %arg2[%c2_165, %c1_166, %c0_167, %c0_168] : memref<3x3x4x4xf32, #tpu.memory_space<vmem>>, vector<1x1x4x4xf32>
    %134 = vector.shape_cast %133 : vector<1x1x4x4xf32> to vector<4x4xf32>
    %cst_169 = arith.constant dense<0.000000e+00> : vector<256x4xf32>
    %135 = tpu.matmul %132, %134, %cst_169 {dimension_numbers = #tpu.dot_dimension_numbers<[1], [0], [0], [1], [0, 0, 1, 1], [], []>} : vector<256x4xf32>, vector<4x4xf32>, vector<256x4xf32> -> vector<256x4xf32>
    %136 = arith.addf %130, %135 : vector<256x4xf32>
    %137 = vector.extract_strided_slice %87 {offsets = [0, 0, 2, 0], sizes = [2, 8, 16, 4], strides = [1, 1, 1, 1]} : vector<2x8x18x4xf32> to vector<2x8x16x4xf32>
    %138 = vector.shape_cast %137 : vector<2x8x16x4xf32> to vector<256x4xf32>
    %c2_170 = arith.constant 2 : index
    %c2_171 = arith.constant 2 : index
    %c0_172 = arith.constant 0 : index
    %c0_173 = arith.constant 0 : index
    %139 = vector.load %arg2[%c2_170, %c2_171, %c0_172, %c0_173] : memref<3x3x4x4xf32, #tpu.memory_space<vmem>>, vector<1x1x4x4xf32>
    %140 = vector.shape_cast %139 : vector<1x1x4x4xf32> to vector<4x4xf32>
    %cst_174 = arith.constant dense<0.000000e+00> : vector<256x4xf32>
    %141 = tpu.matmul %138, %140, %cst_174 {dimension_numbers = #tpu.dot_dimension_numbers<[1], [0], [0], [1], [0, 0, 1, 1], [], []>} : vector<256x4xf32>, vector<4x4xf32>, vector<256x4xf32> -> vector<256x4xf32>
    %142 = arith.addf %136, %141 : vector<256x4xf32>
    %c0_175 = arith.constant 0 : index
    %c0_176 = arith.constant 0 : index
    %143 = vector.load %arg3[%c0_175, %c0_176] : memref<1x4xf32, #tpu.memory_space<vmem>>, vector<1x4xf32>
    %144 = vector.broadcast %143 : vector<1x4xf32> to vector<256x4xf32>
    %145 = arith.mulf %142, %144 : vector<256x4xf32>
    %c0_177 = arith.constant 0 : index
    %c0_178 = arith.constant 0 : index
    %146 = vector.load %arg4[%c0_177, %c0_178] : memref<1x4xf32, #tpu.memory_space<vmem>>, vector<1x4xf32>
    %147 = vector.broadcast %146 : vector<1x4xf32> to vector<256x4xf32>
    %148 = arith.addf %145, %147 : vector<256x4xf32>
    %cst_179 = arith.constant 0.000000e+00 : f32
    %149 = vector.broadcast %cst_179 : f32 to vector<256x4xf32>
    %150 = arith.maximumf %148, %149 : vector<256x4xf32>
    %151 = vector.shape_cast %150 : vector<256x4xf32> to vector<2x8x16x4xf32>
    %cst_180 = arith.constant 0.000000e+00 : f32
    %152 = vector.broadcast %cst_180 : f32 to vector<2x4x18x4xf32>
    %c0_181 = arith.constant 0 : index
    %c0_182 = arith.constant 0 : index
    %c0_183 = arith.constant 0 : index
    %c0_184 = arith.constant 0 : index
    %153 = vector.load %arg12[%c0_181, %c0_182, %c0_183, %c0_184] : memref<2x4x18x4xf32, #tpu.memory_space<vmem>>, vector<2x4x18x4xf32>
    tpu.vector_store %arg12[%c0_181, %c0_182, %c0_183, %c0_184], %152 {strides = array<i32>} : memref<2x4x18x4xf32, #tpu.memory_space<vmem>>, vector<2x4x18x4xf32>,
    %cst_185 = arith.constant 0.000000e+00 : f32
    %154 = vector.broadcast %cst_185 : f32 to vector<2x5x18x4xf32>
    %c0_186 = arith.constant 0 : index
    %c0_187 = arith.constant 0 : index
    %c0_188 = arith.constant 0 : index
    %c0_189 = arith.constant 0 : index
    %155 = vector.load %arg13[%c0_186, %c0_187, %c0_188, %c0_189] : memref<2x5x18x4xf32, #tpu.memory_space<vmem>>, vector<2x5x18x4xf32>
    tpu.vector_store %arg13[%c0_186, %c0_187, %c0_188, %c0_189], %154 {strides = array<i32>} : memref<2x5x18x4xf32, #tpu.memory_space<vmem>>, vector<2x5x18x4xf32>,
    %156 = vector.extract_strided_slice %151 {offsets = [0, 0, 0, 0], sizes = [2, 1, 16, 4], strides = [1, 1, 1, 1]} : vector<2x8x16x4xf32> to vector<2x1x16x4xf32>
    %157 = vector.shape_cast %156 : vector<2x1x16x4xf32> to vector<2x16x4xf32>
    %c0_190 = arith.constant 0 : index
    %c0_191 = arith.constant 0 : index
    %c1_192 = arith.constant 1 : index
    %c0_193 = arith.constant 0 : index
    %158 = vector.load %arg12[%c0_190, %c0_191, %c1_192, %c0_193] : memref<2x4x18x4xf32, #tpu.memory_space<vmem>>, vector<2x1x16x4xf32>
    %159 = vector.shape_cast %158 : vector<2x1x16x4xf32> to vector<2x16x4xf32>
    %160 = vector.shape_cast %157 : vector<2x16x4xf32> to vector<2x1x16x4xf32>
    tpu.vector_store %arg12[%c0_190, %c0_191, %c1_192, %c0_193], %160 {strides = array<i32>} : memref<2x4x18x4xf32, #tpu.memory_space<vmem>>, vector<2x1x16x4xf32>,
    %161 = vector.extract_strided_slice %151 {offsets = [0, 1, 0, 0], sizes = [2, 1, 16, 4], strides = [1, 1, 1, 1]} : vector<2x8x16x4xf32> to vector<2x1x16x4xf32>
    %162 = vector.shape_cast %161 : vector<2x1x16x4xf32> to vector<2x16x4xf32>
    %c0_194 = arith.constant 0 : index
    %c1_195 = arith.constant 1 : index
    %c1_196 = arith.constant 1 : index
    %c0_197 = arith.constant 0 : index
    %163 = vector.load %arg13[%c0_194, %c1_195, %c1_196, %c0_197] : memref<2x5x18x4xf32, #tpu.memory_space<vmem>>, vector<2x1x16x4xf32>
    %164 = vector.shape_cast %163 : vector<2x1x16x4xf32> to vector<2x16x4xf32>
    %165 = vector.shape_cast %162 : vector<2x16x4xf32> to vector<2x1x16x4xf32>
    tpu.vector_store %arg13[%c0_194, %c1_195, %c1_196, %c0_197], %165 {strides = array<i32>} : memref<2x5x18x4xf32, #tpu.memory_space<vmem>>, vector<2x1x16x4xf32>,
    %166 = vector.extract_strided_slice %151 {offsets = [0, 2, 0, 0], sizes = [2, 1, 16, 4], strides = [1, 1, 1, 1]} : vector<2x8x16x4xf32> to vector<2x1x16x4xf32>
    %167 = vector.shape_cast %166 : vector<2x1x16x4xf32> to vector<2x16x4xf32>
    %c0_198 = arith.constant 0 : index
    %c1_199 = arith.constant 1 : index
    %c1_200 = arith.constant 1 : index
    %c0_201 = arith.constant 0 : index
    %168 = vector.load %arg12[%c0_198, %c1_199, %c1_200, %c0_201] : memref<2x4x18x4xf32, #tpu.memory_space<vmem>>, vector<2x1x16x4xf32>
    %169 = vector.shape_cast %168 : vector<2x1x16x4xf32> to vector<2x16x4xf32>
    %170 = vector.shape_cast %167 : vector<2x16x4xf32> to vector<2x1x16x4xf32>
    tpu.vector_store %arg12[%c0_198, %c1_199, %c1_200, %c0_201], %170 {strides = array<i32>} : memref<2x4x18x4xf32, #tpu.memory_space<vmem>>, vector<2x1x16x4xf32>,
    %171 = vector.extract_strided_slice %151 {offsets = [0, 3, 0, 0], sizes = [2, 1, 16, 4], strides = [1, 1, 1, 1]} : vector<2x8x16x4xf32> to vector<2x1x16x4xf32>
    %172 = vector.shape_cast %171 : vector<2x1x16x4xf32> to vector<2x16x4xf32>
    %c0_202 = arith.constant 0 : index
    %c2_203 = arith.constant 2 : index
    %c1_204 = arith.constant 1 : index
    %c0_205 = arith.constant 0 : index
    %173 = vector.load %arg13[%c0_202, %c2_203, %c1_204, %c0_205] : memref<2x5x18x4xf32, #tpu.memory_space<vmem>>, vector<2x1x16x4xf32>
    %174 = vector.shape_cast %173 : vector<2x1x16x4xf32> to vector<2x16x4xf32>
    %175 = vector.shape_cast %172 : vector<2x16x4xf32> to vector<2x1x16x4xf32>
    tpu.vector_store %arg13[%c0_202, %c2_203, %c1_204, %c0_205], %175 {strides = array<i32>} : memref<2x5x18x4xf32, #tpu.memory_space<vmem>>, vector<2x1x16x4xf32>,
    %176 = vector.extract_strided_slice %151 {offsets = [0, 4, 0, 0], sizes = [2, 1, 16, 4], strides = [1, 1, 1, 1]} : vector<2x8x16x4xf32> to vector<2x1x16x4xf32>
    %177 = vector.shape_cast %176 : vector<2x1x16x4xf32> to vector<2x16x4xf32>
    %c0_206 = arith.constant 0 : index
    %c2_207 = arith.constant 2 : index
    %c1_208 = arith.constant 1 : index
    %c0_209 = arith.constant 0 : index
    %178 = vector.load %arg12[%c0_206, %c2_207, %c1_208, %c0_209] : memref<2x4x18x4xf32, #tpu.memory_space<vmem>>, vector<2x1x16x4xf32>
    %179 = vector.shape_cast %178 : vector<2x1x16x4xf32> to vector<2x16x4xf32>
    %180 = vector.shape_cast %177 : vector<2x16x4xf32> to vector<2x1x16x4xf32>
    tpu.vector_store %arg12[%c0_206, %c2_207, %c1_208, %c0_209], %180 {strides = array<i32>} : memref<2x4x18x4xf32, #tpu.memory_space<vmem>>, vector<2x1x16x4xf32>,
    %181 = vector.extract_strided_slice %151 {offsets = [0, 5, 0, 0], sizes = [2, 1, 16, 4], strides = [1, 1, 1, 1]} : vector<2x8x16x4xf32> to vector<2x1x16x4xf32>
    %182 = vector.shape_cast %181 : vector<2x1x16x4xf32> to vector<2x16x4xf32>
    %c0_210 = arith.constant 0 : index
    %c3_211 = arith.constant 3 : index
    %c1_212 = arith.constant 1 : index
    %c0_213 = arith.constant 0 : index
    %183 = vector.load %arg13[%c0_210, %c3_211, %c1_212, %c0_213] : memref<2x5x18x4xf32, #tpu.memory_space<vmem>>, vector<2x1x16x4xf32>
    %184 = vector.shape_cast %183 : vector<2x1x16x4xf32> to vector<2x16x4xf32>
    %185 = vector.shape_cast %182 : vector<2x16x4xf32> to vector<2x1x16x4xf32>
    tpu.vector_store %arg13[%c0_210, %c3_211, %c1_212, %c0_213], %185 {strides = array<i32>} : memref<2x5x18x4xf32, #tpu.memory_space<vmem>>, vector<2x1x16x4xf32>,
    %186 = vector.extract_strided_slice %151 {offsets = [0, 6, 0, 0], sizes = [2, 1, 16, 4], strides = [1, 1, 1, 1]} : vector<2x8x16x4xf32> to vector<2x1x16x4xf32>
    %187 = vector.shape_cast %186 : vector<2x1x16x4xf32> to vector<2x16x4xf32>
    %c0_214 = arith.constant 0 : index
    %c3_215 = arith.constant 3 : index
    %c1_216 = arith.constant 1 : index
    %c0_217 = arith.constant 0 : index
    %188 = vector.load %arg12[%c0_214, %c3_215, %c1_216, %c0_217] : memref<2x4x18x4xf32, #tpu.memory_space<vmem>>, vector<2x1x16x4xf32>
    %189 = vector.shape_cast %188 : vector<2x1x16x4xf32> to vector<2x16x4xf32>
    %190 = vector.shape_cast %187 : vector<2x16x4xf32> to vector<2x1x16x4xf32>
    tpu.vector_store %arg12[%c0_214, %c3_215, %c1_216, %c0_217], %190 {strides = array<i32>} : memref<2x4x18x4xf32, #tpu.memory_space<vmem>>, vector<2x1x16x4xf32>,
    %191 = vector.extract_strided_slice %151 {offsets = [0, 7, 0, 0], sizes = [2, 1, 16, 4], strides = [1, 1, 1, 1]} : vector<2x8x16x4xf32> to vector<2x1x16x4xf32>
    %192 = vector.shape_cast %191 : vector<2x1x16x4xf32> to vector<2x16x4xf32>
    %c0_218 = arith.constant 0 : index
    %c4_219 = arith.constant 4 : index
    %c1_220 = arith.constant 1 : index
    %c0_221 = arith.constant 0 : index
    %193 = vector.load %arg13[%c0_218, %c4_219, %c1_220, %c0_221] : memref<2x5x18x4xf32, #tpu.memory_space<vmem>>, vector<2x1x16x4xf32>
    %194 = vector.shape_cast %193 : vector<2x1x16x4xf32> to vector<2x16x4xf32>
    %195 = vector.shape_cast %192 : vector<2x16x4xf32> to vector<2x1x16x4xf32>
    tpu.vector_store %arg13[%c0_218, %c4_219, %c1_220, %c0_221], %195 {strides = array<i32>} : memref<2x5x18x4xf32, #tpu.memory_space<vmem>>, vector<2x1x16x4xf32>,
    %c0_222 = arith.constant 0 : index
    %c0_223 = arith.constant 0 : index
    %c0_224 = arith.constant 0 : index
    %c0_225 = arith.constant 0 : index
    %196 = vector.load %arg12[%c0_222, %c0_223, %c0_224, %c0_225] : memref<2x4x18x4xf32, #tpu.memory_space<vmem>>, vector<2x4x18x4xf32>
    %c0_226 = arith.constant 0 : index
    %c0_227 = arith.constant 0 : index
    %c0_228 = arith.constant 0 : index
    %c0_229 = arith.constant 0 : index
    %197 = vector.load %arg13[%c0_226, %c0_227, %c0_228, %c0_229] : memref<2x5x18x4xf32, #tpu.memory_space<vmem>>, vector<2x5x18x4xf32>
    %198 = vector.extract_strided_slice %197 {offsets = [0, 0, 0, 0], sizes = [2, 4, 18, 4], strides = [1, 1, 1, 1]} : vector<2x5x18x4xf32> to vector<2x4x18x4xf32>
    %199 = vector.extract_strided_slice %197 {offsets = [0, 1, 0, 0], sizes = [2, 4, 18, 4], strides = [1, 1, 1, 1]} : vector<2x5x18x4xf32> to vector<2x4x18x4xf32>
    %cst_230 = arith.constant 0.000000e+00 : f32
    %200 = vector.broadcast %cst_230 : f32 to vector<128x4xf32>
    %201 = vector.extract_strided_slice %198 {offsets = [0, 0, 0, 0], sizes = [2, 4, 16, 4], strides = [1, 1, 1, 1]} : vector<2x4x18x4xf32> to vector<2x4x16x4xf32>
    %202 = vector.shape_cast %201 : vector<2x4x16x4xf32> to vector<128x4xf32>
    %c0_231 = arith.constant 0 : index
    %c0_232 = arith.constant 0 : index
    %c0_233 = arith.constant 0 : index
    %c0_234 = arith.constant 0 : index
    %203 = vector.load %arg5[%c0_231, %c0_232, %c0_233, %c0_234] : memref<3x3x4x4xf32, #tpu.memory_space<vmem>>, vector<1x1x4x4xf32>
    %204 = vector.shape_cast %203 : vector<1x1x4x4xf32> to vector<4x4xf32>
    %cst_235 = arith.constant dense<0.000000e+00> : vector<128x4xf32>
    %205 = tpu.matmul %202, %204, %cst_235 {dimension_numbers = #tpu.dot_dimension_numbers<[1], [0], [0], [1], [0, 0, 1, 1], [], []>} : vector<128x4xf32>, vector<4x4xf32>, vector<128x4xf32> -> vector<128x4xf32>
    %206 = arith.addf %200, %205 : vector<128x4xf32>
    %207 = vector.extract_strided_slice %198 {offsets = [0, 0, 1, 0], sizes = [2, 4, 16, 4], strides = [1, 1, 1, 1]} : vector<2x4x18x4xf32> to vector<2x4x16x4xf32>
    %208 = vector.shape_cast %207 : vector<2x4x16x4xf32> to vector<128x4xf32>
    %c0_236 = arith.constant 0 : index
    %c1_237 = arith.constant 1 : index
    %c0_238 = arith.constant 0 : index
    %c0_239 = arith.constant 0 : index
    %209 = vector.load %arg5[%c0_236, %c1_237, %c0_238, %c0_239] : memref<3x3x4x4xf32, #tpu.memory_space<vmem>>, vector<1x1x4x4xf32>
    %210 = vector.shape_cast %209 : vector<1x1x4x4xf32> to vector<4x4xf32>
    %cst_240 = arith.constant dense<0.000000e+00> : vector<128x4xf32>
    %211 = tpu.matmul %208, %210, %cst_240 {dimension_numbers = #tpu.dot_dimension_numbers<[1], [0], [0], [1], [0, 0, 1, 1], [], []>} : vector<128x4xf32>, vector<4x4xf32>, vector<128x4xf32> -> vector<128x4xf32>
    %212 = arith.addf %206, %211 : vector<128x4xf32>
    %213 = vector.extract_strided_slice %198 {offsets = [0, 0, 2, 0], sizes = [2, 4, 16, 4], strides = [1, 1, 1, 1]} : vector<2x4x18x4xf32> to vector<2x4x16x4xf32>
    %214 = vector.shape_cast %213 : vector<2x4x16x4xf32> to vector<128x4xf32>
    %c0_241 = arith.constant 0 : index
    %c2_242 = arith.constant 2 : index
    %c0_243 = arith.constant 0 : index
    %c0_244 = arith.constant 0 : index
    %215 = vector.load %arg5[%c0_241, %c2_242, %c0_243, %c0_244] : memref<3x3x4x4xf32, #tpu.memory_space<vmem>>, vector<1x1x4x4xf32>
    %216 = vector.shape_cast %215 : vector<1x1x4x4xf32> to vector<4x4xf32>
    %cst_245 = arith.constant dense<0.000000e+00> : vector<128x4xf32>
    %217 = tpu.matmul %214, %216, %cst_245 {dimension_numbers = #tpu.dot_dimension_numbers<[1], [0], [0], [1], [0, 0, 1, 1], [], []>} : vector<128x4xf32>, vector<4x4xf32>, vector<128x4xf32> -> vector<128x4xf32>
    %218 = arith.addf %212, %217 : vector<128x4xf32>
    %219 = vector.extract_strided_slice %196 {offsets = [0, 0, 0, 0], sizes = [2, 4, 16, 4], strides = [1, 1, 1, 1]} : vector<2x4x18x4xf32> to vector<2x4x16x4xf32>
    %220 = vector.shape_cast %219 : vector<2x4x16x4xf32> to vector<128x4xf32>
    %c1_246 = arith.constant 1 : index
    %c0_247 = arith.constant 0 : index
    %c0_248 = arith.constant 0 : index
    %c0_249 = arith.constant 0 : index
    %221 = vector.load %arg5[%c1_246, %c0_247, %c0_248, %c0_249] : memref<3x3x4x4xf32, #tpu.memory_space<vmem>>, vector<1x1x4x4xf32>
    %222 = vector.shape_cast %221 : vector<1x1x4x4xf32> to vector<4x4xf32>
    %cst_250 = arith.constant dense<0.000000e+00> : vector<128x4xf32>
    %223 = tpu.matmul %220, %222, %cst_250 {dimension_numbers = #tpu.dot_dimension_numbers<[1], [0], [0], [1], [0, 0, 1, 1], [], []>} : vector<128x4xf32>, vector<4x4xf32>, vector<128x4xf32> -> vector<128x4xf32>
    %224 = arith.addf %218, %223 : vector<128x4xf32>
    %225 = vector.extract_strided_slice %196 {offsets = [0, 0, 1, 0], sizes = [2, 4, 16, 4], strides = [1, 1, 1, 1]} : vector<2x4x18x4xf32> to vector<2x4x16x4xf32>
    %226 = vector.shape_cast %225 : vector<2x4x16x4xf32> to vector<128x4xf32>
    %c1_251 = arith.constant 1 : index
    %c1_252 = arith.constant 1 : index
    %c0_253 = arith.constant 0 : index
    %c0_254 = arith.constant 0 : index
    %227 = vector.load %arg5[%c1_251, %c1_252, %c0_253, %c0_254] : memref<3x3x4x4xf32, #tpu.memory_space<vmem>>, vector<1x1x4x4xf32>
    %228 = vector.shape_cast %227 : vector<1x1x4x4xf32> to vector<4x4xf32>
    %cst_255 = arith.constant dense<0.000000e+00> : vector<128x4xf32>
    %229 = tpu.matmul %226, %228, %cst_255 {dimension_numbers = #tpu.dot_dimension_numbers<[1], [0], [0], [1], [0, 0, 1, 1], [], []>} : vector<128x4xf32>, vector<4x4xf32>, vector<128x4xf32> -> vector<128x4xf32>
    %230 = arith.addf %224, %229 : vector<128x4xf32>
    %231 = vector.extract_strided_slice %196 {offsets = [0, 0, 2, 0], sizes = [2, 4, 16, 4], strides = [1, 1, 1, 1]} : vector<2x4x18x4xf32> to vector<2x4x16x4xf32>
    %232 = vector.shape_cast %231 : vector<2x4x16x4xf32> to vector<128x4xf32>
    %c1_256 = arith.constant 1 : index
    %c2_257 = arith.constant 2 : index
    %c0_258 = arith.constant 0 : index
    %c0_259 = arith.constant 0 : index
    %233 = vector.load %arg5[%c1_256, %c2_257, %c0_258, %c0_259] : memref<3x3x4x4xf32, #tpu.memory_space<vmem>>, vector<1x1x4x4xf32>
    %234 = vector.shape_cast %233 : vector<1x1x4x4xf32> to vector<4x4xf32>
    %cst_260 = arith.constant dense<0.000000e+00> : vector<128x4xf32>
    %235 = tpu.matmul %232, %234, %cst_260 {dimension_numbers = #tpu.dot_dimension_numbers<[1], [0], [0], [1], [0, 0, 1, 1], [], []>} : vector<128x4xf32>, vector<4x4xf32>, vector<128x4xf32> -> vector<128x4xf32>
    %236 = arith.addf %230, %235 : vector<128x4xf32>
    %237 = vector.extract_strided_slice %199 {offsets = [0, 0, 0, 0], sizes = [2, 4, 16, 4], strides = [1, 1, 1, 1]} : vector<2x4x18x4xf32> to vector<2x4x16x4xf32>
    %238 = vector.shape_cast %237 : vector<2x4x16x4xf32> to vector<128x4xf32>
    %c2_261 = arith.constant 2 : index
    %c0_262 = arith.constant 0 : index
    %c0_263 = arith.constant 0 : index
    %c0_264 = arith.constant 0 : index
    %239 = vector.load %arg5[%c2_261, %c0_262, %c0_263, %c0_264] : memref<3x3x4x4xf32, #tpu.memory_space<vmem>>, vector<1x1x4x4xf32>
    %240 = vector.shape_cast %239 : vector<1x1x4x4xf32> to vector<4x4xf32>
    %cst_265 = arith.constant dense<0.000000e+00> : vector<128x4xf32>
    %241 = tpu.matmul %238, %240, %cst_265 {dimension_numbers = #tpu.dot_dimension_numbers<[1], [0], [0], [1], [0, 0, 1, 1], [], []>} : vector<128x4xf32>, vector<4x4xf32>, vector<128x4xf32> -> vector<128x4xf32>
    %242 = arith.addf %236, %241 : vector<128x4xf32>
    %243 = vector.extract_strided_slice %199 {offsets = [0, 0, 1, 0], sizes = [2, 4, 16, 4], strides = [1, 1, 1, 1]} : vector<2x4x18x4xf32> to vector<2x4x16x4xf32>
    %244 = vector.shape_cast %243 : vector<2x4x16x4xf32> to vector<128x4xf32>
    %c2_266 = arith.constant 2 : index
    %c1_267 = arith.constant 1 : index
    %c0_268 = arith.constant 0 : index
    %c0_269 = arith.constant 0 : index
    %245 = vector.load %arg5[%c2_266, %c1_267, %c0_268, %c0_269] : memref<3x3x4x4xf32, #tpu.memory_space<vmem>>, vector<1x1x4x4xf32>
    %246 = vector.shape_cast %245 : vector<1x1x4x4xf32> to vector<4x4xf32>
    %cst_270 = arith.constant dense<0.000000e+00> : vector<128x4xf32>
    %247 = tpu.matmul %244, %246, %cst_270 {dimension_numbers = #tpu.dot_dimension_numbers<[1], [0], [0], [1], [0, 0, 1, 1], [], []>} : vector<128x4xf32>, vector<4x4xf32>, vector<128x4xf32> -> vector<128x4xf32>
    %248 = arith.addf %242, %247 : vector<128x4xf32>
    %249 = vector.extract_strided_slice %199 {offsets = [0, 0, 2, 0], sizes = [2, 4, 16, 4], strides = [1, 1, 1, 1]} : vector<2x4x18x4xf32> to vector<2x4x16x4xf32>
    %250 = vector.shape_cast %249 : vector<2x4x16x4xf32> to vector<128x4xf32>
    %c2_271 = arith.constant 2 : index
    %c2_272 = arith.constant 2 : index
    %c0_273 = arith.constant 0 : index
    %c0_274 = arith.constant 0 : index
    %251 = vector.load %arg5[%c2_271, %c2_272, %c0_273, %c0_274] : memref<3x3x4x4xf32, #tpu.memory_space<vmem>>, vector<1x1x4x4xf32>
    %252 = vector.shape_cast %251 : vector<1x1x4x4xf32> to vector<4x4xf32>
    %cst_275 = arith.constant dense<0.000000e+00> : vector<128x4xf32>
    %253 = tpu.matmul %250, %252, %cst_275 {dimension_numbers = #tpu.dot_dimension_numbers<[1], [0], [0], [1], [0, 0, 1, 1], [], []>} : vector<128x4xf32>, vector<4x4xf32>, vector<128x4xf32> -> vector<128x4xf32>
    %254 = arith.addf %248, %253 : vector<128x4xf32>
    %c0_276 = arith.constant 0 : index
    %c0_277 = arith.constant 0 : index
    %255 = vector.load %arg6[%c0_276, %c0_277] : memref<1x4xf32, #tpu.memory_space<vmem>>, vector<1x4xf32>
    %256 = vector.broadcast %255 : vector<1x4xf32> to vector<128x4xf32>
    %257 = arith.mulf %254, %256 : vector<128x4xf32>
    %c0_278 = arith.constant 0 : index
    %c0_279 = arith.constant 0 : index
    %258 = vector.load %arg7[%c0_278, %c0_279] : memref<1x4xf32, #tpu.memory_space<vmem>>, vector<1x4xf32>
    %259 = vector.broadcast %258 : vector<1x4xf32> to vector<128x4xf32>
    %260 = arith.addf %257, %259 : vector<128x4xf32>
    %cst_280 = arith.constant 0.000000e+00 : f32
    %261 = vector.broadcast %cst_280 : f32 to vector<128x4xf32>
    %262 = arith.maximumf %260, %261 : vector<128x4xf32>
    %263 = vector.shape_cast %262 : vector<128x4xf32> to vector<2x4x16x4xf32>
    %cst_281 = arith.constant 0.000000e+00 : f32
    %264 = vector.broadcast %cst_281 : f32 to vector<32x4xf32>
    %265 = vector.extract_strided_slice %263 {offsets = [0, 0, 0, 0], sizes = [2, 1, 16, 4], strides = [1, 1, 1, 1]} : vector<2x4x16x4xf32> to vector<2x1x16x4xf32>
    %266 = vector.shape_cast %265 : vector<2x1x16x4xf32> to vector<2x16x4xf32>
    %267 = vector.shape_cast %266 : vector<2x16x4xf32> to vector<32x4xf32>
    %c0_282 = arith.constant 0 : index
    %c0_283 = arith.constant 0 : index
    %c0_284 = arith.constant 0 : index
    %268 = vector.load %arg8[%c0_282, %c0_283, %c0_284] : memref<4x4x4xf32, #tpu.memory_space<vmem>>, vector<1x4x4xf32>
    %269 = vector.shape_cast %268 : vector<1x4x4xf32> to vector<4x4xf32>
    %cst_285 = arith.constant dense<0.000000e+00> : vector<32x4xf32>
    %270 = tpu.matmul %267, %269, %cst_285 {dimension_numbers = #tpu.dot_dimension_numbers<[1], [0], [0], [1], [0, 0, 1, 1], [], []>} : vector<32x4xf32>, vector<4x4xf32>, vector<32x4xf32> -> vector<32x4xf32>
    %271 = arith.addf %264, %270 : vector<32x4xf32>
    %272 = vector.extract_strided_slice %263 {offsets = [0, 1, 0, 0], sizes = [2, 1, 16, 4], strides = [1, 1, 1, 1]} : vector<2x4x16x4xf32> to vector<2x1x16x4xf32>
    %273 = vector.shape_cast %272 : vector<2x1x16x4xf32> to vector<2x16x4xf32>
    %274 = vector.shape_cast %273 : vector<2x16x4xf32> to vector<32x4xf32>
    %c1_286 = arith.constant 1 : index
    %c0_287 = arith.constant 0 : index
    %c0_288 = arith.constant 0 : index
    %275 = vector.load %arg8[%c1_286, %c0_287, %c0_288] : memref<4x4x4xf32, #tpu.memory_space<vmem>>, vector<1x4x4xf32>
    %276 = vector.shape_cast %275 : vector<1x4x4xf32> to vector<4x4xf32>
    %cst_289 = arith.constant dense<0.000000e+00> : vector<32x4xf32>
    %277 = tpu.matmul %274, %276, %cst_289 {dimension_numbers = #tpu.dot_dimension_numbers<[1], [0], [0], [1], [0, 0, 1, 1], [], []>} : vector<32x4xf32>, vector<4x4xf32>, vector<32x4xf32> -> vector<32x4xf32>
    %278 = arith.addf %271, %277 : vector<32x4xf32>
    %279 = vector.extract_strided_slice %263 {offsets = [0, 2, 0, 0], sizes = [2, 1, 16, 4], strides = [1, 1, 1, 1]} : vector<2x4x16x4xf32> to vector<2x1x16x4xf32>
    %280 = vector.shape_cast %279 : vector<2x1x16x4xf32> to vector<2x16x4xf32>
    %281 = vector.shape_cast %280 : vector<2x16x4xf32> to vector<32x4xf32>
    %c2_290 = arith.constant 2 : index
    %c0_291 = arith.constant 0 : index
    %c0_292 = arith.constant 0 : index
    %282 = vector.load %arg8[%c2_290, %c0_291, %c0_292] : memref<4x4x4xf32, #tpu.memory_space<vmem>>, vector<1x4x4xf32>
    %283 = vector.shape_cast %282 : vector<1x4x4xf32> to vector<4x4xf32>
    %cst_293 = arith.constant dense<0.000000e+00> : vector<32x4xf32>
    %284 = tpu.matmul %281, %283, %cst_293 {dimension_numbers = #tpu.dot_dimension_numbers<[1], [0], [0], [1], [0, 0, 1, 1], [], []>} : vector<32x4xf32>, vector<4x4xf32>, vector<32x4xf32> -> vector<32x4xf32>
    %285 = arith.addf %278, %284 : vector<32x4xf32>
    %286 = vector.extract_strided_slice %263 {offsets = [0, 3, 0, 0], sizes = [2, 1, 16, 4], strides = [1, 1, 1, 1]} : vector<2x4x16x4xf32> to vector<2x1x16x4xf32>
    %287 = vector.shape_cast %286 : vector<2x1x16x4xf32> to vector<2x16x4xf32>
    %288 = vector.shape_cast %287 : vector<2x16x4xf32> to vector<32x4xf32>
    %c3_294 = arith.constant 3 : index
    %c0_295 = arith.constant 0 : index
    %c0_296 = arith.constant 0 : index
    %289 = vector.load %arg8[%c3_294, %c0_295, %c0_296] : memref<4x4x4xf32, #tpu.memory_space<vmem>>, vector<1x4x4xf32>
    %290 = vector.shape_cast %289 : vector<1x4x4xf32> to vector<4x4xf32>
    %cst_297 = arith.constant dense<0.000000e+00> : vector<32x4xf32>
    %291 = tpu.matmul %288, %290, %cst_297 {dimension_numbers = #tpu.dot_dimension_numbers<[1], [0], [0], [1], [0, 0, 1, 1], [], []>} : vector<32x4xf32>, vector<4x4xf32>, vector<32x4xf32> -> vector<32x4xf32>
    %292 = arith.addf %285, %291 : vector<32x4xf32>
    %293 = vector.shape_cast %292 : vector<32x4xf32> to vector<2x16x4xf32>
    %c0_298 = arith.constant 0 : index
    %c0_299 = arith.constant 0 : index
    %c0_300 = arith.constant 0 : index
    %294 = vector.load %arg9[%c0_298, %c0_299, %c0_300] : memref<2x16x4xf32, #tpu.memory_space<vmem>>, vector<2x16x4xf32>
    tpu.vector_store %arg9[%c0_298, %c0_299, %c0_300], %293 {strides = array<i32>} : memref<2x16x4xf32, #tpu.memory_space<vmem>>, vector<2x16x4xf32>,
    return
  }
  func.func @transform_0(%arg0: i32) -> (i32, i32, i32, i32) {
    %c0_i32 = arith.constant 0 : i32
    %c0_i32_0 = arith.constant 0 : i32
    %c0_i32_1 = arith.constant 0 : i32
    %c0_i32_2 = arith.constant 0 : i32
    return %arg0, %c0_i32, %c0_i32_0, %c0_i32_1 : i32, i32, i32, i32
  }
  func.func @transform_1(%arg0: i32) -> (i32, i32, i32, i32) {
    %c0_i32 = arith.constant 0 : i32
    %c0_i32_0 = arith.constant 0 : i32
    %c0_i32_1 = arith.constant 0 : i32
    %c0_i32_2 = arith.constant 0 : i32
    %c0_i32_3 = arith.constant 0 : i32
    return %c0_i32, %c0_i32_0, %c0_i32_1, %c0_i32_2 : i32, i32, i32, i32
  }
  func.func @transform_2(%arg0: i32) -> (i32, i32) {
    %c0_i32 = arith.constant 0 : i32
    %c0_i32_0 = arith.constant 0 : i32
    %c0_i32_1 = arith.constant 0 : i32
    return %c0_i32, %c0_i32_0 : i32, i32
  }
  func.func @transform_3(%arg0: i32) -> (i32, i32) {
    %c0_i32 = arith.constant 0 : i32
    %c0_i32_0 = arith.constant 0 : i32
    %c0_i32_1 = arith.constant 0 : i32
    return %c0_i32, %c0_i32_0 : i32, i32
  }
  func.func @transform_4(%arg0: i32) -> (i32, i32, i32, i32) {
    %c0_i32 = arith.constant 0 : i32
    %c0_i32_0 = arith.constant 0 : i32
    %c0_i32_1 = arith.constant 0 : i32
    %c0_i32_2 = arith.constant 0 : i32
    %c0_i32_3 = arith.constant 0 : i32
    return %c0_i32, %c0_i32_0, %c0_i32_1, %c0_i32_2 : i32, i32, i32, i32
  }
  func.func @transform_5(%arg0: i32) -> (i32, i32) {
    %c0_i32 = arith.constant 0 : i32
    %c0_i32_0 = arith.constant 0 : i32
    %c0_i32_1 = arith.constant 0 : i32
    return %c0_i32, %c0_i32_0 : i32, i32
  }
  func.func @transform_6(%arg0: i32) -> (i32, i32) {
    %c0_i32 = arith.constant 0 : i32
    %c0_i32_0 = arith.constant 0 : i32
    %c0_i32_1 = arith.constant 0 : i32
    return %c0_i32, %c0_i32_0 : i32, i32
  }
  func.func @transform_7(%arg0: i32) -> (i32, i32, i32) {
    %c0_i32 = arith.constant 0 : i32
    %c0_i32_0 = arith.constant 0 : i32
    %c0_i32_1 = arith.constant 0 : i32
    %c0_i32_2 = arith.constant 0 : i32
    return %c0_i32, %c0_i32_0, %c0_i32_1 : i32, i32, i32
  }
  func.func @transform_8(%arg0: i32) -> (i32, i32, i32) {
    %c0_i32 = arith.constant 0 : i32
    %c0_i32_0 = arith.constant 0 : i32
    %c0_i32_1 = arith.constant 0 : i32
    return %arg0, %c0_i32, %c0_i32_0 : i32, i32, i32
  }
}

</mosaic_0001>

<bundles_post_ra>
// kernel: tpu_custom_call.1
= control target key start
LH: loop header
LB: loop body
LE: loop exit
PB: predicated region body
PF: predicated region fallthrough
CT: control target
= control target key end

     0   :  { %vm589_vm0 = vcmask 1043456   ;;  %vm29_vm1 = vcmask 31744   ;;  %v7966_v2 = vmov 0.0   ;;  %vm32_vm2 = vcmask 25600   ;;  %s11530_s1 = inlined_call_operand.vmem [shape: f32[3,3,4,4], index: 1, kind: input, shape index: {}]   ;;  %s11531_s0 = inlined_call_operand.vmem [shape: f32[2,16,16,4], index: 0, kind: input, shape index: {}]   ;;  %s11532_s4 = inlined_call_operand.vmem [shape: f32[3,3,4,4], index: 4, kind: input, shape index: {}]   ;;  %s11533_s2 = inlined_call_operand.vmem [shape: f32[1,4], index: 2, kind: input, shape index: {}]   ;;  %s11534_s3 = inlined_call_operand.vmem [shape: f32[1,4], index: 3, kind: input, shape index: {}]   ;;  %s11535_s7 = inlined_call_operand.vmem [shape: f32[4,4,4], index: 7, kind: input, shape index: {}]   ;;  %s11536_s5 = inlined_call_operand.vmem [shape: f32[1,4], index: 5, kind: input, shape index: {}]   ;;  %s11537_s6 = inlined_call_operand.vmem [shape: f32[1,4], index: 6, kind: input, shape index: {}]   ;;  %s11538_s8 = inlined_call_operand.vmem [shape: f32[2,16,4], index: 8, kind: output, shape index: {}]  }
   0x1   :  { %v8015_v0 = vld [vmem:[%s11530_s1 + $0x4] sm:$0xf]  ;;  %v8020_v1 = vld [vmem:[%s11530_s1] sm:$0xf]  ;;  %79 = vst.msk [vmem:[#allocation3] sm:$0xff] %vm29_vm1, %v7966_v2  ;;  %80 = vst.msk [vmem:[#allocation3 + $0x8] sm:$0xff] %vm29_vm1, %v7966_v2 }
   0x2   :  { %30 = vst.msk [vmem:[#allocation2] sm:$0xff] %vm29_vm1, %v7966_v2  ;;  %31 = vst.msk [vmem:[#allocation2 + $0x8] sm:$0xff] %vm29_vm1, %v7966_v2  ;;  %v8233_v3 = vld [vmem:[%s11530_s1 + $0x8] sm:$0xf]  ;;  %7215 = vmatprep.subr.msk.mxu0 %vm589_vm0, %v8015_v0  ;;  %7265 = vmatprep.subr.msk.mxu1 %vm589_vm0, %v8020_v1  ;;  %v6192_v4 = vld [vmem:[%s11531_s0 + $0x10] sm:$0xff]  ;;  %vm442_vm3 = vcmask 1046528  }
   0x3   :  { %34 = vst.msk [vmem:[#allocation2 + $0x18] sm:$0xff] %vm29_vm1, %v7966_v2  ;;  %35 = vst.msk [vmem:[#allocation2 + $0x20] sm:$0xff] %vm29_vm1, %v7966_v2  ;;  %v6193_v5 = vld [vmem:[%s11531_s0 + $0x18] sm:$0xff]  ;;  %v6200_v6 = vld [vmem:[%s11531_s0 + $0x30] sm:$0xff]  ;;  %7216 = vmatpush3.msk.msra.mxu0 %vm589_vm0, %v8015_v0  ;;  %7266 = vmatpush3.msk.msra.mxu1 %vm589_vm0, %v8020_v1  ;;  %vm1110_vm4 = vcmask 1045504  }
   0x4   :  { %37 = vst.msk [vmem:[#allocation2 + $0x30] sm:$0xff] %vm29_vm1, %v7966_v2  ;;  %38 = vst.msk [vmem:[#allocation2 + $0x38] sm:$0xff] %vm29_vm1, %v7966_v2  ;;  %v6201_v7 = vld [vmem:[%s11531_s0 + $0x38] sm:$0xff]  ;;  %v6208_v8 = vld [vmem:[%s11531_s0 + $0x50] sm:$0xff]  ;;  %7315 = vmatprep.subr.msk.mxu0 %vm589_vm0, %v8233_v3 }
   0x5   :  { %40 = vst.msk [vmem:[#allocation2 + $0x48] sm:$0xff] %vm29_vm1, %v7966_v2  ;;  %41 = vst.msk [vmem:[#allocation2 + $0x50] sm:$0xff] %vm29_vm1, %v7966_v2  ;;  %v6209_v9 = vld [vmem:[%s11531_s0 + $0x58] sm:$0xff]  ;;  %v6216_v10 = vld [vmem:[%s11531_s0 + $0x70] sm:$0xff] }
   0x6   :  { %43 = vst.msk [vmem:[#allocation2 + $0x60] sm:$0xff] %vm29_vm1, %v7966_v2  ;;  %44 = vst.msk [vmem:[#allocation2 + $0x68] sm:$0xff] %vm29_vm1, %v7966_v2  ;;  %v6217_v11 = vld [vmem:[%s11531_s0 + $0x78] sm:$0xff]  ;;  %v6224_v12 = vld [vmem:[%s11531_s0 + $0x90] sm:$0xff] }
   0x7   :  { %46 = vst.msk [vmem:[#allocation2 + $0x78] sm:$0xff] %vm29_vm1, %v7966_v2  ;;  %47 = vst.msk [vmem:[#allocation2 + $0x80] sm:$0xff] %vm29_vm1, %v7966_v2  ;;  %v6225_v13 = vld [vmem:[%s11531_s0 + $0x98] sm:$0xff]  ;;  %v6232_v14 = vld [vmem:[%s11531_s0 + $0xb0] sm:$0xff] }
   0x8   :  { %49 = vst.msk [vmem:[#allocation2 + $0x90] sm:$0xff] %vm29_vm1, %v7966_v2  ;;  %50 = vst.msk [vmem:[#allocation2 + $0x98] sm:$0xff] %vm29_vm1, %v7966_v2  ;;  %v6233_v15 = vld [vmem:[%s11531_s0 + $0xb8] sm:$0xff]  ;;  %v6240_v16 = vld [vmem:[%s11531_s0 + $0xd0] sm:$0xff] }
   0x9   :  { %52 = vst.msk [vmem:[#allocation2 + $0xa8] sm:$0xff] %vm29_vm1, %v7966_v2  ;;  %53 = vst.msk [vmem:[#allocation2 + $0xb0] sm:$0xff] %vm29_vm1, %v7966_v2  ;;  %v6241_v17 = vld [vmem:[%s11531_s0 + $0xd8] sm:$0xff]  ;;  %v6194_v18 = vld [vmem:[%s11531_s0 + $0x110] sm:$0xff] }
   0xa   :  { %55 = vst.msk [vmem:[#allocation2 + $0xc0] sm:$0xff] %vm29_vm1, %v7966_v2  ;;  %56 = vst.msk [vmem:[#allocation2 + $0xc8] sm:$0xff] %vm29_vm1, %v7966_v2  ;;  %v6195_v19 = vld [vmem:[%s11531_s0 + $0x118] sm:$0xff]  ;;  %v6202_v20 = vld [vmem:[%s11531_s0 + $0x130] sm:$0xff] }
   0xb   :  { %58 = vst.msk [vmem:[#allocation2 + $0xd8] sm:$0xff] %vm29_vm1, %v7966_v2  ;;  %59 = vst.msk [vmem:[#allocation2 + $0xe0] sm:$0xff] %vm29_vm1, %v7966_v2  ;;  %v6203_v21 = vld [vmem:[%s11531_s0 + $0x138] sm:$0xff]  ;;  %v8418_v22 = vld [vmem:[#allocation3] sm:$0xff] }
   0xc   :  { %61 = vst.msk [vmem:[#allocation2 + $0xf0] sm:$0xff] %vm29_vm1, %v7966_v2  ;;  %62 = vst.msk [vmem:[#allocation2 + $0xf8] sm:$0xff] %vm29_vm1, %v7966_v2  ;;  %v8420_v23 = vld [vmem:[#allocation3 + $0x8] sm:$0xff]  ;;  %v443_v24 = vrot.slane %v8418_v22, 1  ;;  %7267 = vmatprep.mubr.msk.f32.mxu1 %vm29_vm1, %v8418_v22  ;;  %v6210_v26 = vld [vmem:[%s11531_s0 + $0x150] sm:$0xff] }
   0xd   :  { %64 = vst.msk [vmem:[#allocation2 + $0x108] sm:$0xff] %vm29_vm1, %v7966_v2  ;;  %65 = vst.msk [vmem:[#allocation2 + $0x110] sm:$0xff] %vm29_vm1, %v7966_v2  ;;  %v444_v25 = vrot.slane %v8420_v23, 1  ;;  %v6211_v27 = vld [vmem:[%s11531_s0 + $0x158] sm:$0xff]  ;;  %7268 = vmatmul.mubr.msk.f32.vlgmr.msra.gmra.mxu1 %vm29_vm1, %v8420_v23  ;;  %v6218_v62 = vld [vmem:[%s11531_s0 + $0x170] sm:$0xff] }
   0xe   :  { %67 = vst.msk [vmem:[#allocation2 + $0x120] sm:$0xff] %vm29_vm1, %v7966_v2  ;;  %68 = vst.msk [vmem:[#allocation2 + $0x128] sm:$0xff] %vm29_vm1, %v7966_v2  ;;  %v6219_v0 = vld [vmem:[%s11531_s0 + $0x178] sm:$0xff]  ;;  %v6226_v1 = vld [vmem:[%s11531_s0 + $0x190] sm:$0xff] }
   0xf   :  { %70 = vst.msk [vmem:[#allocation2 + $0x138] sm:$0xff] %vm29_vm1, %v7966_v2  ;;  %71 = vst.msk [vmem:[#allocation2 + $0x140] sm:$0xff] %vm29_vm1, %v7966_v2  ;;  %v445_v31 = vsel %vm442_vm3, %v443_v24, %v444_v25 }
  0x10   :  { %73 = vst.msk [vmem:[#allocation2 + $0x150] sm:$0xff] %vm29_vm1, %v7966_v2  ;;  %74 = vst.msk [vmem:[#allocation2 + $0x158] sm:$0xff] %vm29_vm1, %v7966_v2  ;;  %7217 = vmatprep.mubr.msk.f32.mxu0 %vm29_vm1, %v445_v31  ;;  %v6212_v31 = vld [vmem:[%s11531_s0 + $0x60] sm:$0xff] }
  0x11   :  { %76 = vst.msk [vmem:[#allocation2 + $0x168] sm:$0xff] %vm29_vm1, %v7966_v2  ;;  %77 = vst.msk [vmem:[#allocation2 + $0x170] sm:$0xff] %vm29_vm1, %v7966_v2 }
  0x12   :  { %82 = vst.msk [vmem:[#allocation3 + $0x18] sm:$0xff] %vm29_vm1, %v7966_v2  ;;  %83 = vst.msk [vmem:[#allocation3 + $0x20] sm:$0xff] %vm29_vm1, %v7966_v2 }
  0x13   :  { %85 = vst.msk [vmem:[#allocation3 + $0x30] sm:$0xff] %vm29_vm1, %v7966_v2  ;;  %86 = vst.msk [vmem:[#allocation3 + $0x38] sm:$0xff] %vm29_vm1, %v7966_v2 }
  0x14   :  { %88 = vst.msk [vmem:[#allocation3 + $0x48] sm:$0xff] %vm29_vm1, %v7966_v2  ;;  %89 = vst.msk [vmem:[#allocation3 + $0x50] sm:$0xff] %vm29_vm1, %v7966_v2 }
  0x15   :  { %91 = vst.msk [vmem:[#allocation3 + $0x60] sm:$0xff] %vm29_vm1, %v7966_v2  ;;  %92 = vst.msk [vmem:[#allocation3 + $0x68] sm:$0xff] %vm29_vm1, %v7966_v2 }
  0x16   :  { %94 = vst.msk [vmem:[#allocation3 + $0x78] sm:$0xff] %vm29_vm1, %v7966_v2  ;;  %95 = vst.msk [vmem:[#allocation3 + $0x80] sm:$0xff] %vm29_vm1, %v7966_v2 }
  0x17   :  { %97 = vst.msk [vmem:[#allocation3 + $0x90] sm:$0xff] %vm29_vm1, %v7966_v2  ;;  %98 = vst.msk [vmem:[#allocation3 + $0x98] sm:$0xff] %vm29_vm1, %v7966_v2 }
  0x18   :  { %100 = vst.msk [vmem:[#allocation3 + $0xa8] sm:$0xff] %vm29_vm1, %v7966_v2  ;;  %101 = vst.msk [vmem:[#allocation3 + $0xb0] sm:$0xff] %vm29_vm1, %v7966_v2 }
  0x19   :  { %103 = vst.msk [vmem:[#allocation3 + $0xc0] sm:$0xff] %vm29_vm1, %v7966_v2  ;;  %104 = vst.msk [vmem:[#allocation3 + $0xc8] sm:$0xff] %vm29_vm1, %v7966_v2 }
  0x1a   :  { %106 = vst.msk [vmem:[#allocation3 + $0xd8] sm:$0xff] %vm29_vm1, %v7966_v2  ;;  %107 = vst.msk [vmem:[#allocation3 + $0xe0] sm:$0xff] %vm29_vm1, %v7966_v2 }
  0x1b   :  { %109 = vst.msk [vmem:[#allocation3 + $0xf0] sm:$0xff] %vm29_vm1, %v7966_v2  ;;  %110 = vst.msk [vmem:[#allocation3 + $0xf8] sm:$0xff] %vm29_vm1, %v7966_v2 }
  0x1c   :  { %112 = vst.msk [vmem:[#allocation3 + $0x108] sm:$0xff] %vm29_vm1, %v7966_v2  ;;  %113 = vst.msk [vmem:[#allocation3 + $0x110] sm:$0xff] %vm29_vm1, %v7966_v2 }
  0x1d   :  { %115 = vst.msk [vmem:[#allocation3 + $0x120] sm:$0xff] %vm29_vm1, %v7966_v2  ;;  %116 = vst.msk [vmem:[#allocation3 + $0x128] sm:$0xff] %vm29_vm1, %v7966_v2 }
  0x1e   :  { %118 = vst.msk [vmem:[#allocation3 + $0x138] sm:$0xff] %vm29_vm1, %v7966_v2  ;;  %119 = vst.msk [vmem:[#allocation3 + $0x140] sm:$0xff] %vm29_vm1, %v7966_v2 }
  0x1f   :  { %121 = vst.msk [vmem:[#allocation3 + $0x150] sm:$0xff] %vm29_vm1, %v7966_v2  ;;  %122 = vst.msk [vmem:[#allocation3 + $0x158] sm:$0xff] %vm29_vm1, %v7966_v2 }
  0x20   :  { %124 = vst.msk [vmem:[#allocation3 + $0x168] sm:$0xff] %vm29_vm1, %v7966_v2  ;;  %125 = vst.msk [vmem:[#allocation3 + $0x170] sm:$0xff] %vm29_vm1, %v7966_v2 }
  0x21   :  { %127 = vst.msk [vmem:[#allocation3 + $0x180] sm:$0xff] %vm29_vm1, %v7966_v2  ;;  %128 = vst.msk [vmem:[#allocation3 + $0x188] sm:$0xff] %vm29_vm1, %v7966_v2 }
  0x22   :  { %130 = vst.msk [vmem:[#allocation3 + $0x198] sm:$0xff] %vm29_vm1, %v7966_v2  ;;  %131 = vst.msk [vmem:[#allocation3 + $0x1a0] sm:$0xff] %vm29_vm1, %v7966_v2 }
  0x23   :  { %3649 = vst.msk [vmem:[#allocation4] sm:$0xff] %vm29_vm1, %v7966_v2  ;;  %3650 = vst.msk [vmem:[#allocation4 + $0x8] sm:$0xff] %vm29_vm1, %v7966_v2 }
  0x24   :  { %3652 = vst.msk [vmem:[#allocation4 + $0x18] sm:$0xff] %vm29_vm1, %v7966_v2  ;;  %3653 = vst.msk [vmem:[#allocation4 + $0x20] sm:$0xff] %vm29_vm1, %v7966_v2 }
  0x25   :  { %3655 = vst.msk [vmem:[#allocation4 + $0x30] sm:$0xff] %vm29_vm1, %v7966_v2  ;;  %3656 = vst.msk [vmem:[#allocation4 + $0x38] sm:$0xff] %vm29_vm1, %v7966_v2 }
  0x26   :  { %3658 = vst.msk [vmem:[#allocation4 + $0x48] sm:$0xff] %vm29_vm1, %v7966_v2  ;;  %3659 = vst.msk [vmem:[#allocation4 + $0x50] sm:$0xff] %vm29_vm1, %v7966_v2 }
  0x27   :  { %3661 = vst.msk [vmem:[#allocation4 + $0x60] sm:$0xff] %vm29_vm1, %v7966_v2  ;;  %3662 = vst.msk [vmem:[#allocation4 + $0x68] sm:$0xff] %vm29_vm1, %v7966_v2 }
  0x28   :  { %3664 = vst.msk [vmem:[#allocation4 + $0x78] sm:$0xff] %vm29_vm1, %v7966_v2  ;;  %3665 = vst.msk [vmem:[#allocation4 + $0x80] sm:$0xff] %vm29_vm1, %v7966_v2 }
  0x29   :  { %3667 = vst.msk [vmem:[#allocation4 + $0x90] sm:$0xff] %vm29_vm1, %v7966_v2  ;;  %3668 = vst.msk [vmem:[#allocation4 + $0x98] sm:$0xff] %vm29_vm1, %v7966_v2 }
  0x2a   :  { %3670 = vst.msk [vmem:[#allocation4 + $0xa8] sm:$0xff] %vm29_vm1, %v7966_v2  ;;  %3671 = vst.msk [vmem:[#allocation4 + $0xb0] sm:$0xff] %vm29_vm1, %v7966_v2 }
  0x2b   :  { %3673 = vst.msk [vmem:[#allocation5] sm:$0xff] %vm29_vm1, %v7966_v2  ;;  %3674 = vst.msk [vmem:[#allocation5 + $0x8] sm:$0xff] %vm29_vm1, %v7966_v2 }
  0x2c   :  { %3676 = vst.msk [vmem:[#allocation5 + $0x18] sm:$0xff] %vm29_vm1, %v7966_v2  ;;  %3677 = vst.msk [vmem:[#allocation5 + $0x20] sm:$0xff] %vm29_vm1, %v7966_v2 }
  0x2d   :  { %3679 = vst.msk [vmem:[#allocation5 + $0x30] sm:$0xff] %vm29_vm1, %v7966_v2  ;;  %3680 = vst.msk [vmem:[#allocation5 + $0x38] sm:$0xff] %vm29_vm1, %v7966_v2 }
  0x2e   :  { %3682 = vst.msk [vmem:[#allocation5 + $0x48] sm:$0xff] %vm29_vm1, %v7966_v2  ;;  %3683 = vst.msk [vmem:[#allocation5 + $0x50] sm:$0xff] %vm29_vm1, %v7966_v2 }
  0x2f   :  { %3685 = vst.msk [vmem:[#allocation5 + $0x60] sm:$0xff] %vm29_vm1, %v7966_v2  ;;  %3686 = vst.msk [vmem:[#allocation5 + $0x68] sm:$0xff] %vm29_vm1, %v7966_v2 }
  0x30   :  { %3688 = vst.msk [vmem:[#allocation5 + $0x78] sm:$0xff] %vm29_vm1, %v7966_v2  ;;  %3689 = vst.msk [vmem:[#allocation5 + $0x80] sm:$0xff] %vm29_vm1, %v7966_v2 }
  0x31   :  { %3691 = vst.msk [vmem:[#allocation5 + $0x90] sm:$0xff] %vm29_vm1, %v7966_v2  ;;  %3692 = vst.msk [vmem:[#allocation5 + $0x98] sm:$0xff] %vm29_vm1, %v7966_v2 }
  0x32   :  { %3694 = vst.msk [vmem:[#allocation5 + $0xa8] sm:$0xff] %vm29_vm1, %v7966_v2  ;;  %3695 = vst.msk [vmem:[#allocation5 + $0xb0] sm:$0xff] %vm29_vm1, %v7966_v2 }
  0x33   :  { %3697 = vst.msk [vmem:[#allocation5 + $0xc0] sm:$0xff] %vm29_vm1, %v7966_v2  ;;  %3698 = vst.msk [vmem:[#allocation5 + $0xc8] sm:$0xff] %vm29_vm1, %v7966_v2 }
  0x34   :  { %3700 = vst.msk [vmem:[#allocation5 + $0xd8] sm:$0xff] %vm29_vm1, %v7966_v2  ;;  %3701 = vst.msk [vmem:[#allocation5 + $0xe0] sm:$0xff] %vm29_vm1, %v7966_v2 }
  0x35   :  { %81 = vst.msk [vmem:[#allocation3 + $0x10] sm:$0x3] %vm32_vm2, %v7966_v2  ;;  %33 = vst.msk [vmem:[#allocation2 + $0x10] sm:$0x3] %vm32_vm2, %v7966_v2 }
  0x36   :  { %36 = vst.msk [vmem:[#allocation2 + $0x28] sm:$0x3] %vm32_vm2, %v7966_v2  ;;  %39 = vst.msk [vmem:[#allocation2 + $0x40] sm:$0x3] %vm32_vm2, %v7966_v2 }
  0x37   :  { %42 = vst.msk [vmem:[#allocation2 + $0x58] sm:$0x3] %vm32_vm2, %v7966_v2  ;;  %45 = vst.msk [vmem:[#allocation2 + $0x70] sm:$0x3] %vm32_vm2, %v7966_v2 }
  0x38   :  { %48 = vst.msk [vmem:[#allocation2 + $0x88] sm:$0x3] %vm32_vm2, %v7966_v2  ;;  %51 = vst.msk [vmem:[#allocation2 + $0xa0] sm:$0x3] %vm32_vm2, %v7966_v2 }
  0x39   :  { %54 = vst.msk [vmem:[#allocation2 + $0xb8] sm:$0x3] %vm32_vm2, %v7966_v2  ;;  %57 = vst.msk [vmem:[#allocation2 + $0xd0] sm:$0x3] %vm32_vm2, %v7966_v2 }
  0x3a   :  { %60 = vst.msk [vmem:[#allocation2 + $0xe8] sm:$0x3] %vm32_vm2, %v7966_v2  ;;  %63 = vst.msk [vmem:[#allocation2 + $0x100] sm:$0x3] %vm32_vm2, %v7966_v2 }
  0x3b   :  { %66 = vst.msk [vmem:[#allocation2 + $0x118] sm:$0x3] %vm32_vm2, %v7966_v2  ;;  %69 = vst.msk [vmem:[#allocation2 + $0x130] sm:$0x3] %vm32_vm2, %v7966_v2 }
  0x3c   :  { %72 = vst.msk [vmem:[#allocation2 + $0x148] sm:$0x3] %vm32_vm2, %v7966_v2  ;;  %75 = vst.msk [vmem:[#allocation2 + $0x160] sm:$0x3] %vm32_vm2, %v7966_v2  ;;  %v8435_v28 = vld [vmem:[#allocation3 + $0x10] sm:$0x3] }
  0x3d   :  { %78 = vst.msk [vmem:[#allocation2 + $0x178] sm:$0x3] %vm32_vm2, %v7966_v2  ;;  %84 = vst.msk [vmem:[#allocation3 + $0x28] sm:$0x3] %vm32_vm2, %v7966_v2  ;;  %v446_v32 = vrot.slane %v8435_v28, 1 }
  0x3e   :  { %87 = vst.msk [vmem:[#allocation3 + $0x40] sm:$0x3] %vm32_vm2, %v7966_v2  ;;  %90 = vst.msk [vmem:[#allocation3 + $0x58] sm:$0x3] %vm32_vm2, %v7966_v2 }
  0x3f   :  { %93 = vst.msk [vmem:[#allocation3 + $0x70] sm:$0x3] %vm32_vm2, %v7966_v2  ;;  %96 = vst.msk [vmem:[#allocation3 + $0x88] sm:$0x3] %vm32_vm2, %v7966_v2  ;;  %v447_v41 = vsel %vm442_vm3, %v444_v25, %v446_v32  ;;  %v6213_v32 = vld [vmem:[%s11531_s0 + $0x68] sm:$0xff] }
  0x40   :  { %99 = vst.msk [vmem:[#allocation3 + $0xa0] sm:$0x3] %vm32_vm2, %v7966_v2  ;;  %102 = vst.msk [vmem:[#allocation3 + $0xb8] sm:$0x3] %vm32_vm2, %v7966_v2  ;;  %7218 = vmatmul.mubr.msk.f32.vlgmr.msra.gmra.mxu0 %vm29_vm1, %v447_v41  ;;  %v6221_v41 = vld [vmem:[%s11531_s0 + $0x88] sm:$0xff] }
  0x41   :  { %105 = vst.msk [vmem:[#allocation3 + $0xd0] sm:$0x3] %vm32_vm2, %v7966_v2  ;;  %108 = vst.msk [vmem:[#allocation3 + $0xe8] sm:$0x3] %vm32_vm2, %v7966_v2  ;;  %7316 = vmatpush3.msk.msra.mxu0 %vm589_vm0, %v8233_v3 }
  0x42   :  { %111 = vst.msk [vmem:[#allocation3 + $0x100] sm:$0x3] %vm32_vm2, %v7966_v2  ;;  %114 = vst.msk [vmem:[#allocation3 + $0x118] sm:$0x3] %vm32_vm2, %v7966_v2 }
  0x43   :  { %117 = vst.msk [vmem:[#allocation3 + $0x130] sm:$0x3] %vm32_vm2, %v7966_v2  ;;  %120 = vst.msk [vmem:[#allocation3 + $0x148] sm:$0x3] %vm32_vm2, %v7966_v2 }
  0x44   :  { %123 = vst.msk [vmem:[#allocation3 + $0x160] sm:$0x3] %vm32_vm2, %v7966_v2  ;;  %126 = vst.msk [vmem:[#allocation3 + $0x178] sm:$0x3] %vm32_vm2, %v7966_v2 }
  0x45   :  { %129 = vst.msk [vmem:[#allocation3 + $0x190] sm:$0x3] %vm32_vm2, %v7966_v2  ;;  %132 = vst.msk [vmem:[#allocation3 + $0x1a8] sm:$0x3] %vm32_vm2, %v7966_v2 }
  0x46   :  { %3651 = vst.msk [vmem:[#allocation4 + $0x10] sm:$0x3] %vm32_vm2, %v7966_v2  ;;  %3654 = vst.msk [vmem:[#allocation4 + $0x28] sm:$0x3] %vm32_vm2, %v7966_v2 }
  0x47   :  { %3657 = vst.msk [vmem:[#allocation4 + $0x40] sm:$0x3] %vm32_vm2, %v7966_v2  ;;  %3660 = vst.msk [vmem:[#allocation4 + $0x58] sm:$0x3] %vm32_vm2, %v7966_v2 }
  0x48   :  { %3663 = vst.msk [vmem:[#allocation4 + $0x70] sm:$0x3] %vm32_vm2, %v7966_v2  ;;  %3666 = vst.msk [vmem:[#allocation4 + $0x88] sm:$0x3] %vm32_vm2, %v7966_v2 }
  0x49   :  { %3669 = vst.msk [vmem:[#allocation4 + $0xa0] sm:$0x3] %vm32_vm2, %v7966_v2  ;;  %3672 = vst.msk [vmem:[#allocation4 + $0xb8] sm:$0x3] %vm32_vm2, %v7966_v2 }
  0x4a   :  { %3675 = vst.msk [vmem:[#allocation5 + $0x10] sm:$0x3] %vm32_vm2, %v7966_v2  ;;  %3678 = vst.msk [vmem:[#allocation5 + $0x28] sm:$0x3] %vm32_vm2, %v7966_v2 }
  0x4b   :  { %3681 = vst.msk [vmem:[#allocation5 + $0x40] sm:$0x3] %vm32_vm2, %v7966_v2  ;;  %3684 = vst.msk [vmem:[#allocation5 + $0x58] sm:$0x3] %vm32_vm2, %v7966_v2 }
  0x4c   :  { %3687 = vst.msk [vmem:[#allocation5 + $0x70] sm:$0x3] %vm32_vm2, %v7966_v2  ;;  %3690 = vst.msk [vmem:[#allocation5 + $0x88] sm:$0x3] %vm32_vm2, %v7966_v2 }
  0x4d   :  { %3693 = vst.msk [vmem:[#allocation5 + $0xa0] sm:$0x3] %vm32_vm2, %v7966_v2  ;;  %3696 = vst.msk [vmem:[#allocation5 + $0xb8] sm:$0x3] %vm32_vm2, %v7966_v2 }
  0x4e   :  { %3699 = vst.msk [vmem:[#allocation5 + $0xd0] sm:$0x3] %vm32_vm2, %v7966_v2  ;;  %3702 = vst.msk [vmem:[#allocation5 + $0xe8] sm:$0x3] %vm32_vm2, %v7966_v2 }
  0x4f   :  { %147 = vst.msk [vmem:[#allocation3 + $0x19] sm:$0xff] %vm29_vm1, %v6192_v4  ;;  %167 = vst.msk [vmem:[#allocation3 + $0x31] sm:$0xff] %vm29_vm1, %v6200_v6  ;;  %v6227_v6 = vld [vmem:[%s11531_s0 + $0x198] sm:$0xff] }
  0x50   :  { %148 = vst.msk [vmem:[#allocation3 + $0x21] sm:$0xff] %vm29_vm1, %v6193_v5  ;;  %168 = vst.msk [vmem:[#allocation3 + $0x39] sm:$0xff] %vm29_vm1, %v6201_v7  ;;  %v6234_v7 = vld [vmem:[%s11531_s0 + $0x1b0] sm:$0xff] }
  0x51   :  { %187 = vst.msk [vmem:[#allocation3 + $0x49] sm:$0xff] %vm29_vm1, %v6208_v8  ;;  %188 = vst.msk [vmem:[#allocation3 + $0x51] sm:$0xff] %vm29_vm1, %v6209_v9  ;;  %v6235_v8 = vld [vmem:[%s11531_s0 + $0x1b8] sm:$0xff] }
  0x52   :  { %207 = vst.msk [vmem:[#allocation3 + $0x61] sm:$0xff] %vm29_vm1, %v6216_v10  ;;  %208 = vst.msk [vmem:[#allocation3 + $0x69] sm:$0xff] %vm29_vm1, %v6217_v11 }
  0x53   :  { %227 = vst.msk [vmem:[#allocation3 + $0x79] sm:$0xff] %vm29_vm1, %v6224_v12  ;;  %228 = vst.msk [vmem:[#allocation3 + $0x81] sm:$0xff] %vm29_vm1, %v6225_v13  ;;  %v6242_v12 = vld [vmem:[%s11531_s0 + $0x1d0] sm:$0xff]  ;;  %v6243_v13 = vld [vmem:[%s11531_s0 + $0x1d8] sm:$0xff] }
  0x54   :  { %247 = vst.msk [vmem:[#allocation3 + $0x91] sm:$0xff] %vm29_vm1, %v6232_v14  ;;  %248 = vst.msk [vmem:[#allocation3 + $0x99] sm:$0xff] %vm29_vm1, %v6233_v15  ;;  %v6353_v14 = vld [vmem:[%s11530_s1 + $0xc] sm:$0xf]  ;;  %v8580_v15 = vld [vmem:[%s11530_s1 + $0x10] sm:$0xf] }
  0x55   :  { %267 = vst.msk [vmem:[#allocation3 + $0xa9] sm:$0xff] %vm29_vm1, %v6240_v16  ;;  %268 = vst.msk [vmem:[#allocation3 + $0xb1] sm:$0xff] %vm29_vm1, %v6241_v17  ;;  %7365 = vmatprep.subr.msk.mxu1 %vm589_vm0, %v6353_v14  ;;  %v133_v16 = vld [vmem:[%s11531_s0] sm:$0xff]  ;;  %v134_v17 = vld [vmem:[%s11531_s0 + $0x8] sm:$0xff]  ;;  %7415 = vmatprep.subr.msk.mxu0 %vm589_vm0, %v8580_v15 }
  0x56   :  { %149 = vst.msk [vmem:[#allocation3 + $0xf1] sm:$0xff] %vm29_vm1, %v6194_v18  ;;  %150 = vst.msk [vmem:[#allocation3 + $0xf9] sm:$0xff] %vm29_vm1, %v6195_v19  ;;  %v8439_v29 = vld [vmem:[#allocation3 + $0x18] sm:$0xff]  ;;  %v8441_v30 = vld [vmem:[#allocation3 + $0x30] sm:$0xff]  ;;  %7366 = vmatpush3.msk.msra.mxu1 %vm589_vm0, %v6353_v14 }
  0x57   :  { %169 = vst.msk [vmem:[#allocation3 + $0x109] sm:$0xff] %vm29_vm1, %v6202_v20  ;;  %170 = vst.msk [vmem:[#allocation3 + $0x111] sm:$0xff] %vm29_vm1, %v6203_v21  ;;  %v8447_v33 = vld [vmem:[#allocation3 + $0x20] sm:$0xff]  ;;  %v448_v34 = vrot.slane %v8439_v29, 1  ;;  %7270 = vmatprep.mubr.msk.f32.mxu1 %vm29_vm1, %v8439_v29  ;;  %v8452_v35 = vld [vmem:[#allocation3 + $0x28] sm:$0x3] }
  0x58   :  { %189 = vst.msk [vmem:[#allocation3 + $0x121] sm:$0xff] %vm29_vm1, %v6210_v26  ;;  %190 = vst.msk [vmem:[#allocation3 + $0x129] sm:$0xff] %vm29_vm1, %v6211_v27  ;;  %v449_v36 = vrot.slane %v8447_v33, 1  ;;  %v451_v37 = vrot.slane %v8452_v35, 1  ;;  %v8457_v38 = vld [vmem:[#allocation3 + $0x38] sm:$0xff]  ;;  %v453_v39 = vrot.slane %v8441_v30, 1  ;;  %7271 = vmatmul.mubr.msk.f32.gmra.mxu1 %vm29_vm1, %v8447_v33 }
  0x59   :  { %v8460_v40 = vld [vmem:[#allocation3 + $0x40] sm:$0x3]  ;;  %v454_v42 = vrot.slane %v8457_v38, 1  ;;  %v8464_v43 = vld [vmem:[#allocation3 + $0x48] sm:$0xff]  ;;  %v8466_v44 = vld [vmem:[#allocation3 + $0x50] sm:$0xff]  ;;  %7273 = vmatprep.mubr.msk.f32.mxu1 %vm29_vm1, %v8441_v30  ;;  %209 = vst.msk [vmem:[#allocation3 + $0x139] sm:$0xff] %vm29_vm1, %v6218_v62 }
  0x5a   :  { %v8470_v45 = vsel %vm442_vm3, %v448_v34, %v449_v36  ;;  %v8479_v46 = vsel %vm442_vm3, %v449_v36, %v451_v37  ;;  %v456_v47 = vrot.slane %v8460_v40, 1  ;;  %v458_v49 = vrot.slane %v8464_v43, 1  ;;  %v8489_v51 = vld [vmem:[#allocation3 + $0x58] sm:$0x3]  ;;  %v8491_v52 = vld [vmem:[#allocation3 + $0x60] sm:$0xff]  ;;  %v8493_v53 = vld [vmem:[#allocation3 + $0x68] sm:$0xff] }
  0x5b   :  { %7220 = vmatprep.mubr.msk.f32.mxu0 %vm29_vm1, %v8470_v45  ;;  %v8483_v48 = vsel %vm442_vm3, %v453_v39, %v454_v42  ;;  %v459_v50 = vrot.slane %v8466_v44, 1  ;;  %v461_v55 = vrot.slane %v8489_v51, 1  ;;  %v463_v57 = vrot.slane %v8491_v52, 1  ;;  %v8512_v59 = vld [vmem:[#allocation3 + $0x70] sm:$0x3]  ;;  %v8514_v60 = vld [vmem:[#allocation3 + $0x78] sm:$0xff] }
  0x5c   :  { %7221 = vmatmul.mubr.msk.f32.gmra.mxu0 %vm29_vm1, %v8479_v46  ;;  %7274 = vmatmul.mubr.msk.f32.gmra.mxu1 %vm29_vm1, %v8457_v38  ;;  %v8502_v54 = vsel %vm442_vm3, %v454_v42, %v456_v47  ;;  %v464_v58 = vrot.slane %v8493_v53, 1  ;;  %v8516_v61 = vld [vmem:[#allocation3 + $0x80] sm:$0xff]  ;;  %v8525_v63 = vld [vmem:[#allocation3 + $0x88] sm:$0x3]  ;;  %v466_v3 = vrot.slane %v8512_v59, 1  ;;  %v8542_v4 = vld [vmem:[#allocation3 + $0x90] sm:$0xff] }
  0x5d   :  { %7223 = vmatprep.mubr.msk.f32.mxu0 %vm29_vm1, %v8483_v48  ;;  %7276 = vmatprep.mubr.msk.f32.mxu1 %vm29_vm1, %v8464_v43  ;;  %v8508_v56 = vsel %vm442_vm3, %v458_v49, %v459_v50  ;;  %v8537_v2 = vsel %vm442_vm3, %v459_v50, %v461_v55  ;;  %v8544_v5 = vld [vmem:[#allocation3 + $0x98] sm:$0xff]  ;;  %210 = vst.msk [vmem:[#allocation3 + $0x141] sm:$0xff] %vm29_vm1, %v6219_v0  ;;  %229 = vst.msk [vmem:[#allocation3 + $0x151] sm:$0xff] %vm29_vm1, %v6226_v1  ;;  %v468_v10 = vrot.slane %v8514_v60, 1  ;;  %v8592_v18 = vld [vmem:[#allocation3 + $0xa0] sm:$0x3] }
  0x5e   :  { %11601 = vst [vmem:[#allocation6_spill] sm:$0xff] %v8508_v56  ;;  %11602 = vst [vmem:[#allocation7_spill] sm:$0xff] %v8537_v2  ;;  %v8558_v9 = vsel %vm442_vm3, %v463_v57, %v464_v58  ;;  %v469_v11 = vrot.slane %v8516_v61, 1  ;;  %v6196_v19 = vld [vmem:[%s11531_s0 + $0x20] sm:$0xff]  ;;  %v6197_v20 = vld [vmem:[%s11531_s0 + $0x28] sm:$0xff]  ;;  %v8608_v24 = vsel %vm442_vm3, %v464_v58, %v466_v3  ;;  %v471_v25 = vrot.slane %v8525_v63, 1 }
  0x5f   :  { %11603 = vst [vmem:[#allocation8_spill] sm:$0xff] %v8558_v9  ;;  %230 = vst.msk [vmem:[#allocation3 + $0x159] sm:$0xff] %vm29_vm1, %v6227_v6  ;;  %v6204_v21 = vld [vmem:[%s11531_s0 + $0x40] sm:$0xff]  ;;  %v8613_v26 = vld [vmem:[#allocation3 + $0xa8] sm:$0xff]  ;;  %v473_v36 = vrot.slane %v8542_v4, 1  ;;  %v474_v37 = vrot.slane %v8544_v5, 1 }
  0x60   :  { %7224 = vmatmul.mubr.msk.f32.gmra.mxu0 %vm29_vm1, %v8502_v54  ;;  %7277 = vmatmul.mubr.msk.f32.gmra.mxu1 %vm29_vm1, %v8466_v44  ;;  %249 = vst.msk [vmem:[#allocation3 + $0x169] sm:$0xff] %vm29_vm1, %v6234_v7  ;;  %250 = vst.msk [vmem:[#allocation3 + $0x171] sm:$0xff] %vm29_vm1, %v6235_v8  ;;  %v6205_v27 = vld [vmem:[%s11531_s0 + $0x48] sm:$0xff]  ;;  %v8628_v34 = vsel %vm442_vm3, %v468_v10, %v469_v11  ;;  %v6220_v39 = vld [vmem:[%s11531_s0 + $0x80] sm:$0xff]  ;;  %v8667_v55 = vsel %vm442_vm3, %v469_v11, %v471_v25  ;;  %v476_v57 = vrot.slane %v8592_v18, 1 }
  0x61   :  { %7226 = vmatprep.mubr.msk.f32.mxu0 %vm29_vm1, %v8508_v56  ;;  %7279 = vmatprep.mubr.msk.f32.mxu1 %vm29_vm1, %v8491_v52  ;;  %269 = vst.msk [vmem:[#allocation3 + $0x181] sm:$0xff] %vm29_vm1, %v6242_v12  ;;  %270 = vst.msk [vmem:[#allocation3 + $0x189] sm:$0xff] %vm29_vm1, %v6243_v13  ;;  %v6228_v42 = vld [vmem:[%s11531_s0 + $0xa0] sm:$0xff]  ;;  %v8647_v47 = vld [vmem:[#allocation3 + $0xb0] sm:$0xff]  ;;  %v8673_v58 = vsel %vm442_vm3, %v473_v36, %v474_v37  ;;  %v478_v62 = vrot.slane %v8613_v26, 1 }
  0x62   :  { %137 = vst.msk [vmem:[#allocation2 + $0x1] sm:$0xff] %vm29_vm1, %v133_v16  ;;  %138 = vst.msk [vmem:[#allocation2 + $0x9] sm:$0xff] %vm29_vm1, %v134_v17  ;;  %v6229_v49 = vld [vmem:[%s11531_s0 + $0xa8] sm:$0xff]  ;;  %v6236_v50 = vld [vmem:[%s11531_s0 + $0xc0] sm:$0xff]  ;;  %v479_v0 = vrot.slane %v8647_v47, 1  ;;  %v8690_v7 = vsel %vm442_vm3, %v474_v37, %v476_v57 }
  0x63   :  { %11604 = vst [vmem:[#allocation9_spill] sm:$0xff] %v8608_v24  ;;  %157 = vst.msk [vmem:[#allocation2 + $0x19] sm:$0xff] %vm29_vm1, %v6196_v19  ;;  %v8677_v1 = vld [vmem:[#allocation3 + $0xb8] sm:$0x3]  ;;  %v8681_v6 = vld [vmem:[#allocation3 + $0xe0] sm:$0xff] }
  0x64   :  { %7227 = vmatmul.mubr.msk.f32.gmra.mxu0 %vm29_vm1, %v8537_v2  ;;  %7280 = vmatmul.mubr.msk.f32.gmra.mxu1 %vm29_vm1, %v8493_v53  ;;  %158 = vst.msk [vmem:[#allocation2 + $0x21] sm:$0xff] %vm29_vm1, %v6197_v20  ;;  %177 = vst.msk [vmem:[#allocation2 + $0x31] sm:$0xff] %vm29_vm1, %v6204_v21  ;;  %v8679_v3 = vld [vmem:[#allocation3 + $0xd8] sm:$0xff]  ;;  %v481_v8 = vrot.slane %v8677_v1, 1  ;;  %v8696_v10 = vsel %vm442_vm3, %v478_v62, %v479_v0  ;;  %v484_v12 = vrot.slane %v8681_v6, 1  ;;  %v8702_v14 = vld [vmem:[#allocation3 + $0xf0] sm:$0xff] }
  0x65   :  { %7229 = vmatprep.mubr.msk.f32.mxu0 %vm29_vm1, %v8558_v9  ;;  %7282 = vmatprep.mubr.msk.f32.mxu1 %vm29_vm1, %v8514_v60  ;;  %11605 = vst [vmem:[#allocation10_spill] sm:$0xff] %v8628_v34  ;;  %178 = vst.msk [vmem:[#allocation2 + $0x39] sm:$0xff] %vm29_vm1, %v6205_v27  ;;  %v483_v11 = vrot.slane %v8679_v3, 1  ;;  %v8700_v13 = vld [vmem:[#allocation3 + $0xe8] sm:$0x3]  ;;  %v8704_v16 = vld [vmem:[#allocation3 + $0xf8] sm:$0xff] }
  0x66   :  { %197 = vst.msk [vmem:[#allocation2 + $0x49] sm:$0xff] %vm29_vm1, %v6212_v31  ;;  %198 = vst.msk [vmem:[#allocation2 + $0x51] sm:$0xff] %vm29_vm1, %v6213_v32  ;;  %v6237_v17 = vld [vmem:[%s11531_s0 + $0xc8] sm:$0xff]  ;;  %v8716_v19 = vsel %vm442_vm3, %v479_v0, %v481_v8  ;;  %v486_v20 = vrot.slane %v8700_v13, 1  ;;  %v8721_v21 = vld [vmem:[#allocation3 + $0x100] sm:$0x3] }
  0x67   :  { %217 = vst.msk [vmem:[#allocation2 + $0x61] sm:$0xff] %vm29_vm1, %v6220_v39  ;;  %218 = vst.msk [vmem:[#allocation2 + $0x69] sm:$0xff] %vm29_vm1, %v6221_v41  ;;  %v6244_v25 = vld [vmem:[%s11531_s0 + $0xe0] sm:$0xff]  ;;  %v6245_v27 = vld [vmem:[%s11531_s0 + $0xe8] sm:$0xff]  ;;  %v485_v31 = vsel %vm442_vm3, %v483_v11, %v484_v12  ;;  %v488_v32 = vrot.slane %v8702_v14, 1  ;;  %v489_v36 = vrot.slane %v8704_v16, 1 }
  0x68   :  { %237 = vst.msk [vmem:[#allocation2 + $0x79] sm:$0xff] %vm29_vm1, %v6228_v42  ;;  %7230 = vmatmul.mubr.msk.f32.gmra.mxu0 %vm29_vm1, %v8608_v24  ;;  %7283 = vmatmul.mubr.msk.f32.gmra.mxu1 %vm29_vm1, %v8516_v61  ;;  %238 = vst.msk [vmem:[#allocation2 + $0x81] sm:$0xff] %vm29_vm1, %v6229_v49  ;;  %v8733_v37 = vld [vmem:[#allocation3 + $0x108] sm:$0xff]  ;;  %v135_v39 = vld [vmem:[%s11531_s0 + $0x100] sm:$0xff]  ;;  %v487_v11 = vsel %vm442_vm3, %v484_v12, %v486_v20 }
  0x69   :  { %257 = vst.msk [vmem:[#allocation2 + $0x91] sm:$0xff] %vm29_vm1, %v6236_v50  ;;  %7232 = vmatprep.mubr.msk.f32.mxu0 %vm29_vm1, %v8628_v34  ;;  %11606 = vst [vmem:[#allocation11_spill] sm:$0xff] %v8667_v55  ;;  %7285 = vmatprep.mubr.msk.f32.mxu1 %vm29_vm1, %v8542_v4  ;;  %v136_v41 = vld [vmem:[%s11531_s0 + $0x108] sm:$0xff]  ;;  %v8743_v42 = vld [vmem:[#allocation3 + $0x110] sm:$0xff]  ;;  %v8788_v20 = vsel %vm442_vm3, %v488_v32, %v489_v36 }
  0x6a   :  { %11607 = vst [vmem:[#allocation12_spill] sm:$0xff] %v8673_v58  ;;  %11608 = vst [vmem:[#allocation13_spill] sm:$0xff] %v8690_v7  ;;  %v6198_v49 = vld [vmem:[%s11531_s0 + $0x120] sm:$0xff]  ;;  %v6199_v50 = vld [vmem:[%s11531_s0 + $0x128] sm:$0xff] }
  0x6b   :  { %11609 = vst [vmem:[#allocation14_spill] sm:$0xff] %v8696_v10  ;;  %11610 = vst [vmem:[#allocation15_spill] sm:$0xff] %v8716_v19  ;;  %v8757_v57 = vld [vmem:[#allocation3 + $0x118] sm:$0x3]  ;;  %v6206_v62 = vld [vmem:[%s11531_s0 + $0x140] sm:$0xff] }
  0x6c   :  { %7233 = vmatmul.mubr.msk.f32.gmra.mxu0 %vm29_vm1, %v8667_v55  ;;  %7286 = vmatmul.mubr.msk.f32.gmra.mxu1 %vm29_vm1, %v8544_v5  ;;  %258 = vst.msk [vmem:[#allocation2 + $0x99] sm:$0xff] %vm29_vm1, %v6237_v17  ;;  %277 = vst.msk [vmem:[#allocation2 + $0xa9] sm:$0xff] %vm29_vm1, %v6244_v25  ;;  %v6207_v0 = vld [vmem:[%s11531_s0 + $0x148] sm:$0xff]  ;;  %v6214_v8 = vld [vmem:[%s11531_s0 + $0x160] sm:$0xff]  ;;  %v491_v17 = vrot.slane %v8721_v21, 1 }
  0x6d   :  { %7235 = vmatprep.mubr.msk.f32.mxu0 %vm29_vm1, %v8673_v58  ;;  %7288 = vmatprep.mubr.msk.f32.mxu1 %vm29_vm1, %v8613_v26  ;;  %278 = vst.msk [vmem:[#allocation2 + $0xb1] sm:$0xff] %vm29_vm1, %v6245_v27  ;;  %139 = vst.msk [vmem:[#allocation2 + $0xc1] sm:$0xff] %vm29_vm1, %v135_v39  ;;  %v6215_v25 = vld [vmem:[%s11531_s0 + $0x168] sm:$0xff]  ;;  %v6222_v27 = vld [vmem:[%s11531_s0 + $0x180] sm:$0xff]  ;;  %v494_v39 = vrot.slane %v8743_v42, 1 }
  0x6e   :  { %140 = vst.msk [vmem:[#allocation2 + $0xc9] sm:$0xff] %vm29_vm1, %v136_v41  ;;  %159 = vst.msk [vmem:[#allocation2 + $0xd9] sm:$0xff] %vm29_vm1, %v6198_v49  ;;  %v6223_v12 = vld [vmem:[%s11531_s0 + $0x188] sm:$0xff]  ;;  %v8792_v41 = vld [vmem:[#allocation3 + $0x120] sm:$0xff] }
  0x6f   :  { %160 = vst.msk [vmem:[#allocation2 + $0xe1] sm:$0xff] %vm29_vm1, %v6199_v50  ;;  %179 = vst.msk [vmem:[#allocation2 + $0xf1] sm:$0xff] %vm29_vm1, %v6206_v62  ;;  %v6230_v49 = vld [vmem:[%s11531_s0 + $0x1a0] sm:$0xff]  ;;  %v6231_v32 = vld [vmem:[%s11531_s0 + $0x1a8] sm:$0xff]  ;;  %v1151_v62 = vrot.slane %v8679_v3, 2 }
  0x70   :  { %7236 = vmatmul.mubr.msk.f32.gmra.mxu0 %vm29_vm1, %v8690_v7  ;;  %7289 = vmatmul.mubr.msk.f32.gmra.mxu1 %vm29_vm1, %v8647_v47  ;;  %180 = vst.msk [vmem:[#allocation2 + $0xf9] sm:$0xff] %vm29_vm1, %v6207_v0  ;;  %199 = vst.msk [vmem:[#allocation2 + $0x109] sm:$0xff] %vm29_vm1, %v6214_v8  ;;  %v8803_v50 = vld [vmem:[#allocation3 + $0x128] sm:$0xff]  ;;  %v6238_v0 = vld [vmem:[%s11531_s0 + $0x1c0] sm:$0xff] }
  0x71   :  { %7238 = vmatprep.mubr.msk.f32.mxu0 %vm29_vm1, %v8696_v10  ;;  %7291 = vmatprep.mubr.msk.f32.mxu1 %vm29_vm1, %v8679_v3  ;;  %11611 = vst [vmem:[#allocation16_spill] sm:$0xff] %v8788_v20  ;;  %200 = vst.msk [vmem:[#allocation2 + $0x111] sm:$0xff] %vm29_vm1, %v6215_v25  ;;  %v6239_v8 = vld [vmem:[%s11531_s0 + $0x1c8] sm:$0xff]  ;;  %v1152_v25 = vrot.slane %v8681_v6, 2  ;;  %v1154_v3 = vrot.slane %v8700_v13, 2  ;;  %v496_v13 = vrot.slane %v8757_v57, 1 }
  0x72   :  { %219 = vst.msk [vmem:[#allocation2 + $0x121] sm:$0xff] %vm29_vm1, %v6222_v27  ;;  %220 = vst.msk [vmem:[#allocation2 + $0x129] sm:$0xff] %vm29_vm1, %v6223_v12  ;;  %v6246_v27 = vld [vmem:[%s11531_s0 + $0x1e0] sm:$0xff]  ;;  %v8827_v12 = vld [vmem:[%s11530_s1 + $0x14] sm:$0xf] }
  0x73   :  { %239 = vst.msk [vmem:[#allocation2 + $0x139] sm:$0xff] %vm29_vm1, %v6230_v49  ;;  %240 = vst.msk [vmem:[#allocation2 + $0x141] sm:$0xff] %vm29_vm1, %v6231_v32  ;;  %v498_v32 = vrot.slane %v8792_v41, 1  ;;  %7465 = vmatprep.subr.msk.mxu1 %vm589_vm0, %v8827_v12  ;;  %v8901_v7 = vld [vmem:[#allocation3 + $0x160] sm:$0x3]  ;;  %v8903_v58 = vld [vmem:[#allocation3 + $0x168] sm:$0xff] }
  0x74   :  { %7239 = vmatmul.mubr.msk.f32.gmra.mxu0 %vm29_vm1, %v8716_v19  ;;  %7292 = vmatmul.mubr.msk.f32.gmra.mxu1 %vm29_vm1, %v8681_v6  ;;  %259 = vst.msk [vmem:[#allocation2 + $0x151] sm:$0xff] %vm29_vm1, %v6238_v0  ;;  %260 = vst.msk [vmem:[#allocation2 + $0x159] sm:$0xff] %vm29_vm1, %v6239_v8  ;;  %v8832_v6 = vsel %vm442_vm3, %v489_v36, %v491_v17  ;;  %v499_v0 = vrot.slane %v8803_v50, 1  ;;  %v8846_v36 = vld [vmem:[#allocation3 + $0x130] sm:$0x3]  ;;  %v8851_v17 = vld [vmem:[#allocation3 + $0x138] sm:$0xff] }
  0x75   :  { %7241 = vmatprep.mubr.msk.f32.mxu0 %vm29_vm1, %v485_v31  ;;  %7294 = vmatprep.mubr.msk.f32.mxu1 %vm29_vm1, %v8702_v14  ;;  %v493_v31 = vrot.slane %v8733_v37, 1  ;;  %11612 = vst [vmem:[#allocation17_spill] sm:$0xff] %v8832_v6  ;;  %279 = vst.msk [vmem:[#allocation2 + $0x169] sm:$0xff] %vm29_vm1, %v6246_v27  ;;  %v8853_v8 = vld [vmem:[#allocation3 + $0x140] sm:$0xff]  ;;  %v8856_v27 = vsel %vm1110_vm4, %v1151_v62, %v1152_v25  ;;  %v501_v62 = vrot.slane %v8846_v36, 1  ;;  %v8880_v19 = vld [vmem:[#allocation3 + $0x150] sm:$0xff] }
  0x76   :  { %v508_v10 = vrot.slane %v8880_v19, 1  ;;  %v513_v55 = vrot.slane %v8903_v58, 1  ;;  %v8924_v34 = vld [vmem:[#allocation3 + $0x178] sm:$0x3]  ;;  %v8926_v24 = vld [vmem:[#allocation3 + $0x180] sm:$0xff] }
  0x77   :  { %v8842_v49 = vsel %vm442_vm3, %v493_v31, %v494_v39  ;;  %v8859_v31 = vsel %vm1110_vm4, %v1152_v25, %v1154_v3  ;;  %v8874_v25 = vsel %vm442_vm3, %v498_v32, %v499_v0  ;;  %v503_v3 = vrot.slane %v8851_v17, 1  ;;  %v8947_v2 = vld [vmem:[#allocation3 + $0x190] sm:$0x3]  ;;  %v8966_v56 = vld [vmem:[#allocation2] sm:$0xff] }
  0x78   :  { %7242 = vmatmul.mubr.msk.f32.gmra.mxu0 %vm29_vm1, %v487_v11  ;;  %7295 = vmatmul.mubr.msk.f32.gmra.mxu1 %vm29_vm1, %v8704_v16  ;;  %v6247_v11 = vld [vmem:[%s11531_s0 + $0x1e8] sm:$0xff]  ;;  %11613 = vst [vmem:[#allocation18_spill] sm:$0xff] %v8842_v49  ;;  %11615 = vst [vmem:[#allocation20_spill] sm:$0xff] %v8874_v25  ;;  %v518_v9 = vrot.slane %v8926_v24, 1 }
  0x79   :  { %7244 = vmatprep.mubr.msk.f32.mxu0 %vm29_vm1, %v8788_v20  ;;  %7297 = vmatprep.mubr.msk.f32.mxu1 %vm29_vm1, %v8733_v37  ;;  %280 = vst.msk [vmem:[#allocation2 + $0x171] sm:$0xff] %vm29_vm1, %v6247_v11  ;;  %v8868_v11 = vsel %vm442_vm3, %v494_v39, %v496_v13  ;;  %v8878_v20 = vld [vmem:[#allocation3 + $0x148] sm:$0x3]  ;;  %v8891_v39 = vsel %vm442_vm3, %v499_v0, %v501_v62  ;;  %v511_v62 = vrot.slane %v8901_v7, 1 }
  0x7a   :  { %11614 = vst [vmem:[#allocation19_spill] sm:$0xff] %v8868_v11  ;;  %11616 = vst [vmem:[#allocation21_spill] sm:$0xff] %v8891_v39  ;;  %v506_v13 = vrot.slane %v8878_v20, 1 }
  0x7c   :  { %7245 = vmatmul.mubr.msk.f32.gmra.mxu0 %vm29_vm1, %v8832_v6  ;;  %7298 = vmatmul.mubr.msk.f32.gmra.mxu1 %vm29_vm1, %v8743_v42  ;;  %v504_v6 = vrot.slane %v8853_v8, 1 }
  0x7d   :  { %7247 = vmatprep.mubr.msk.f32.mxu0 %vm29_vm1, %v8842_v49  ;;  %7300 = vmatprep.mubr.msk.f32.mxu1 %vm29_vm1, %v8792_v41  ;;  %v8882_v49 = vld [vmem:[#allocation3 + $0x158] sm:$0xff] }
  0x7e   :  { %v8897_v32 = vsel %vm442_vm3, %v503_v3, %v504_v6  ;;  %v8914_v0 = vsel %vm442_vm3, %v504_v6, %v506_v13  ;;  %v516_v6 = vrot.slane %v8924_v34, 1 }
  0x7f   :  { %11617 = vst [vmem:[#allocation22_spill] sm:$0xff] %v8897_v32  ;;  %11618 = vst [vmem:[#allocation23_spill] sm:$0xff] %v8914_v0 }
  0x80   :  { %7248 = vmatmul.mubr.msk.f32.gmra.mxu0 %vm29_vm1, %v8868_v11  ;;  %7301 = vmatmul.mubr.msk.f32.gmra.mxu1 %vm29_vm1, %v8803_v50  ;;  %v509_v11 = vrot.slane %v8882_v49, 1 }
  0x81   :  { %7250 = vmatprep.mubr.msk.f32.mxu0 %vm29_vm1, %v8874_v25  ;;  %7303 = vmatprep.mubr.msk.f32.mxu1 %vm29_vm1, %v8851_v17  ;;  %v8905_v25 = vld [vmem:[#allocation3 + $0x170] sm:$0xff] }
  0x82   :  { %v8920_v3 = vsel %vm442_vm3, %v508_v10, %v509_v11  ;;  %v8937_v10 = vsel %vm442_vm3, %v509_v11, %v511_v62 }
  0x83   :  { %11619 = vst [vmem:[#allocation24_spill] sm:$0xff] %v8920_v3  ;;  %11620 = vst [vmem:[#allocation25_spill] sm:$0xff] %v8937_v10 }
  0x84   :  { %7251 = vmatmul.mubr.msk.f32.gmra.mxu0 %vm29_vm1, %v8891_v39  ;;  %7304 = vmatmul.mubr.msk.f32.gmra.mxu1 %vm29_vm1, %v8853_v8  ;;  %v514_v39 = vrot.slane %v8905_v25, 1 }
  0x85   :  { %7253 = vmatprep.mubr.msk.f32.mxu0 %vm29_vm1, %v8897_v32  ;;  %7306 = vmatprep.mubr.msk.f32.mxu1 %vm29_vm1, %v8880_v19  ;;  %v8928_v32 = vld [vmem:[#allocation3 + $0x188] sm:$0xff] }
  0x86   :  { %v8943_v13 = vsel %vm442_vm3, %v513_v55, %v514_v39  ;;  %v8956_v11 = vsel %vm442_vm3, %v514_v39, %v516_v6  ;;  %v521_v55 = vrot.slane %v8947_v2, 1  ;;  %v1114_v39 = vrot.slane %v8435_v28, 2  ;;  %v8994_v28 = vld [vmem:[%s11530_s1 + $0x1c] sm:$0xf] }
  0x87   :  { %11621 = vst [vmem:[#allocation26_spill] sm:$0xff] %v8943_v13  ;;  %11622 = vst [vmem:[#allocation27_spill] sm:$0xff] %v8956_v11  ;;  %v1116_v6 = vrot.slane %v8439_v29, 2  ;;  %v1119_v29 = vrot.slane %v8452_v35, 2  ;;  %v9015_v35 = vld [vmem:[%s11530_s1 + $0x18] sm:$0xf] }
  0x88   :  { %7254 = vmatmul.mubr.msk.f32.gmra.mxu0 %vm29_vm1, %v8914_v0  ;;  %7307 = vmatmul.mubr.msk.f32.gmra.mxu1 %vm29_vm1, %v8882_v49  ;;  %v519_v0 = vrot.slane %v8928_v32, 1 }
  0x89   :  { %7256 = vmatprep.mubr.msk.f32.mxu0 %vm29_vm1, %v8920_v3  ;;  %7309 = vmatprep.mubr.msk.f32.mxu1 %vm29_vm1, %v8903_v58  ;;  %v1111_v3 = vrot.slane %v8418_v22, 2  ;;  %v8980_v22 = vld [vmem:[#allocation2 + $0x8] sm:$0xff] }
  0x8a   :  { %v8962_v62 = vsel %vm442_vm3, %v518_v9, %v519_v0  ;;  %v8976_v9 = vsel %vm442_vm3, %v519_v0, %v521_v55  ;;  %v1121_v55 = vrot.slane %v8441_v30, 2 }
  0x8b   :  { %11623 = vst [vmem:[#allocation28_spill] sm:$0xff] %v8976_v9 }
  0x8c   :  { %7257 = vmatmul.mubr.msk.f32.gmra.mxu0 %vm29_vm1, %v8937_v10  ;;  %7310 = vmatmul.mubr.msk.f32.gmra.mxu1 %vm29_vm1, %v8905_v25  ;;  %v1112_v10 = vrot.slane %v8420_v23, 2 }
  0x8d   :  { %7259 = vmatprep.mubr.msk.f32.mxu0 %vm29_vm1, %v8943_v13  ;;  %7312 = vmatprep.mubr.msk.f32.mxu1 %vm29_vm1, %v8926_v24  ;;  %v8985_v13 = vld [vmem:[#allocation2 + $0x18] sm:$0xff] }
  0x8e   :  { %v1113_v23 = vsel %vm1110_vm4, %v1111_v3, %v1112_v10  ;;  %v1115_v0 = vsel %vm1110_vm4, %v1112_v10, %v1114_v39  ;;  %v1126_v39 = vrot.slane %v8464_v43, 2  ;;  %v1129_v43 = vrot.slane %v8489_v51, 2 }
  0x90   :  { %7260 = vmatmul.mubr.msk.f32.gmra.mxu0 %vm29_vm1, %v8956_v11  ;;  %7313 = vmatmul.mubr.msk.f32.gmra.mxu1 %vm29_vm1, %v8928_v32  ;;  %v1117_v11 = vrot.slane %v8447_v33, 2  ;;  %v9001_v33 = vld [vmem:[#allocation2 + $0x20] sm:$0xff] }
  0x91   :  { %7262 = vmatprep.mubr.msk.f32.mxu0 %vm29_vm1, %v8962_v62  ;;  %7367 = vmatprep.mubr.msk.f32.mxu1 %vm29_vm1, %v8966_v56 }
  0x92   :  { %v9004_v3 = vsel %vm1110_vm4, %v1116_v6, %v1117_v11  ;;  %v9027_v30 = vsel %vm1110_vm4, %v1117_v11, %v1119_v29  ;;  %v9039_v6 = vld [vmem:[#allocation2 + $0x48] sm:$0xff]  ;;  %v1132_v29 = vrot.slane %v8493_v53, 2 }
  0x94   :  { %7263 = vmatmul.mubr.msk.f32.gmra.mxu0 %vm29_vm1, %v8976_v9  ;;  %7368 = vmatmul.mubr.msk.f32.vlgmr.msra.gmra.mxu1 %vm29_vm1, %v8980_v22  ;;  %v1122_v9 = vrot.slane %v8457_v38, 2  ;;  %v1124_v38 = vrot.slane %v8460_v40, 2 }
  0x95   :  { %7317 = vmatprep.mubr.msk.f32.mxu0 %vm29_vm1, %v1113_v23  ;;  %7370 = vmatprep.mubr.msk.f32.mxu1 %vm29_vm1, %v8985_v13  ;;  %v9010_v23 = vld [vmem:[#allocation2 + $0x30] sm:$0xff] }
  0x96   :  { %7466 = vmatpush3.msk.msra.mxu1 %vm589_vm0, %v8827_v12  ;;  %v9030_v12 = vld [vmem:[#allocation2 + $0x38] sm:$0xff]  ;;  %v9033_v10 = vsel %vm1110_vm4, %v1121_v55, %v1122_v9  ;;  %v9050_v40 = vsel %vm1110_vm4, %v1122_v9, %v1124_v38  ;;  %v9062_v55 = vld [vmem:[#allocation2 + $0x60] sm:$0xff]  ;;  %v1134_v9 = vrot.slane %v8512_v59, 2  ;;  %v1136_v38 = vrot.slane %v8514_v60, 2 }
  0x97   :  { %7565 = vmatprep.subr.msk.mxu1 %vm589_vm0, %v8994_v28  ;;  %11624 = vst [vmem:[#allocation29_spill] sm:$0xff] %v9050_v40  ;;  %v9097_v60 = vld [vmem:[#allocation2 + $0x80] sm:$0xff] }
  0x98   :  { %7318 = vmatmul.mubr.msk.f32.vlgmr.msra.gmra.mxu0 %vm29_vm1, %v1115_v0  ;;  %7371 = vmatmul.mubr.msk.f32.gmra.mxu1 %vm29_vm1, %v9001_v33  ;;  %v1131_v0 = vrot.slane %v8491_v52, 2  ;;  %v9076_v52 = vld [vmem:[#allocation2 + $0x68] sm:$0xff]  ;;  %v9092_v59 = vsel %vm1110_vm4, %v1132_v29, %v1134_v9  ;;  %v6249_v9 = vld [vmem:[%s11531_s0 + $0xf8] sm:$0xff] }
  0x99   :  { %7416 = vmatpush3.msk.msra.mxu0 %vm589_vm0, %v8580_v15  ;;  %7320 = vmatprep.mubr.msk.f32.mxu0 %vm29_vm1, %v9004_v3  ;;  %v1127_v15 = vrot.slane %v8466_v44, 2  ;;  %v9055_v44 = vld [vmem:[#allocation2 + $0x50] sm:$0xff]  ;;  %288 = vst.msk [vmem:[#allocation3 + $0xc9] sm:$0xff] %vm29_vm1, %v6249_v9  ;;  %v9152_v9 = vld [vmem:[#allocation2 + $0xc0] sm:$0xff] }
  0x9a   :  { %7373 = vmatprep.mubr.msk.f32.mxu1 %vm29_vm1, %v9010_v23  ;;  %7515 = vmatprep.subr.msk.mxu0 %vm589_vm0, %v9015_v35  ;;  %v9079_v53 = vsel %vm1110_vm4, %v1131_v0, %v1132_v29  ;;  %v1142_v0 = vrot.slane %v8544_v5, 2  ;;  %v1144_v29 = vrot.slane %v8592_v18, 2  ;;  %v6248_v5 = vld [vmem:[%s11531_s0 + $0xf0] sm:$0xff]  ;;  %v1147_v18 = vrot.slane %v8647_v47, 2 }
  0x9b   :  { %v9058_v11 = vsel %vm1110_vm4, %v1126_v39, %v1127_v15  ;;  %v9071_v51 = vsel %vm1110_vm4, %v1127_v15, %v1129_v43  ;;  %v1137_v39 = vrot.slane %v8516_v61, 2  ;;  %v1139_v15 = vrot.slane %v8525_v63, 2  ;;  %287 = vst.msk [vmem:[#allocation3 + $0xc1] sm:$0xff] %vm29_vm1, %v6248_v5  ;;  %v9147_v47 = vld [vmem:[#allocation2 + $0xb0] sm:$0xff] }
  0x9c   :  { %7321 = vmatmul.mubr.msk.f32.gmra.mxu0 %vm29_vm1, %v9027_v30  ;;  %7374 = vmatmul.mubr.msk.f32.gmra.mxu1 %vm29_vm1, %v9030_v12  ;;  %11625 = vst [vmem:[#allocation30_spill] sm:$0xff] %v9071_v51  ;;  %v1141_v43 = vrot.slane %v8542_v4, 2  ;;  %v9118_v4 = vld [vmem:[#allocation2 + $0x98] sm:$0xff] }
  0x9d   :  { %7323 = vmatprep.mubr.msk.f32.mxu0 %vm29_vm1, %v9033_v10  ;;  %7376 = vmatprep.mubr.msk.f32.mxu1 %vm29_vm1, %v9039_v6  ;;  %v9100_v61 = vsel %vm1110_vm4, %v1136_v38, %v1137_v39  ;;  %v9113_v63 = vsel %vm1110_vm4, %v1137_v39, %v1139_v15  ;;  %v1146_v39 = vrot.slane %v8613_v26, 2  ;;  %v9131_v15 = vld [vmem:[#allocation2 + $0xa8] sm:$0xff]  ;;  %v1149_v26 = vrot.slane %v8677_v1, 2 }
  0x9e   :  { %11626 = vst [vmem:[#allocation31_spill] sm:$0xff] %v9100_v61  ;;  %11627 = vst [vmem:[#allocation32_spill] sm:$0xff] %v9113_v63  ;;  %v9127_v38 = vsel %vm1110_vm4, %v1141_v43, %v1142_v0  ;;  %v9142_v43 = vsel %vm1110_vm4, %v1142_v0, %v1144_v29  ;;  %v9165_v0 = vld [vmem:[#allocation2 + $0xc8] sm:$0xff]  ;;  %v1156_v29 = vrot.slane %v8702_v14, 2 }
  0x9f   :  { %11628 = vst [vmem:[#allocation33_spill] sm:$0xff] %v9127_v38  ;;  %11629 = vst [vmem:[#allocation34_spill] sm:$0xff] %v9142_v43  ;;  %v9150_v5 = vsel %vm1110_vm4, %v1146_v39, %v1147_v18  ;;  %v9161_v1 = vsel %vm1110_vm4, %v1147_v18, %v1149_v26  ;;  %v1157_v39 = vrot.slane %v8704_v16, 2  ;;  %v1159_v18 = vrot.slane %v8721_v21, 2  ;;  %v9180_v26 = vld [vmem:[#allocation2 + $0xe0] sm:$0xff] }
  0xa0   :  { %7324 = vmatmul.mubr.msk.f32.gmra.mxu0 %vm29_vm1, %v9050_v40  ;;  %7377 = vmatmul.mubr.msk.f32.gmra.mxu1 %vm29_vm1, %v9055_v44  ;;  %v9083_v40 = vld [vmem:[#allocation2 + $0x78] sm:$0xff]  ;;  %11630 = vst [vmem:[#allocation35_spill] sm:$0xff] %v9150_v5  ;;  %11631 = vst [vmem:[#allocation36_spill] sm:$0xff] %v9161_v1  ;;  %v1161_v16 = vrot.slane %v8733_v37, 2 }
  0xa1   :  { %7326 = vmatprep.mubr.msk.f32.mxu0 %vm29_vm1, %v9058_v11  ;;  %7379 = vmatprep.mubr.msk.f32.mxu1 %vm29_vm1, %v9062_v55  ;;  %v9183_v14 = vsel %vm1110_vm4, %v1156_v29, %v1157_v39  ;;  %v9196_v21 = vsel %vm1110_vm4, %v1157_v39, %v1159_v18  ;;  %v9201_v37 = vld [vmem:[#allocation2 + $0xf8] sm:$0xff]  ;;  %v1167_v29 = vrot.slane %v8803_v50, 2  ;;  %v1169_v39 = vrot.slane %v8846_v36, 2 }
  0xa2   :  { %11632 = vst [vmem:[#allocation37_spill] sm:$0xff] %v9183_v14  ;;  %11633 = vst [vmem:[#allocation38_spill] sm:$0xff] %v9196_v21  ;;  %v1171_v18 = vrot.slane %v8851_v17, 2  ;;  %v9243_v17 = vld [vmem:[#allocation2 + $0x128] sm:$0xff] }
  0xa3   :  { %v9238_v36 = vsel %vm1110_vm4, %v1167_v29, %v1169_v39  ;;  %v1181_v39 = vrot.slane %v8903_v58, 2  ;;  %v1184_v58 = vrot.slane %v8924_v34, 2  ;;  %v1187_v34 = vrot.slane %v8928_v32, 2 }
  0xa4   :  { %7327 = vmatmul.mubr.msk.f32.gmra.mxu0 %vm29_vm1, %v9071_v51  ;;  %7380 = vmatmul.mubr.msk.f32.gmra.mxu1 %vm29_vm1, %v9076_v52  ;;  %v9104_v51 = vld [vmem:[#allocation2 + $0x90] sm:$0xff]  ;;  %11637 = vst [vmem:[#allocation42_spill] sm:$0xff] %v9238_v36 }
  0xa5   :  { %7329 = vmatprep.mubr.msk.f32.mxu0 %vm29_vm1, %v9079_v53  ;;  %7382 = vmatprep.mubr.msk.f32.mxu1 %vm29_vm1, %v9083_v40 }
  0xa8   :  { %7330 = vmatmul.mubr.msk.f32.gmra.mxu0 %vm29_vm1, %v9092_v59  ;;  %7383 = vmatmul.mubr.msk.f32.gmra.mxu1 %vm29_vm1, %v9097_v60 }
  0xa9   :  { %7332 = vmatprep.mubr.msk.f32.mxu0 %vm29_vm1, %v9100_v61  ;;  %7385 = vmatprep.mubr.msk.f32.mxu1 %vm29_vm1, %v9104_v51  ;;  %v2307_v61 = vrot.slane %v9010_v23, 2 }
  0xac   :  { %7333 = vmatmul.mubr.msk.f32.gmra.mxu0 %vm29_vm1, %v9113_v63  ;;  %7386 = vmatmul.mubr.msk.f32.gmra.mxu1 %vm29_vm1, %v9118_v4 }
  0xad   :  { %7335 = vmatprep.mubr.msk.f32.mxu0 %vm29_vm1, %v9127_v38  ;;  %7388 = vmatprep.mubr.msk.f32.mxu1 %vm29_vm1, %v9131_v15  ;;  %v9169_v38 = vld [vmem:[#allocation2 + $0xd8] sm:$0xff] }
  0xb0   :  { %7336 = vmatmul.mubr.msk.f32.gmra.mxu0 %vm29_vm1, %v9142_v43  ;;  %7389 = vmatmul.mubr.msk.f32.gmra.mxu1 %vm29_vm1, %v9147_v47  ;;  %v9208_v43 = vld [vmem:[#allocation2 + $0x108] sm:$0xff] }
  0xb1   :  { %7338 = vmatprep.mubr.msk.f32.mxu0 %vm29_vm1, %v9150_v5  ;;  %7391 = vmatprep.mubr.msk.f32.mxu1 %vm29_vm1, %v9152_v9  ;;  %v9187_v5 = vld [vmem:[#allocation2 + $0xf0] sm:$0xff] }
  0xb4   :  { %7339 = vmatmul.mubr.msk.f32.gmra.mxu0 %vm29_vm1, %v9161_v1  ;;  %7392 = vmatmul.mubr.msk.f32.gmra.mxu1 %vm29_vm1, %v9165_v0  ;;  %v1162_v1 = vrot.slane %v8743_v42, 2 }
  0xb5   :  { %7341 = vmatprep.mubr.msk.f32.mxu0 %vm29_vm1, %v8856_v27  ;;  %7394 = vmatprep.mubr.msk.f32.mxu1 %vm29_vm1, %v9169_v38  ;;  %v1164_v27 = vrot.slane %v8757_v57, 2 }
  0xb6   :  { %v9204_v42 = vsel %vm1110_vm4, %v1161_v16, %v1162_v1  ;;  %v1172_v16 = vrot.slane %v8853_v8, 2 }
  0xb7   :  { %11634 = vst [vmem:[#allocation39_spill] sm:$0xff] %v9204_v42  ;;  %v9217_v57 = vsel %vm1110_vm4, %v1162_v1, %v1164_v27  ;;  %v1174_v1 = vrot.slane %v8878_v20, 2  ;;  %v1176_v27 = vrot.slane %v8880_v19, 2  ;;  %v9264_v19 = vld [vmem:[#allocation2 + $0x140] sm:$0xff] }
  0xb8   :  { %7342 = vmatmul.mubr.msk.f32.gmra.mxu0 %vm29_vm1, %v8859_v31  ;;  %7395 = vmatmul.mubr.msk.f32.gmra.mxu1 %vm29_vm1, %v9180_v26  ;;  %v1166_v31 = vrot.slane %v8792_v41, 2  ;;  %11635 = vst [vmem:[#allocation40_spill] sm:$0xff] %v9217_v57  ;;  %v9222_v41 = vld [vmem:[#allocation2 + $0x110] sm:$0xff]  ;;  %v9246_v8 = vsel %vm1110_vm4, %v1171_v18, %v1172_v16  ;;  %v1182_v18 = vrot.slane %v8905_v25, 2  ;;  %v9286_v25 = vld [vmem:[#allocation2 + $0x158] sm:$0xff] }
  0xb9   :  { %7344 = vmatprep.mubr.msk.f32.mxu0 %vm29_vm1, %v9183_v14  ;;  %7397 = vmatprep.mubr.msk.f32.mxu1 %vm29_vm1, %v9187_v5  ;;  %11638 = vst [vmem:[#allocation43_spill] sm:$0xff] %v9246_v8  ;;  %v9259_v20 = vsel %vm1110_vm4, %v1172_v16, %v1174_v1  ;;  %v6250_v1 = vld [vmem:[%s11531_s0 + $0x1f0] sm:$0xff] }
  0xba   :  { %v9225_v50 = vsel %vm1110_vm4, %v1166_v31, %v1167_v29  ;;  %v1177_v31 = vrot.slane %v8882_v49, 2  ;;  %11639 = vst [vmem:[#allocation44_spill] sm:$0xff] %v9259_v20  ;;  %v1179_v29 = vrot.slane %v8901_v7, 2  ;;  %v2297_v7 = vrot.slane %v8966_v56, 2  ;;  %289 = vst.msk [vmem:[#allocation3 + $0x199] sm:$0xff] %vm29_vm1, %v6250_v1 }
  0xbb   :  { %11636 = vst [vmem:[#allocation41_spill] sm:$0xff] %v9225_v50  ;;  %v9313_v32 = vsel %vm1110_vm4, %v1182_v18, %v1184_v58  ;;  %v1189_v1 = vrot.slane %v8947_v2, 2  ;;  %v296_v2 = vld [vmem:[#allocation2 + $0x28] sm:$0x3] }
  0xbc   :  { %7345 = vmatmul.mubr.msk.f32.gmra.mxu0 %vm29_vm1, %v9196_v21  ;;  %7398 = vmatmul.mubr.msk.f32.gmra.mxu1 %vm29_vm1, %v9201_v37  ;;  %v9229_v21 = vld [vmem:[#allocation2 + $0x120] sm:$0xff]  ;;  %v9267_v49 = vsel %vm1110_vm4, %v1176_v27, %v1177_v31  ;;  %v9281_v16 = vsel %vm1110_vm4, %v1177_v31, %v1179_v29  ;;  %v6251_v27 = vld [vmem:[%s11531_s0 + $0x1f8] sm:$0xff]  ;;  %v1186_v31 = vrot.slane %v8926_v24, 2  ;;  %v9299_v29 = vld [vmem:[#allocation2 + $0x168] sm:$0xff]  ;;  %v2302_v24 = vrot.slane %v8985_v13, 2  ;;  %11643 = vst [vmem:[#allocation48_spill] sm:$0xff] %v9313_v32 }
  0xbd   :  { %7347 = vmatprep.mubr.msk.f32.mxu0 %vm29_vm1, %v9204_v42  ;;  %7400 = vmatprep.mubr.msk.f32.mxu1 %vm29_vm1, %v9208_v43  ;;  %11640 = vst [vmem:[#allocation45_spill] sm:$0xff] %v9267_v49  ;;  %11641 = vst [vmem:[#allocation46_spill] sm:$0xff] %v9281_v16  ;;  %v1892_v42 = vrot.slane %v8980_v22, 1 }
  0xbe   :  { %290 = vst.msk [vmem:[#allocation3 + $0x1a1] sm:$0xff] %vm29_vm1, %v6251_v27 }
  0xc0   :  { %7348 = vmatmul.mubr.msk.f32.gmra.mxu0 %vm29_vm1, %v9217_v57  ;;  %7401 = vmatmul.mubr.msk.f32.gmra.mxu1 %vm29_vm1, %v9222_v41  ;;  %v9250_v57 = vld [vmem:[#allocation2 + $0x138] sm:$0xff] }
  0xc1   :  { %7350 = vmatprep.mubr.msk.f32.mxu0 %vm29_vm1, %v9225_v50  ;;  %7403 = vmatprep.mubr.msk.f32.mxu1 %vm29_vm1, %v9229_v21  ;;  %v9322_v50 = vsel %vm1110_vm4, %v1186_v31, %v1187_v34  ;;  %v2305_v31 = vrot.slane %v296_v2, 2 }
  0xc2   :  { %11644 = vst [vmem:[#allocation49_spill] sm:$0xff] %v9322_v50 }
  0xc4   :  { %7351 = vmatmul.mubr.msk.f32.gmra.mxu0 %vm29_vm1, %v9238_v36  ;;  %7404 = vmatmul.mubr.msk.f32.gmra.mxu1 %vm29_vm1, %v9243_v17  ;;  %v9271_v36 = vld [vmem:[#allocation2 + $0x150] sm:$0xff] }
  0xc5   :  { %7353 = vmatprep.mubr.msk.f32.mxu0 %vm29_vm1, %v9246_v8  ;;  %7406 = vmatprep.mubr.msk.f32.mxu1 %vm29_vm1, %v9250_v57  ;;  %v1891_v8 = vrot.slane %v8966_v56, 1  ;;  %v9318_v56 = vld [vmem:[#allocation2 + $0x170] sm:$0xff] }
  0xc7   :  { %v1893_v14 = vsel %vm442_vm3, %v1891_v8, %v1892_v42 }
  0xc8   :  { %7354 = vmatmul.mubr.msk.f32.gmra.mxu0 %vm29_vm1, %v9259_v20  ;;  %7407 = vmatmul.mubr.msk.f32.gmra.mxu1 %vm29_vm1, %v9264_v19  ;;  %v2298_v20 = vrot.slane %v8980_v22, 2 }
  0xc9   :  { %7356 = vmatprep.mubr.msk.f32.mxu0 %vm29_vm1, %v9267_v49  ;;  %7409 = vmatprep.mubr.msk.f32.mxu1 %vm29_vm1, %v9271_v36  ;;  %v9295_v49 = vsel %vm1110_vm4, %v1181_v39, %v1182_v18  ;;  %v293_v39 = vld [vmem:[#allocation2 + $0x10] sm:$0x3]  ;;  %v9333_v18 = vsel %vm1110_vm4, %v1187_v34, %v1189_v1  ;;  %v1901_v34 = vrot.slane %v9010_v23, 1  ;;  %v2312_v23 = vrot.slane %v9039_v6, 2 }
  0xca   :  { %11642 = vst [vmem:[#allocation47_spill] sm:$0xff] %v9295_v49  ;;  %v2300_v27 = vrot.slane %v293_v39, 2  ;;  %v1894_v58 = vrot.slane %v293_v39, 1  ;;  %v1902_v39 = vrot.slane %v9030_v12, 1 }
  0xcc   :  { %7357 = vmatmul.mubr.msk.f32.gmra.mxu0 %vm29_vm1, %v9281_v16  ;;  %7410 = vmatmul.mubr.msk.f32.gmra.mxu1 %vm29_vm1, %v9286_v25  ;;  %v2303_v16 = vrot.slane %v9001_v33, 2  ;;  %v2301_v22 = vsel %vm1110_vm4, %v2298_v20, %v2300_v27 }
  0xcd   :  { %7359 = vmatprep.mubr.msk.f32.mxu0 %vm29_vm1, %v9295_v49  ;;  %7412 = vmatprep.mubr.msk.f32.mxu1 %vm29_vm1, %v9299_v29  ;;  %v2299_v49 = vsel %vm1110_vm4, %v2297_v7, %v2298_v20  ;;  %v1896_v7 = vrot.slane %v8985_v13, 1  ;;  %v299_v20 = vld [vmem:[#allocation2 + $0x40] sm:$0x3]  ;;  %v1895_v13 = vsel %vm442_vm3, %v1892_v42, %v1894_v58  ;;  %v1906_v42 = vrot.slane %v9039_v6, 1 }
  0xce   :  { %v2304_v63 = vsel %vm1110_vm4, %v2302_v24, %v2303_v16  ;;  %v2306_v8 = vsel %vm1110_vm4, %v2303_v16, %v2305_v31  ;;  %v2313_v24 = vrot.slane %v9055_v44, 2  ;;  %v302_v16 = vld [vmem:[#allocation2 + $0x58] sm:$0x3]  ;;  %v2317_v6 = vrot.slane %v9062_v55, 2 }
  0xcf   :  { %v1903_v58 = vsel %vm442_vm3, %v1901_v34, %v1902_v39 }
  0xd0   :  { %7360 = vmatmul.mubr.msk.f32.gmra.mxu0 %vm29_vm1, %v9313_v32  ;;  %7413 = vmatmul.mubr.msk.f32.gmra.mxu1 %vm29_vm1, %v9318_v56  ;;  %v1897_v32 = vrot.slane %v9001_v33, 1  ;;  %v1899_v33 = vrot.slane %v296_v2, 1  ;;  %v2315_v2 = vrot.slane %v302_v16, 2 }
  0xd1   :  { %7362 = vmatprep.mubr.msk.f32.mxu0 %vm29_vm1, %v9322_v50  ;;  %7467 = vmatprep.mubr.msk.f32.mxu1 %vm29_vm1, %v2299_v49  ;;  %v2308_v50 = vrot.slane %v9030_v12, 2  ;;  %v2310_v49 = vrot.slane %v299_v20, 2  ;;  %v1907_v12 = vrot.slane %v9055_v44, 1  ;;  %v2318_v44 = vrot.slane %v9076_v52, 2 }
  0xd2   :  { %v1898_v1 = vsel %vm442_vm3, %v1896_v7, %v1897_v32  ;;  %v1909_v7 = vrot.slane %v302_v16, 1  ;;  %v2316_v34 = vsel %vm1110_vm4, %v2313_v24, %v2315_v2 }
  0xd3   :  { %v2311_v27 = vsel %vm1110_vm4, %v2308_v50, %v2310_v49  ;;  %v1917_v49 = vrot.slane %v9097_v60, 1 }
  0xd4   :  { %7363 = vmatmul.mubr.msk.f32.gmra.mxu0 %vm29_vm1, %v9333_v18  ;;  %7468 = vmatmul.mubr.msk.f32.vlgmr.msra.gmra.mxu1 %vm29_vm1, %v2301_v22  ;;  %v2314_v22 = vsel %vm1110_vm4, %v2312_v23, %v2313_v24  ;;  %v1910_v23 = vsel %vm442_vm3, %v1907_v12, %v1909_v7 }
  0xd5   :  { %7417 = vmatprep.mubr.msk.f32.mxu0 %vm29_vm1, %v1893_v14  ;;  %7470 = vmatprep.mubr.msk.f32.mxu1 %vm29_vm1, %v2304_v63  ;;  %v2309_v14 = vsel %vm1110_vm4, %v2307_v61, %v2308_v50  ;;  %v9361_v63 = vld [vmem:[%s11530_s1 + $0x20] sm:$0xf]  ;;  %v1904_v61 = vrot.slane %v299_v20, 1  ;;  %v305_v50 = vld [vmem:[#allocation2 + $0x70] sm:$0x3] }
  0xd6   :  { %7566 = vmatpush3.msk.msra.mxu1 %vm589_vm0, %v8994_v28  ;;  %v1900_v28 = vsel %vm442_vm3, %v1897_v32, %v1899_v33  ;;  %v1912_v32 = vrot.slane %v9076_v52, 1  ;;  %v2320_v20 = vrot.slane %v305_v50, 2  ;;  %v1908_v52 = vsel %vm442_vm3, %v1906_v42, %v1907_v12  ;;  %v311_v12 = vld [vmem:[#allocation2 + $0xa0] sm:$0x3] }
  0xd7   :  { %v1905_v31 = vsel %vm442_vm3, %v1902_v39, %v1904_v61  ;;  %v2319_v33 = vsel %vm1110_vm4, %v2317_v6, %v2318_v44  ;;  %v308_v39 = vld [vmem:[#allocation2 + $0x88] sm:$0x3]  ;;  %v1914_v24 = vrot.slane %v305_v50, 1  ;;  %v2327_v42 = vrot.slane %v9104_v51, 2 }
  0xd8   :  { %7418 = vmatmul.mubr.msk.f32.vlgmr.msra.gmra.mxu0 %vm29_vm1, %v1895_v13  ;;  %7471 = vmatmul.mubr.msk.f32.gmra.mxu1 %vm29_vm1, %v2306_v8  ;;  %v2322_v13 = vrot.slane %v9083_v40, 2  ;;  %v1916_v8 = vrot.slane %v9083_v40, 1  ;;  %v2328_v40 = vrot.slane %v9118_v4, 2  ;;  %v1922_v61 = vrot.slane %v9118_v4, 1 }
  0xd9   :  { %7516 = vmatpush3.msk.msra.mxu0 %vm589_vm0, %v9015_v35  ;;  %7420 = vmatprep.mubr.msk.f32.mxu0 %vm29_vm1, %v1898_v1  ;;  %v1911_v35 = vrot.slane %v9062_v55, 1  ;;  %v2323_v55 = vrot.slane %v9097_v60, 2  ;;  %v2321_v1 = vsel %vm1110_vm4, %v2318_v44, %v2320_v20  ;;  %v1919_v2 = vrot.slane %v308_v39, 1 }
  0xda   :  { %7473 = vmatprep.mubr.msk.f32.mxu1 %vm29_vm1, %v2309_v14  ;;  %7615 = vmatprep.subr.msk.mxu0 %vm589_vm0, %v9361_v63  ;;  %v2325_v14 = vrot.slane %v308_v39, 2  ;;  %v2330_v44 = vrot.slane %v311_v12, 2  ;;  %v1918_v4 = vsel %vm442_vm3, %v1916_v8, %v1917_v49  ;;  %v1927_v50 = vrot.slane %v9147_v47, 1  ;;  %v317_v8 = vld [vmem:[#allocation2 + $0xd0] sm:$0x3] }
  0xdb   :  { %v1913_v60 = vsel %vm442_vm3, %v1911_v35, %v1912_v32  ;;  %v2324_v16 = vsel %vm1110_vm4, %v2322_v13, %v2323_v55  ;;  %v1926_v35 = vrot.slane %v9131_v15, 1  ;;  %v1924_v7 = vrot.slane %v311_v12, 1 }
  0xdc   :  { %7421 = vmatmul.mubr.msk.f32.gmra.mxu0 %vm29_vm1, %v1900_v28  ;;  %7474 = vmatmul.mubr.msk.f32.gmra.mxu1 %vm29_vm1, %v2311_v27  ;;  %v1921_v28 = vrot.slane %v9104_v51, 1  ;;  %v1915_v27 = vsel %vm442_vm3, %v1912_v32, %v1914_v24  ;;  %v2326_v6 = vsel %vm1110_vm4, %v2323_v55, %v2325_v14  ;;  %v2333_v51 = vrot.slane %v9147_v47, 2  ;;  %v314_v32 = vld [vmem:[#allocation2 + $0xb8] sm:$0x3] }
  0xdd   :  { %7423 = vmatprep.mubr.msk.f32.mxu0 %vm29_vm1, %v1903_v58  ;;  %7476 = vmatprep.mubr.msk.f32.mxu1 %vm29_vm1, %v2314_v22  ;;  %v2332_v58 = vrot.slane %v9131_v15, 2  ;;  %v2329_v22 = vsel %vm1110_vm4, %v2327_v42, %v2328_v40  ;;  %v2335_v20 = vrot.slane %v314_v32, 2  ;;  %v2337_v13 = vrot.slane %v9152_v9, 2 }
  0xde   :  { %v2338_v15 = vrot.slane %v9165_v0, 2  ;;  %v1923_v47 = vsel %vm442_vm3, %v1921_v28, %v1922_v61  ;;  %v1929_v39 = vrot.slane %v314_v32, 1  ;;  %v2340_v24 = vrot.slane %v317_v8, 2 }
  0xdf   :  { %v2334_v55 = vsel %vm1110_vm4, %v2332_v58, %v2333_v51  ;;  %v1936_v42 = vrot.slane %v9169_v38, 1  ;;  %v1934_v28 = vrot.slane %v317_v8, 1  ;;  %v323_v58 = vld [vmem:[#allocation2 + $0x100] sm:$0x3]  ;;  %v1952_v8 = vrot.slane %v9243_v17, 1 }
  0xe0   :  { %7424 = vmatmul.mubr.msk.f32.gmra.mxu0 %vm29_vm1, %v1905_v31  ;;  %7477 = vmatmul.mubr.msk.f32.gmra.mxu1 %vm29_vm1, %v2316_v34  ;;  %v1920_v31 = vsel %vm442_vm3, %v1917_v49, %v1919_v2  ;;  %v2331_v34 = vsel %vm1110_vm4, %v2328_v40, %v2330_v44  ;;  %v1925_v49 = vsel %vm442_vm3, %v1922_v61, %v1924_v7  ;;  %v1937_v40 = vrot.slane %v9180_v26, 1 }
  0xe1   :  { %7426 = vmatprep.mubr.msk.f32.mxu0 %vm29_vm1, %v1908_v52  ;;  %7479 = vmatprep.mubr.msk.f32.mxu1 %vm29_vm1, %v2319_v33  ;;  %v1931_v52 = vrot.slane %v9152_v9, 1  ;;  %v1932_v33 = vrot.slane %v9165_v0, 1  ;;  %v2343_v9 = vrot.slane %v9180_v26, 2  ;;  %v1928_v0 = vsel %vm442_vm3, %v1926_v35, %v1927_v50 }
  0xe2   :  { %v2339_v14 = vsel %vm1110_vm4, %v2337_v13, %v2338_v15  ;;  %v2341_v61 = vsel %vm1110_vm4, %v2338_v15, %v2340_v24  ;;  %v1942_v44 = vrot.slane %v9201_v37, 1  ;;  %v2350_v35 = vrot.slane %v323_v58, 2 }
  0xe3   :  { %v1933_v26 = vsel %vm442_vm3, %v1931_v52, %v1932_v33  ;;  %v1947_v7 = vrot.slane %v9222_v41, 1  ;;  %v1944_v13 = vrot.slane %v323_v58, 1 }
  0xe4   :  { %7427 = vmatmul.mubr.msk.f32.gmra.mxu0 %vm29_vm1, %v1910_v23  ;;  %7480 = vmatmul.mubr.msk.f32.gmra.mxu1 %vm29_vm1, %v2321_v1  ;;  %v2336_v23 = vsel %vm1110_vm4, %v2333_v51, %v2335_v20  ;;  %v2342_v1 = vrot.slane %v9169_v38, 2  ;;  %v2348_v38 = vrot.slane %v9201_v37, 2  ;;  %v1935_v51 = vsel %vm442_vm3, %v1932_v33, %v1934_v28 }
  0xe5   :  { %7429 = vmatprep.mubr.msk.f32.mxu0 %vm29_vm1, %v1913_v60  ;;  %7482 = vmatprep.mubr.msk.f32.mxu1 %vm29_vm1, %v2324_v16  ;;  %v320_v60 = vld [vmem:[#allocation2 + $0xe8] sm:$0x3]  ;;  %v1930_v16 = vsel %vm442_vm3, %v1927_v50, %v1929_v39  ;;  %v2352_v50 = vrot.slane %v9208_v43, 2  ;;  %v1938_v37 = vsel %vm442_vm3, %v1936_v42, %v1937_v40  ;;  %v1951_v33 = vrot.slane %v9229_v21, 1 }
  0xe6   :  { %v2345_v12 = vrot.slane %v320_v60, 2  ;;  %v2344_v2 = vsel %vm1110_vm4, %v2342_v1, %v2343_v9  ;;  %v2351_v15 = vsel %vm1110_vm4, %v2348_v38, %v2350_v35  ;;  %v1945_v39 = vsel %vm442_vm3, %v1942_v44, %v1944_v13  ;;  %v338_v35 = vld [vmem:[#allocation2 + $0x178] sm:$0x3] }
  0xe7   :  { %v1957_v42 = vrot.slane %v9264_v19, 1 }
  0xe8   :  { %7430 = vmatmul.mubr.msk.f32.gmra.mxu0 %vm29_vm1, %v1915_v27  ;;  %7483 = vmatmul.mubr.msk.f32.gmra.mxu1 %vm29_vm1, %v2326_v6  ;;  %v2347_v27 = vrot.slane %v9187_v5, 2  ;;  %v1941_v6 = vrot.slane %v9187_v5, 1  ;;  %v2353_v5 = vrot.slane %v9222_v41, 2 }
  0xe9   :  { %7432 = vmatprep.mubr.msk.f32.mxu0 %vm29_vm1, %v1918_v4  ;;  %7485 = vmatprep.mubr.msk.f32.mxu1 %vm29_vm1, %v2329_v22  ;;  %v1939_v4 = vrot.slane %v320_v60, 1  ;;  %v2346_v22 = vsel %vm1110_vm4, %v2343_v9, %v2345_v12  ;;  %v2362_v9 = vrot.slane %v9250_v57, 2  ;;  %v2367_v12 = vrot.slane %v9271_v36, 2 }
  0xea   :  { %v2349_v32 = vsel %vm1110_vm4, %v2347_v27, %v2348_v38  ;;  %v1943_v41 = vsel %vm442_vm3, %v1941_v6, %v1942_v44  ;;  %v2354_v52 = vsel %vm1110_vm4, %v2352_v50, %v2353_v5  ;;  %v1961_v38 = vrot.slane %v9271_v36, 1 }
  0xeb   :  { %v1940_v20 = vsel %vm442_vm3, %v1937_v40, %v1939_v4  ;;  %v332_v40 = vld [vmem:[#allocation2 + $0x148] sm:$0x3]  ;;  %v2372_v4 = vrot.slane %v9299_v29, 2  ;;  %v2373_v36 = vrot.slane %v9318_v56, 2 }
  0xec   :  { %7433 = vmatmul.mubr.msk.f32.gmra.mxu0 %vm29_vm1, %v1920_v31  ;;  %7486 = vmatmul.mubr.msk.f32.gmra.mxu1 %vm29_vm1, %v2331_v34  ;;  %v1946_v31 = vrot.slane %v9208_v43, 1  ;;  %v326_v34 = vld [vmem:[#allocation2 + $0x118] sm:$0x3]  ;;  %v2358_v43 = vrot.slane %v9243_v17, 2  ;;  %v1959_v44 = vrot.slane %v332_v40, 1 }
  0xed   :  { %7435 = vmatprep.mubr.msk.f32.mxu0 %vm29_vm1, %v1923_v47  ;;  %7488 = vmatprep.mubr.msk.f32.mxu1 %vm29_vm1, %v2334_v55  ;;  %v2355_v47 = vrot.slane %v326_v34, 2  ;;  %v2357_v55 = vrot.slane %v9229_v21, 2  ;;  %v2363_v21 = vrot.slane %v9264_v19, 2  ;;  %v1953_v19 = vsel %vm442_vm3, %v1951_v33, %v1952_v8  ;;  %v7933_v33 = vld [vmem:[#allocation3 + $0x20] sm:$0xff] }
  0xee   :  { %v1948_v17 = vsel %vm442_vm3, %v1946_v31, %v1947_v7  ;;  %v1960_v50 = vsel %vm442_vm3, %v1957_v42, %v1959_v44  ;;  %v1966_v31 = vrot.slane %v9299_v29, 1  ;;  %v7939_v44 = vld [vmem:[#allocation3 + $0x68] sm:$0xff] }
  0xef   :  { %v2356_v24 = vsel %vm1110_vm4, %v2353_v5, %v2355_v47  ;;  %v2364_v27 = vsel %vm1110_vm4, %v2362_v9, %v2363_v21  ;;  %v11646_v9 = vld [vmem:[#allocation7_spill] sm:$0xff] }
  0xf0   :  { %7436 = vmatmul.mubr.msk.f32.gmra.mxu0 %vm29_vm1, %v1925_v49  ;;  %7489 = vmatmul.mubr.msk.f32.gmra.mxu1 %vm29_vm1, %v2336_v23  ;;  %v329_v49 = vld [vmem:[#allocation2 + $0x130] sm:$0x3]  ;;  %v1949_v23 = vrot.slane %v326_v34, 1 }
  0xf1   :  { %7438 = vmatprep.mubr.msk.f32.mxu0 %vm29_vm1, %v1928_v0  ;;  %7491 = vmatprep.mubr.msk.f32.mxu1 %vm29_vm1, %v2339_v14  ;;  %v2360_v1 = vrot.slane %v329_v49, 2  ;;  %v2359_v0 = vsel %vm1110_vm4, %v2357_v55, %v2358_v43  ;;  %v1956_v14 = vrot.slane %v9250_v57, 1  ;;  %v2368_v57 = vrot.slane %v9286_v25, 2  ;;  %v7269_v55 = vpop.f32.mrf.mxu1 }
  0xf2   :  { %v1950_v60 = vsel %vm442_vm3, %v1947_v7, %v1949_v23  ;;  %v1967_v7 = vrot.slane %v9318_v56, 1 }
  0xf3   :  { %v2361_v28 = vsel %vm1110_vm4, %v2358_v43, %v2360_v1  ;;  %v7932_v43 = vld [vmem:[#allocation3 + $0x18] sm:$0xff] }
  0xf4   :  { %7439 = vmatmul.mubr.msk.f32.gmra.mxu0 %vm29_vm1, %v1930_v16  ;;  %7492 = vmatmul.mubr.msk.f32.gmra.mxu1 %vm29_vm1, %v2341_v61  ;;  %v1954_v16 = vrot.slane %v329_v49, 1  ;;  %v2365_v61 = vrot.slane %v332_v40, 2  ;;  %v1968_v29 = vsel %vm442_vm3, %v1966_v31, %v1967_v7  ;;  %v7935_v1 = vld [vmem:[#allocation3 + $0x38] sm:$0xff] }
  0xf5   :  { %7441 = vmatprep.mubr.msk.f32.mxu0 %vm29_vm1, %v1933_v26  ;;  %7494 = vmatprep.mubr.msk.f32.mxu1 %vm29_vm1, %v2344_v2  ;;  %v1962_v26 = vrot.slane %v9286_v25, 1  ;;  %v335_v2 = vld [vmem:[#allocation2 + $0x160] sm:$0x3]  ;;  %v1958_v25 = vsel %vm442_vm3, %v1956_v14, %v1957_v42 }
  0xf6   :  { %v1955_v6 = vsel %vm442_vm3, %v1952_v8, %v1954_v16  ;;  %v2366_v58 = vsel %vm1110_vm4, %v2363_v21, %v2365_v61  ;;  %v1964_v5 = vrot.slane %v335_v2, 1 }
  0xf7   :  { %v1963_v34 = vsel %vm442_vm3, %v1961_v38, %v1962_v26 }
  0xf8   :  { %7442 = vmatmul.mubr.msk.f32.gmra.mxu0 %vm29_vm1, %v1935_v51  ;;  %7495 = vmatmul.mubr.msk.f32.gmra.mxu1 %vm29_vm1, %v2346_v22  ;;  %v2370_v51 = vrot.slane %v335_v2, 2  ;;  %v2369_v22 = vsel %vm1110_vm4, %v2367_v12, %v2368_v57  ;;  %v1965_v13 = vsel %vm442_vm3, %v1962_v26, %v1964_v5  ;;  %v7938_v12 = vld [vmem:[#allocation3 + $0x60] sm:$0xff]  ;;  %v9574_v2 = vld [vmem:[#allocation3 + $0xc8] sm:$0xff] }
  0xf9   :  { %7444 = vmatprep.mubr.msk.f32.mxu0 %vm29_vm1, %v1938_v37  ;;  %7497 = vmatprep.mubr.msk.f32.mxu1 %vm29_vm1, %v2349_v32  ;;  %v2375_v32 = vrot.slane %v338_v35, 2  ;;  %v9572_v26 = vld [vmem:[#allocation3 + $0xc0] sm:$0xff]  ;;  %v2980_v5 = vrot.slane %v9574_v2, 1 }
  0xfa   :  { %v2371_v37 = vsel %vm1110_vm4, %v2368_v57, %v2370_v51  ;;  %v11649_v57 = vld [vmem:[#allocation10_spill] sm:$0xff]  ;;  %v11650_v51 = vld [vmem:[#allocation11_spill] sm:$0xff] }
  0xfb   :  { %v2376_v47 = vsel %vm1110_vm4, %v2373_v36, %v2375_v32 }
  0xfc   :  { %7445 = vmatmul.mubr.msk.f32.gmra.mxu0 %vm29_vm1, %v1940_v20  ;;  %7498 = vmatmul.mubr.msk.f32.gmra.mxu1 %vm29_vm1, %v2351_v15  ;;  %v2374_v20 = vsel %vm1110_vm4, %v2372_v4, %v2373_v36  ;;  %v1969_v15 = vrot.slane %v338_v35, 1  ;;  %v7940_v36 = vld [vmem:[#allocation3 + $0x78] sm:$0xff] }
  0xfd   :  { %7447 = vmatprep.mubr.msk.f32.mxu0 %vm29_vm1, %v1943_v41  ;;  %7500 = vmatprep.mubr.msk.f32.mxu1 %vm29_vm1, %v2354_v52  ;;  %v951_v41 = vpop.f32.mrf.mxu1 }
  0xfe   :  { %v1970_v56 = vsel %vm442_vm3, %v1967_v7, %v1969_v15  ;;  %v7941_v7 = vld [vmem:[#allocation3 + $0x80] sm:$0xff]  ;;  %v7942_v15 = vld [vmem:[#allocation3 + $0x90] sm:$0xff] }
 0x100   :  { %7448 = vmatmul.mubr.msk.f32.gmra.mxu0 %vm29_vm1, %v1945_v39  ;;  %7501 = vmatmul.mubr.msk.f32.gmra.mxu1 %vm29_vm1, %v2356_v24  ;;  %v7219_v52 = vpop.f32.mrf.mxu0 }
 0x101   :  { %7450 = vmatprep.mubr.msk.f32.mxu0 %vm29_vm1, %v1948_v17  ;;  %7503 = vmatprep.mubr.msk.f32.mxu1 %vm29_vm1, %v2359_v0  ;;  %v11647_v17 = vld [vmem:[#allocation8_spill] sm:$0xff] }
 0x102   :  { %v659_v49 = vpop.f32.mrf.mxu0 }
 0x103   :  { %v9550_v23 = vadd.f32 %v951_v41, %v659_v49 }
 0x104   :  { %7451 = vmatmul.mubr.msk.f32.gmra.mxu0 %vm29_vm1, %v1950_v60  ;;  %7504 = vmatmul.mubr.msk.f32.gmra.mxu1 %vm29_vm1, %v2361_v28  ;;  %v7937_v60 = vld [vmem:[#allocation3 + $0x50] sm:$0xff]  ;;  %v11648_v28 = vld [vmem:[#allocation9_spill] sm:$0xff] }
 0x105   :  { %7453 = vmatprep.mubr.msk.f32.mxu0 %vm29_vm1, %v1953_v19  ;;  %7506 = vmatprep.mubr.msk.f32.mxu1 %vm29_vm1, %v2364_v27 }
 0x108   :  { %7454 = vmatmul.mubr.msk.f32.gmra.mxu0 %vm29_vm1, %v1955_v6  ;;  %7507 = vmatmul.mubr.msk.f32.gmra.mxu1 %vm29_vm1, %v2366_v58 }
 0x109   :  { %7456 = vmatprep.mubr.msk.f32.mxu0 %vm29_vm1, %v1958_v25  ;;  %7509 = vmatprep.mubr.msk.f32.mxu1 %vm29_vm1, %v2369_v22  ;;  %v11651_v25 = vld [vmem:[#allocation12_spill] sm:$0xff] }
 0x10c   :  { %7457 = vmatmul.mubr.msk.f32.gmra.mxu0 %vm29_vm1, %v1960_v50  ;;  %7510 = vmatmul.mubr.msk.f32.gmra.mxu1 %vm29_vm1, %v2371_v37  ;;  %v2979_v50 = vrot.slane %v9572_v26, 1  ;;  %v9586_v37 = vld [vmem:[#allocation3 + $0xd0] sm:$0x3] }
 0x10d   :  { %7459 = vmatprep.mubr.msk.f32.mxu0 %vm29_vm1, %v1963_v34  ;;  %7512 = vmatprep.mubr.msk.f32.mxu1 %vm29_vm1, %v2374_v20  ;;  %v11652_v20 = vld [vmem:[#allocation13_spill] sm:$0xff] }
 0x110   :  { %7460 = vmatmul.mubr.msk.f32.gmra.mxu0 %vm29_vm1, %v1965_v13  ;;  %7513 = vmatmul.mubr.msk.f32.gmra.mxu1 %vm29_vm1, %v2376_v47  ;;  %v11653_v47 = vld [vmem:[#allocation14_spill] sm:$0xff] }
 0x111   :  { %7462 = vmatprep.mubr.msk.f32.mxu0 %vm29_vm1, %v1968_v29  ;;  %7567 = vmatprep.mubr.msk.f32.mxu1 %vm29_vm1, %v8470_v45  ;;  %v9543_v45 = vadd.f32 %v7269_v55, %v7219_v52  ;;  %v2982_v29 = vrot.slane %v9586_v37, 1 }
 0x114   :  { %7463 = vmatmul.mubr.msk.f32.gmra.mxu0 %vm29_vm1, %v1970_v56  ;;  %7568 = vmatmul.mubr.msk.f32.vlgmr.msra.gmra.mxu1 %vm29_vm1, %v8479_v46  ;;  %v7934_v46 = vld [vmem:[#allocation3 + $0x30] sm:$0xff] }
 0x115   :  { %7517 = vmatprep.mubr.msk.f32.mxu0 %vm29_vm1, %v7932_v43  ;;  %7570 = vmatprep.mubr.msk.f32.mxu1 %vm29_vm1, %v8483_v48  ;;  %v11645_v48 = vld [vmem:[#allocation6_spill] sm:$0xff]  ;;  %v2981_v43 = vsel %vm442_vm3, %v2979_v50, %v2980_v5 }
 0x118   :  { %7518 = vmatmul.mubr.msk.f32.vlgmr.msra.gmra.mxu0 %vm29_vm1, %v7933_v33  ;;  %v7272_v8 = vpop.f32.mrf.mxu1  ;;  %7571 = vmatmul.mubr.msk.f32.gmra.mxu1 %vm29_vm1, %v8502_v54  ;;  %v7943_v33 = vld [vmem:[#allocation3 + $0x98] sm:$0xff] }
 0x119   :  { %7616 = vmatpush3.msk.msra.mxu0 %vm589_vm0, %v9361_v63  ;;  %7520 = vmatprep.mubr.msk.f32.mxu0 %vm29_vm1, %v7934_v46  ;;  %v7936_v63 = vld [vmem:[#allocation3 + $0x48] sm:$0xff] }
 0x11a   :  { %v961_v39 = vpop.f32.mrf.mxu1  ;;  %7573 = vmatprep.mubr.msk.f32.mxu1 %vm29_vm1, %v11645_v48  ;;  %v11654_v46 = vld [vmem:[#allocation15_spill] sm:$0xff]  ;;  %v2983_v48 = vsel %vm442_vm3, %v2980_v5, %v2982_v29  ;;  %v11660_v29 = vld [vmem:[#allocation21_spill] sm:$0xff] }
 0x11b   :  { %v7948_v5 = vld [vmem:[#allocation3 + $0x108] sm:$0xff] }
 0x11c   :  { %v7222_v24 = vpop.f32.mrf.mxu0  ;;  %7521 = vmatmul.mubr.msk.f32.gmra.mxu0 %vm29_vm1, %v7935_v1  ;;  %v7275_v54 = vpop.f32.mrf.mxu1  ;;  %7574 = vmatmul.mubr.msk.f32.gmra.mxu1 %vm29_vm1, %v11646_v9 }
 0x11d   :  { %v9555_v21 = vadd.f32 %v7272_v8, %v7222_v24  ;;  %7523 = vmatprep.mubr.msk.f32.mxu0 %vm29_vm1, %v7936_v63  ;;  %7576 = vmatprep.mubr.msk.f32.mxu1 %vm29_vm1, %v11647_v17  ;;  %v7945_v63 = vld [vmem:[#allocation3 + $0xb0] sm:$0xff] }
 0x11e   :  { %v669_v0 = vpop.f32.mrf.mxu0  ;;  %v971_v14 = vpop.f32.mrf.mxu1 }
 0x11f   :  { %v9560_v42 = vadd.f32 %v961_v39, %v669_v0  ;;  %v7944_v39 = vld [vmem:[#allocation3 + $0xa8] sm:$0xff] }
 0x120   :  { %v7225_v40 = vpop.f32.mrf.mxu0  ;;  %7524 = vmatmul.mubr.msk.f32.gmra.mxu0 %vm29_vm1, %v7937_v60  ;;  %v7278_v16 = vpop.f32.mrf.mxu1  ;;  %7577 = vmatmul.mubr.msk.f32.gmra.mxu1 %vm29_vm1, %v11648_v28 }
 0x121   :  { %v9565_v61 = vadd.f32 %v7275_v54, %v7225_v40  ;;  %7526 = vmatprep.mubr.msk.f32.mxu0 %vm29_vm1, %v7938_v12  ;;  %7579 = vmatprep.mubr.msk.f32.mxu1 %vm29_vm1, %v11649_v57  ;;  %v11656_v57 = vld [vmem:[#allocation17_spill] sm:$0xff] }
 0x122   :  { %v679_v19 = vpop.f32.mrf.mxu0  ;;  %v981_v27 = vpop.f32.mrf.mxu1 }
 0x123   :  { %v9570_v38 = vadd.f32 %v971_v14, %v679_v19  ;;  %v11655_v14 = vld [vmem:[#allocation16_spill] sm:$0xff] }
 0x124   :  { %v7228_v6 = vpop.f32.mrf.mxu0  ;;  %7527 = vmatmul.mubr.msk.f32.gmra.mxu0 %vm29_vm1, %v7939_v44  ;;  %v7281_v58 = vpop.f32.mrf.mxu1  ;;  %7580 = vmatmul.mubr.msk.f32.gmra.mxu1 %vm29_vm1, %v11650_v51 }
 0x125   :  { %v9579_v4 = vadd.f32 %v7278_v16, %v7228_v6  ;;  %7529 = vmatprep.mubr.msk.f32.mxu0 %vm29_vm1, %v7940_v36  ;;  %7582 = vmatprep.mubr.msk.f32.mxu1 %vm29_vm1, %v11651_v25  ;;  %v11657_v6 = vld [vmem:[#allocation18_spill] sm:$0xff]  ;;  %v7947_v25 = vld [vmem:[#allocation3 + $0xf8] sm:$0xff] }
 0x126   :  { %v689_v22 = vpop.f32.mrf.mxu0  ;;  %v991_v35 = vpop.f32.mrf.mxu1 }
 0x127   :  { %v9588_v32 = vadd.f32 %v981_v27, %v689_v22  ;;  %v7946_v27 = vld [vmem:[#allocation3 + $0xf0] sm:$0xff] }
 0x128   :  { %v7231_v31 = vpop.f32.mrf.mxu0  ;;  %7530 = vmatmul.mubr.msk.f32.gmra.mxu0 %vm29_vm1, %v7941_v7  ;;  %v7284_v34 = vpop.f32.mrf.mxu1  ;;  %7583 = vmatmul.mubr.msk.f32.gmra.mxu1 %vm29_vm1, %v11652_v20 }
 0x129   :  { %v9593_v13 = vadd.f32 %v7281_v58, %v7231_v31  ;;  %7532 = vmatprep.mubr.msk.f32.mxu0 %vm29_vm1, %v7942_v15  ;;  %7585 = vmatprep.mubr.msk.f32.mxu1 %vm29_vm1, %v11653_v47  ;;  %v11659_v31 = vld [vmem:[#allocation20_spill] sm:$0xff] }
 0x12a   :  { %v699_v56 = vpop.f32.mrf.mxu0  ;;  %v1001_v55 = vpop.f32.mrf.mxu1  ;;  %v7949_v15 = vld [vmem:[#allocation3 + $0x110] sm:$0xff] }
 0x12b   :  { %v9600_v41 = vadd.f32 %v991_v35, %v699_v56  ;;  %v11658_v35 = vld [vmem:[#allocation19_spill] sm:$0xff] }
 0x12c   :  { %v7234_v52 = vpop.f32.mrf.mxu0  ;;  %7533 = vmatmul.mubr.msk.f32.gmra.mxu0 %vm29_vm1, %v7943_v33  ;;  %v7287_v8 = vpop.f32.mrf.mxu1  ;;  %7586 = vmatmul.mubr.msk.f32.gmra.mxu1 %vm29_vm1, %v11654_v46  ;;  %v7951_v46 = vld [vmem:[#allocation3 + $0x128] sm:$0xff] }
 0x12d   :  { %v9605_v49 = vadd.f32 %v7284_v34, %v7234_v52  ;;  %7535 = vmatprep.mubr.msk.f32.mxu0 %vm29_vm1, %v7944_v39  ;;  %7588 = vmatprep.mubr.msk.f32.mxu1 %vm29_vm1, %v2981_v43  ;;  %v11661_v43 = vld [vmem:[#allocation22_spill] sm:$0xff] }
 0x12e   :  { %v709_v24 = vpop.f32.mrf.mxu0  ;;  %v1011_v1 = vpop.f32.mrf.mxu1 }
 0x12f   :  { %v9610_v54 = vadd.f32 %v1001_v55, %v709_v24  ;;  %v7950_v55 = vld [vmem:[#allocation3 + $0x120] sm:$0xff] }
 0x130   :  { %v7237_v9 = vpop.f32.mrf.mxu0  ;;  %7536 = vmatmul.mubr.msk.f32.gmra.mxu0 %vm29_vm1, %v7945_v63  ;;  %v7290_v17 = vpop.f32.mrf.mxu1  ;;  %7589 = vmatmul.mubr.msk.f32.gmra.mxu1 %vm29_vm1, %v2983_v48  ;;  %v11662_v48 = vld [vmem:[#allocation23_spill] sm:$0xff] }
 0x131   :  { %v9614_v0 = vadd.f32 %v7287_v8, %v7237_v9  ;;  %7538 = vmatprep.mubr.msk.f32.mxu0 %vm29_vm1, %v9572_v26  ;;  %7591 = vmatprep.mubr.msk.f32.mxu1 %vm29_vm1, %v11655_v14  ;;  %v11663_v9 = vld [vmem:[#allocation24_spill] sm:$0xff]  ;;  %v9671_v14 = vld [vmem:[#allocation3 + $0x198] sm:$0xff] }
 0x132   :  { %v719_v40 = vpop.f32.mrf.mxu0  ;;  %v1021_v60 = vpop.f32.mrf.mxu1 }
 0x133   :  { %v9620_v16 = vadd.f32 %v1011_v1, %v719_v40  ;;  %v7952_v1 = vld [vmem:[#allocation3 + $0x138] sm:$0xff]  ;;  %v9673_v40 = vld [vmem:[#allocation3 + $0x1a0] sm:$0xff] }
 0x134   :  { %v7240_v28 = vpop.f32.mrf.mxu0  ;;  %7539 = vmatmul.mubr.msk.f32.gmra.mxu0 %vm29_vm1, %v9574_v2  ;;  %v7293_v12 = vpop.f32.mrf.mxu1  ;;  %7592 = vmatmul.mubr.msk.f32.gmra.mxu1 %vm29_vm1, %v11656_v57  ;;  %v11664_v57 = vld [vmem:[#allocation25_spill] sm:$0xff] }
 0x135   :  { %v9626_v19 = vadd.f32 %v7290_v17, %v7240_v28  ;;  %7541 = vmatprep.mubr.msk.f32.mxu0 %vm29_vm1, %v7946_v27  ;;  %7594 = vmatprep.mubr.msk.f32.mxu1 %vm29_vm1, %v11657_v6  ;;  %v7953_v28 = vld [vmem:[#allocation3 + $0x140] sm:$0xff]  ;;  %v7954_v6 = vld [vmem:[#allocation3 + $0x150] sm:$0xff] }
 0x136   :  { %v729_v44 = vpop.f32.mrf.mxu0  ;;  %v9631_v58 = vpop.f32.mrf.mxu1 }
 0x137   :  { %v9633_v51 = vadd.f32 %v1021_v60, %v729_v44  ;;  %v11665_v44 = vld [vmem:[#allocation26_spill] sm:$0xff] }
 0x138   :  { %v7243_v36 = vpop.f32.mrf.mxu0  ;;  %7542 = vmatmul.mubr.msk.f32.gmra.mxu0 %vm29_vm1, %v7947_v25  ;;  %v7296_v22 = vpop.f32.mrf.mxu1  ;;  %7595 = vmatmul.mubr.msk.f32.gmra.mxu1 %vm29_vm1, %v11658_v35  ;;  %v2985_v35 = vrot.slane %v9673_v40, 1 }
 0x139   :  { %v9638_v50 = vadd.f32 %v7293_v12, %v7243_v36  ;;  %7544 = vmatprep.mubr.msk.f32.mxu0 %vm29_vm1, %v7948_v5  ;;  %7597 = vmatprep.mubr.msk.f32.mxu1 %vm29_vm1, %v11659_v31  ;;  %v9689_v5 = vld [vmem:[#allocation3 + $0x1a8] sm:$0x3] }
 0x13a   :  { %v9643_v7 = vpop.f32.mrf.mxu0  ;;  %v9645_v34 = vpop.f32.mrf.mxu1 }
 0x13c   :  { %v7246_v20 = vpop.f32.mrf.mxu0  ;;  %7545 = vmatmul.mubr.msk.f32.gmra.mxu0 %vm29_vm1, %v7949_v15  ;;  %v7299_v47 = vpop.f32.mrf.mxu1  ;;  %7598 = vmatmul.mubr.msk.f32.gmra.mxu1 %vm29_vm1, %v11660_v29 }
 0x13d   :  { %v9650_v56 = vadd.f32 %v7296_v22, %v7246_v20  ;;  %7547 = vmatprep.mubr.msk.f32.mxu0 %vm29_vm1, %v7950_v55  ;;  %7600 = vmatprep.mubr.msk.f32.mxu1 %vm29_vm1, %v11661_v43  ;;  %v2984_v22 = vrot.slane %v9671_v14, 1  ;;  %v7955_v20 = vld [vmem:[#allocation3 + $0x158] sm:$0xff]  ;;  %v7956_v55 = vld [vmem:[#allocation3 + $0x168] sm:$0xff]  ;;  %v2987_v43 = vrot.slane %v9689_v5, 1 }
 0x13e   :  { %v9655_v52 = vpop.f32.mrf.mxu0  ;;  %v9657_v33 = vpop.f32.mrf.mxu1 }
 0x140   :  { %v7249_v8 = vpop.f32.mrf.mxu0  ;;  %7548 = vmatmul.mubr.msk.f32.gmra.mxu0 %vm29_vm1, %v7951_v46  ;;  %v7302_v39 = vpop.f32.mrf.mxu1  ;;  %7601 = vmatmul.mubr.msk.f32.gmra.mxu1 %vm29_vm1, %v11662_v48 }
 0x141   :  { %v9662_v24 = vadd.f32 %v7299_v47, %v7249_v8  ;;  %7550 = vmatprep.mubr.msk.f32.mxu0 %vm29_vm1, %v7952_v1  ;;  %7603 = vmatprep.mubr.msk.f32.mxu1 %vm29_vm1, %v11663_v9  ;;  %v11666_v47 = vld [vmem:[#allocation27_spill] sm:$0xff]  ;;  %v7957_v1 = vld [vmem:[#allocation3 + $0x170] sm:$0xff] }
 0x142   :  { %v9667_v63 = vpop.f32.mrf.mxu0  ;;  %v9669_v17 = vpop.f32.mrf.mxu1 }
 0x144   :  { %v7252_v60 = vpop.f32.mrf.mxu0  ;;  %7551 = vmatmul.mubr.msk.f32.gmra.mxu0 %vm29_vm1, %v7953_v28  ;;  %v7305_v12 = vpop.f32.mrf.mxu1  ;;  %7604 = vmatmul.mubr.msk.f32.gmra.mxu1 %vm29_vm1, %v11664_v57 }
 0x145   :  { %v9678_v27 = vadd.f32 %v7302_v39, %v7252_v60  ;;  %7553 = vmatprep.mubr.msk.f32.mxu0 %vm29_vm1, %v7954_v6  ;;  %7606 = vmatprep.mubr.msk.f32.mxu1 %vm29_vm1, %v11665_v44  ;;  %v2986_v39 = vsel %vm442_vm3, %v2984_v22, %v2985_v35  ;;  %v11667_v60 = vld [vmem:[#allocation28_spill] sm:$0xff]  ;;  %v7959_v22 = vld [vmem:[#allocation3 + $0x188] sm:$0xff] }
 0x146   :  { %v9683_v36 = vpop.f32.mrf.mxu0  ;;  %v9685_v25 = vpop.f32.mrf.mxu1 }
 0x148   :  { %v7255_v31 = vpop.f32.mrf.mxu0  ;;  %7554 = vmatmul.mubr.msk.f32.gmra.mxu0 %vm29_vm1, %v7955_v20  ;;  %v7308_v15 = vpop.f32.mrf.mxu1  ;;  %7607 = vmatmul.mubr.msk.f32.gmra.mxu1 %vm29_vm1, %v11666_v47 }
 0x149   :  { %v9694_v29 = vadd.f32 %v7305_v12, %v7255_v31  ;;  %7556 = vmatprep.mubr.msk.f32.mxu0 %vm29_vm1, %v7956_v55  ;;  %7609 = vmatprep.mubr.msk.f32.mxu1 %vm29_vm1, %v8962_v62  ;;  %v7958_v12 = vld [vmem:[#allocation3 + $0x180] sm:$0xff]  ;;  %v2988_v62 = vsel %vm442_vm3, %v2985_v35, %v2987_v43 }
 0x14a   :  { %v9700_v8 = vpop.f32.mrf.mxu0  ;;  %v9702_v46 = vpop.f32.mrf.mxu1 }
 0x14c   :  { %v7258_v48 = vpop.f32.mrf.mxu0  ;;  %7557 = vmatmul.mubr.msk.f32.gmra.mxu0 %vm29_vm1, %v7957_v1  ;;  %v7311_v9 = vpop.f32.mrf.mxu1  ;;  %7610 = vmatmul.mubr.msk.f32.gmra.mxu1 %vm29_vm1, %v11667_v60 }
 0x14d   :  { %v9708_v28 = vadd.f32 %v7308_v15, %v7258_v48  ;;  %7559 = vmatprep.mubr.msk.f32.mxu0 %vm29_vm1, %v7958_v12  ;;  %7612 = vmatprep.mubr.msk.f32.mxu1 %vm29_vm1, %v2986_v39 }
 0x14e   :  { %v9713_v57 = vpop.f32.mrf.mxu0  ;;  %v9715_v6 = vpop.f32.mrf.mxu1 }
 0x150   :  { %v7261_v44 = vpop.f32.mrf.mxu0  ;;  %7560 = vmatmul.mubr.msk.f32.gmra.mxu0 %vm29_vm1, %v7959_v22  ;;  %v7314_v31 = vpop.f32.mrf.mxu1  ;;  %7613 = vmatmul.mubr.msk.f32.gmra.mxu1 %vm29_vm1, %v2988_v62 }
 0x151   :  { %v9719_v20 = vadd.f32 %v7311_v9, %v7261_v44  ;;  %7562 = vmatprep.mubr.msk.f32.mxu0 %vm29_vm1, %v9671_v14 }
 0x152   :  { %v9723_v15 = vpop.f32.mrf.mxu0  ;;  %v9725_v47 = vpop.f32.mrf.mxu1 }
 0x154   :  { %v7264_v35 = vpop.f32.mrf.mxu0  ;;  %7563 = vmatmul.mubr.msk.f32.gmra.mxu0 %vm29_vm1, %v9673_v40  ;;  %v7369_v55 = vpop.f32.mrf.mxu1 }
 0x155   :  { %v9729_v43 = vadd.f32 %v7314_v31, %v7264_v35  ;;  %7617 = vmatprep.mubr.msk.f32.mxu0 %vm29_vm1, %v9004_v3  ;;  %v11668_v31 = vld [vmem:[#allocation29_spill] sm:$0xff] }
 0x156   :  { %v9733_v39 = vpop.f32.mrf.mxu0  ;;  %v9735_v48 = vpop.f32.mrf.mxu1 }
 0x158   :  { %v7319_v1 = vpop.f32.mrf.mxu0  ;;  %7618 = vmatmul.mubr.msk.f32.vlgmr.msra.gmra.mxu0 %vm29_vm1, %v9027_v30  ;;  %v7372_v9 = vpop.f32.mrf.mxu1 }
 0x159   :  { %v1486_v60 = vadd.f32 %v7319_v1, %v9543_v45  ;;  %7620 = vmatprep.mubr.msk.f32.mxu0 %vm29_vm1, %v9033_v10 }
 0x15a   :  { %v1326_v12 = vpop.f32.mrf.mxu0  ;;  %v9742_v62 = vpop.f32.mrf.mxu1 }
 0x15b   :  { %v9745_v44 = vadd.f32 %v1326_v12, %v9550_v23  ;;  %v9747_v3 = vadd.f32 %v7369_v55, %v1486_v60  ;;  %v11669_v60 = vld [vmem:[#allocation30_spill] sm:$0xff] }
 0x15c   :  { %v7322_v22 = vpop.f32.mrf.mxu0  ;;  %7621 = vmatmul.mubr.msk.f32.gmra.mxu0 %vm29_vm1, %v11668_v31  ;;  %v7375_v35 = vpop.f32.mrf.mxu1 }
 0x15d   :  { %v1488_v30 = vadd.f32 %v7322_v22, %v9555_v21  ;;  %7623 = vmatprep.mubr.msk.f32.mxu0 %vm29_vm1, %v9058_v11 }
 0x15e   :  { %v1336_v45 = vpop.f32.mrf.mxu0  ;;  %v9754_v10 = vpop.f32.mrf.mxu1 }
 0x15f   :  { %v9757_v1 = vadd.f32 %v1336_v45, %v9560_v42  ;;  %v9759_v23 = vadd.f32 %v7372_v9, %v1488_v30 }
 0x160   :  { %v7325_v55 = vpop.f32.mrf.mxu0  ;;  %7624 = vmatmul.mubr.msk.f32.gmra.mxu0 %vm29_vm1, %v11669_v60  ;;  %v7378_v12 = vpop.f32.mrf.mxu1  ;;  %v11671_v60 = vld [vmem:[#allocation31_spill] sm:$0xff] }
 0x161   :  { %v1490_v31 = vadd.f32 %v7325_v55, %v9565_v61  ;;  %7626 = vmatprep.mubr.msk.f32.mxu0 %vm29_vm1, %v9079_v53 }
 0x162   :  { %v1346_v21 = vpop.f32.mrf.mxu0  ;;  %v9766_v11 = vpop.f32.mrf.mxu1 }
 0x163   :  { %11670 = vst [vmem:[#allocation6_spill] sm:$0xff] %v9766_v11  ;;  %v9769_v22 = vadd.f32 %v1346_v21, %v9570_v38  ;;  %v9771_v42 = vadd.f32 %v7375_v35, %v1490_v31  ;;  %v11673_v31 = vld [vmem:[#allocation32_spill] sm:$0xff]  ;;  %v11674_v11 = vld [vmem:[#allocation33_spill] sm:$0xff] }
 0x164   :  { %v7328_v9 = vpop.f32.mrf.mxu0  ;;  %7627 = vmatmul.mubr.msk.f32.gmra.mxu0 %vm29_vm1, %v9092_v59  ;;  %v7381_v30 = vpop.f32.mrf.mxu1 }
 0x165   :  { %v1492_v45 = vadd.f32 %v7328_v9, %v9579_v4  ;;  %7629 = vmatprep.mubr.msk.f32.mxu0 %vm29_vm1, %v11671_v60  ;;  %v3259_v4 = vrot.slane %v9572_v26, 2  ;;  %v3260_v9 = vrot.slane %v9574_v2, 2  ;;  %v11677_v26 = vld [vmem:[#allocation35_spill] sm:$0xff] }
 0x166   :  { %v1356_v61 = vpop.f32.mrf.mxu0  ;;  %v9778_v53 = vpop.f32.mrf.mxu1 }
 0x167   :  { %11672 = vst [vmem:[#allocation7_spill] sm:$0xff] %v9778_v53  ;;  %v9781_v55 = vadd.f32 %v1356_v61, %v9588_v32  ;;  %v9783_v38 = vadd.f32 %v7378_v12, %v1492_v45  ;;  %v11676_v61 = vld [vmem:[#allocation34_spill] sm:$0xff] }
 0x168   :  { %v7331_v35 = vpop.f32.mrf.mxu0  ;;  %7630 = vmatmul.mubr.msk.f32.gmra.mxu0 %vm29_vm1, %v11673_v31  ;;  %v7384_v21 = vpop.f32.mrf.mxu1  ;;  %v3261_v31 = vsel %vm1110_vm4, %v3259_v4, %v3260_v9 }
 0x169   :  { %v1494_v59 = vadd.f32 %v7331_v35, %v9593_v13  ;;  %7632 = vmatprep.mubr.msk.f32.mxu0 %vm29_vm1, %v11674_v11  ;;  %v3262_v35 = vrot.slane %v9586_v37, 2 }
 0x16a   :  { %v1366_v60 = vpop.f32.mrf.mxu0  ;;  %v9792_v53 = vpop.f32.mrf.mxu1 }
 0x16b   :  { %11675 = vst [vmem:[#allocation8_spill] sm:$0xff] %v9792_v53  ;;  %v9795_v32 = vadd.f32 %v1366_v60, %v9600_v41  ;;  %v9797_v12 = vadd.f32 %v7381_v30, %v1494_v59  ;;  %v11678_v60 = vld [vmem:[#allocation36_spill] sm:$0xff] }
 0x16c   :  { %v7334_v45 = vpop.f32.mrf.mxu0  ;;  %7633 = vmatmul.mubr.msk.f32.gmra.mxu0 %vm29_vm1, %v11676_v61  ;;  %v7387_v13 = vpop.f32.mrf.mxu1 }
 0x16d   :  { %v1496_v11 = vadd.f32 %v7334_v45, %v9605_v49  ;;  %7635 = vmatprep.mubr.msk.f32.mxu0 %vm29_vm1, %v11677_v26  ;;  %v3263_v45 = vsel %vm1110_vm4, %v3260_v9, %v3262_v35 }
 0x16e   :  { %v1376_v2 = vpop.f32.mrf.mxu0  ;;  %v9806_v53 = vpop.f32.mrf.mxu1 }
 0x16f   :  { %v9809_v41 = vadd.f32 %v1376_v2, %v9610_v54  ;;  %v9811_v30 = vadd.f32 %v7384_v21, %v1496_v11 }
 0x170   :  { %v7337_v59 = vpop.f32.mrf.mxu0  ;;  %7636 = vmatmul.mubr.msk.f32.gmra.mxu0 %vm29_vm1, %v11678_v60  ;;  %v7390_v37 = vpop.f32.mrf.mxu1  ;;  %v11679_v60 = vld [vmem:[#allocation37_spill] sm:$0xff] }
 0x171   :  { %v1498_v49 = vadd.f32 %v7337_v59, %v9614_v0  ;;  %7638 = vmatprep.mubr.msk.f32.mxu0 %vm29_vm1, %v3261_v31 }
 0x172   :  { %v1386_v61 = vpop.f32.mrf.mxu0  ;;  %v9818_v4 = vpop.f32.mrf.mxu1 }
 0x173   :  { %v9821_v26 = vadd.f32 %v1386_v61, %v9620_v16  ;;  %v9823_v54 = vadd.f32 %v7387_v13, %v1498_v49  ;;  %v11681_v13 = vld [vmem:[#allocation38_spill] sm:$0xff]  ;;  %v1032_v49 = vadd.f32 %v9631_v58, %v9643_v7  ;;  %v11686_v58 = vld [vmem:[#allocation41_spill] sm:$0xff] }
 0x174   :  { %v7340_v21 = vpop.f32.mrf.mxu0  ;;  %7639 = vmatmul.mubr.msk.f32.gmra.mxu0 %vm29_vm1, %v3263_v45  ;;  %v7393_v11 = vpop.f32.mrf.mxu1  ;;  %v11682_v45 = vld [vmem:[#allocation39_spill] sm:$0xff] }
 0x175   :  { %v1500_v2 = vadd.f32 %v7340_v21, %v9626_v19  ;;  %7641 = vmatprep.mubr.msk.f32.mxu0 %vm29_vm1, %v11679_v60  ;;  %v11685_v60 = vld [vmem:[#allocation40_spill] sm:$0xff] }
 0x176   :  { %v1396_v0 = vpop.f32.mrf.mxu0  ;;  %v9829_v31 = vpop.f32.mrf.mxu1 }
 0x177   :  { %11680 = vst [vmem:[#allocation9_spill] sm:$0xff] %v9829_v31  ;;  %v9832_v9 = vadd.f32 %v1396_v0, %v9633_v51  ;;  %v9834_v35 = vadd.f32 %v7390_v37, %v1500_v2  ;;  %v11697_v31 = vld [vmem:[#allocation48_spill] sm:$0xff] }
 0x178   :  { %v7343_v16 = vpop.f32.mrf.mxu0  ;;  %7642 = vmatmul.mubr.msk.f32.gmra.mxu0 %vm29_vm1, %v11681_v13  ;;  %v7396_v59 = vpop.f32.mrf.mxu1 }
 0x179   :  { %v1502_v19 = vadd.f32 %v7343_v16, %v9638_v50  ;;  %7644 = vmatprep.mubr.msk.f32.mxu0 %vm29_vm1, %v11682_v45  ;;  %v11688_v45 = vld [vmem:[#allocation42_spill] sm:$0xff] }
 0x17a   :  { %v1406_v61 = vpop.f32.mrf.mxu0  ;;  %v9843_v21 = vpop.f32.mrf.mxu1 }
 0x17b   :  { %11683 = vst [vmem:[#allocation10_spill] sm:$0xff] %v9843_v21  ;;  %v9845_v51 = vadd.f32 %v1406_v61, %v1032_v49  ;;  %v9847_v37 = vadd.f32 %v7393_v11, %v1502_v19  ;;  %v11689_v61 = vld [vmem:[#allocation43_spill] sm:$0xff] }
 0x17c   :  { %v7346_v2 = vpop.f32.mrf.mxu0  ;;  %7645 = vmatmul.mubr.msk.f32.gmra.mxu0 %vm29_vm1, %v11685_v60  ;;  %v7399_v0 = vpop.f32.mrf.mxu1 }
 0x17d   :  { %11684 = vst [vmem:[#allocation11_spill] sm:$0xff] %v9845_v51  ;;  %v1504_v13 = vadd.f32 %v7346_v2, %v9650_v56  ;;  %7647 = vmatprep.mubr.msk.f32.mxu0 %vm29_vm1, %v11686_v58 }
 0x17e   :  { %v9854_v50 = vpop.f32.mrf.mxu0  ;;  %v9856_v7 = vpop.f32.mrf.mxu1 }
 0x17f   :  { %11687 = vst [vmem:[#allocation12_spill] sm:$0xff] %v9856_v7  ;;  %v9858_v16 = vadd.f32 %v7396_v59, %v1504_v13  ;;  %v11691_v7 = vld [vmem:[#allocation44_spill] sm:$0xff] }
 0x180   :  { %v7349_v49 = vpop.f32.mrf.mxu0  ;;  %7648 = vmatmul.mubr.msk.f32.gmra.mxu0 %vm29_vm1, %v11688_v45  ;;  %v7402_v11 = vpop.f32.mrf.mxu1  ;;  %v11692_v45 = vld [vmem:[#allocation45_spill] sm:$0xff] }
 0x181   :  { %v1506_v19 = vadd.f32 %v7349_v49, %v9662_v24  ;;  %7650 = vmatprep.mubr.msk.f32.mxu0 %vm29_vm1, %v11689_v61 }
 0x182   :  { %v9865_v56 = vpop.f32.mrf.mxu0  ;;  %v9867_v2 = vpop.f32.mrf.mxu1 }
 0x183   :  { %11690 = vst [vmem:[#allocation13_spill] sm:$0xff] %v9867_v2  ;;  %v9869_v60 = vadd.f32 %v7399_v0, %v1506_v19  ;;  %v11694_v2 = vld [vmem:[#allocation46_spill] sm:$0xff]  ;;  %v11695_v19 = vld [vmem:[#allocation47_spill] sm:$0xff] }
 0x184   :  { %v7352_v58 = vpop.f32.mrf.mxu0  ;;  %7651 = vmatmul.mubr.msk.f32.gmra.mxu0 %vm29_vm1, %v11691_v7  ;;  %v7405_v59 = vpop.f32.mrf.mxu1  ;;  %v6559_v7 = vld [vmem:[%s11532_s4 + $0x4] sm:$0xf] }
 0x185   :  { %v1508_v13 = vadd.f32 %v7352_v58, %v9678_v27  ;;  %7653 = vmatprep.mubr.msk.f32.mxu0 %vm29_vm1, %v11692_v45  ;;  %7665 = vmatprep.subr.msk.mxu1 %vm589_vm0, %v6559_v7  ;;  %v3264_v58 = vrot.slane %v9671_v14, 2  ;;  %v3267_v14 = vrot.slane %v9689_v5, 2 }
 0x186   :  { %v9876_v24 = vpop.f32.mrf.mxu0  ;;  %v9878_v49 = vpop.f32.mrf.mxu1  ;;  %7666 = vmatpush3.msk.msra.mxu1 %vm589_vm0, %v6559_v7 }
 0x187   :  { %11693 = vst [vmem:[#allocation14_spill] sm:$0xff] %v9878_v49  ;;  %v9880_v61 = vadd.f32 %v7402_v11, %v1508_v13 }
 0x188   :  { %v7355_v21 = vpop.f32.mrf.mxu0  ;;  %7654 = vmatmul.mubr.msk.f32.gmra.mxu0 %vm29_vm1, %v11694_v2  ;;  %v7408_v0 = vpop.f32.mrf.mxu1  ;;  %v3265_v2 = vrot.slane %v9673_v40, 2 }
 0x189   :  { %v1510_v27 = vadd.f32 %v7355_v21, %v9694_v29  ;;  %7656 = vmatprep.mubr.msk.f32.mxu0 %vm29_vm1, %v11695_v19  ;;  %v11698_v19 = vld [vmem:[#allocation49_spill] sm:$0xff] }
 0x18a   :  { %v9892_v11 = vpop.f32.mrf.mxu0  ;;  %v9894_v13 = vpop.f32.mrf.mxu1  ;;  %v3266_v40 = vsel %vm1110_vm4, %v3264_v58, %v3265_v2 }
 0x18b   :  { %11696 = vst [vmem:[#allocation15_spill] sm:$0xff] %v9894_v13  ;;  %v9898_v45 = vadd.f32 %v7405_v59, %v1510_v27 }
 0x18c   :  { %v7358_v49 = vpop.f32.mrf.mxu0  ;;  %7657 = vmatmul.mubr.msk.f32.gmra.mxu0 %vm29_vm1, %v11697_v31  ;;  %v7411_v29 = vpop.f32.mrf.mxu1 }
 0x18d   :  { %v1512_v21 = vadd.f32 %v7358_v49, %v9708_v28  ;;  %7659 = vmatprep.mubr.msk.f32.mxu0 %vm29_vm1, %v11698_v19  ;;  %v3268_v49 = vsel %vm1110_vm4, %v3265_v2, %v3267_v14 }
 0x18e   :  { %v9906_v51 = vpop.f32.mrf.mxu0  ;;  %v9909_v13 = vpop.f32.mrf.mxu1 }
 0x18f   :  { %11699 = vst [vmem:[#allocation16_spill] sm:$0xff] %v9909_v13  ;;  %v9911_v59 = vadd.f32 %v7408_v0, %v1512_v21 }
 0x190   :  { %v7361_v7 = vpop.f32.mrf.mxu0  ;;  %7660 = vmatmul.mubr.msk.f32.gmra.mxu0 %vm29_vm1, %v9333_v18  ;;  %v7414_v31 = vpop.f32.mrf.mxu1 }
 0x191   :  { %v1514_v28 = vadd.f32 %v7361_v7, %v9719_v20  ;;  %7662 = vmatprep.mubr.msk.f32.mxu0 %vm29_vm1, %v3266_v40 }
 0x192   :  { %v9918_v5 = vpop.f32.mrf.mxu0  ;;  %v9920_v27 = vpop.f32.mrf.mxu1 }
 0x193   :  { %11700 = vst [vmem:[#allocation17_spill] sm:$0xff] %v9920_v27  ;;  %v9922_v58 = vadd.f32 %v7411_v29, %v1514_v28 }
 0x194   :  { %v7364_v19 = vpop.f32.mrf.mxu0  ;;  %7663 = vmatmul.mubr.msk.f32.gmra.mxu0 %vm29_vm1, %v3268_v49  ;;  %v9925_v0 = vpop.f32.mrf.mxu1 }
 0x195   :  { %11701 = vst [vmem:[#allocation18_spill] sm:$0xff] %v9925_v0  ;;  %v1516_v18 = vadd.f32 %v7364_v19, %v9729_v43 }
 0x196   :  { %v9928_v21 = vpop.f32.mrf.mxu0  ;;  %v9930_v20 = vpop.f32.mrf.mxu1 }
 0x197   :  { %11702 = vst [vmem:[#allocation19_spill] sm:$0xff] %v9930_v20  ;;  %v9932_v40 = vadd.f32 %v7414_v31, %v1516_v18 }
 0x198   :  { %v7419_v2 = vpop.f32.mrf.mxu0  ;;  %v9934_v14 = vpop.f32.mrf.mxu1 }
 0x199   :  { %11703 = vst [vmem:[#allocation20_spill] sm:$0xff] %v9934_v14  ;;  %v9937_v7 = vadd.f32 %v7419_v2, %v9747_v3 }
 0x19a   :  { %v9939_v29 = vpop.f32.mrf.mxu0  ;;  %v9941_v28 = vpop.f32.mrf.mxu1 }
 0x19b   :  { %11704 = vst [vmem:[#allocation21_spill] sm:$0xff] %v9937_v7  ;;  %11705 = vst [vmem:[#allocation22_spill] sm:$0xff] %v9941_v28 }
 0x19c   :  { %v7422_v49 = vpop.f32.mrf.mxu0  ;;  %v9943_v0 = vpop.f32.mrf.mxu1 }
 0x19d   :  { %11706 = vst [vmem:[#allocation23_spill] sm:$0xff] %v9943_v0  ;;  %v9946_v43 = vadd.f32 %v7422_v49, %v9759_v23 }
 0x19e   :  { %v9948_v19 = vpop.f32.mrf.mxu0  ;;  %v9950_v31 = vpop.f32.mrf.mxu1 }
 0x19f   :  { %11707 = vst [vmem:[#allocation24_spill] sm:$0xff] %v9946_v43  ;;  %11708 = vst [vmem:[#allocation25_spill] sm:$0xff] %v9950_v31 }
 0x1a0   :  { %v7425_v18 = vpop.f32.mrf.mxu0  ;;  %v9952_v20 = vpop.f32.mrf.mxu1 }
 0x1a1   :  { %11709 = vst [vmem:[#allocation26_spill] sm:$0xff] %v9952_v20  ;;  %v9955_v3 = vadd.f32 %v7425_v18, %v9771_v42 }
 0x1a2   :  { %v9957_v2 = vpop.f32.mrf.mxu0  ;;  %v9959_v14 = vpop.f32.mrf.mxu1 }
 0x1a3   :  { %11710 = vst [vmem:[#allocation27_spill] sm:$0xff] %v9955_v3  ;;  %11711 = vst [vmem:[#allocation28_spill] sm:$0xff] %v9959_v14  ;;  %v3766_v14 = vld [vmem:[#allocation5] sm:$0xff]  ;;  %v3767_v3 = vld [vmem:[#allocation5 + $0x8] sm:$0xff] }
 0x1a4   :  { %v7428_v28 = vpop.f32.mrf.mxu0  ;;  %v9961_v7 = vpop.f32.mrf.mxu1  ;;  %v3822_v27 = vrot.slane %v3767_v3, 1 }
 0x1a5   :  { %11712 = vst [vmem:[#allocation29_spill] sm:$0xff] %v9961_v7  ;;  %v9964_v23 = vadd.f32 %v7428_v28, %v9783_v38  ;;  %v3821_v7 = vrot.slane %v3766_v14, 1  ;;  %v3768_v38 = vld [vmem:[#allocation5 + $0x10] sm:$0x3] }
 0x1a6   :  { %v9966_v49 = vpop.f32.mrf.mxu0  ;;  %v9968_v0 = vpop.f32.mrf.mxu1 }
 0x1a7   :  { %11713 = vst [vmem:[#allocation30_spill] sm:$0xff] %v9964_v23  ;;  %11714 = vst [vmem:[#allocation31_spill] sm:$0xff] %v9966_v49  ;;  %v4224_v49 = vrot.slane %v3767_v3, 2 }
 0x1a8   :  { %11715 = vst [vmem:[#allocation32_spill] sm:$0xff] %v9968_v0  ;;  %v7431_v31 = vpop.f32.mrf.mxu0  ;;  %v9970_v43 = vpop.f32.mrf.mxu1  ;;  %v6594_v0 = vld [vmem:[%s11532_s4 + $0x8] sm:$0xf] }
 0x1a9   :  { %11716 = vst [vmem:[#allocation33_spill] sm:$0xff] %v9970_v43  ;;  %v9973_v42 = vadd.f32 %v7431_v31, %v9797_v12  ;;  %v4223_v43 = vrot.slane %v3766_v14, 2  ;;  %v3824_v12 = vrot.slane %v3768_v38, 1  ;;  %v4226_v31 = vrot.slane %v3768_v38, 2  ;;  %7717 = vmatprep.subr.msk.mxu0 %vm589_vm0, %v6594_v0 }
 0x1aa   :  { %v9975_v18 = vpop.f32.mrf.mxu0  ;;  %v9977_v20 = vpop.f32.mrf.mxu1  ;;  %7718 = vmatpush3.msk.msra.mxu0 %vm589_vm0, %v6594_v0 }
 0x1ab   :  { %11717 = vst [vmem:[#allocation34_spill] sm:$0xff] %v9973_v42  ;;  %11718 = vst [vmem:[#allocation35_spill] sm:$0xff] %v9975_v18  ;;  %v4225_v14 = vsel %vm1110_vm4, %v4223_v43, %v4224_v49  ;;  %v3825_v3 = vsel %vm442_vm3, %v3822_v27, %v3824_v12  ;;  %v4227_v38 = vsel %vm1110_vm4, %v4224_v49, %v4226_v31 }
 0x1ac   :  { %11719 = vst [vmem:[#allocation36_spill] sm:$0xff] %v9977_v20  ;;  %v7434_v28 = vpop.f32.mrf.mxu0  ;;  %v9979_v23 = vpop.f32.mrf.mxu1  ;;  %v3823_v20 = vsel %vm442_vm3, %v3821_v7, %v3822_v27  ;;  %7719 = vmatprep.mubr.msk.f32.mxu0 %vm29_vm1, %v4225_v14 }
 0x1ad   :  { %v9985_v42 = vadd.f32 %v7434_v28, %v9811_v30  ;;  %7667 = vmatprep.mubr.msk.f32.mxu1 %vm29_vm1, %v3823_v20  ;;  %7720 = vmatmul.mubr.msk.f32.vlgmr.msra.gmra.mxu0 %vm29_vm1, %v4227_v38 }
 0x1ae   :  { %v9989_v18 = vpop.f32.mrf.mxu0  ;;  %v9991_v13 = vpop.f32.mrf.mxu1  ;;  %7668 = vmatmul.mubr.msk.f32.vlgmr.msra.gmra.mxu1 %vm29_vm1, %v3825_v3 }
 0x1b0   :  { %v7437_v30 = vpop.f32.mrf.mxu0  ;;  %v10000_v7 = vpop.f32.mrf.mxu1 }
 0x1b1   :  { %11720 = vst [vmem:[#allocation37_spill] sm:$0xff] %v10000_v7  ;;  %v10004_v28 = vadd.f32 %v7437_v30, %v9823_v54 }
 0x1b2   :  { %v10006_v0 = vpop.f32.mrf.mxu0  ;;  %v10008_v20 = vpop.f32.mrf.mxu1 }
 0x1b3   :  { %11721 = vst [vmem:[#allocation38_spill] sm:$0xff] %v10008_v20 }
 0x1b4   :  { %v7440_v43 = vpop.f32.mrf.mxu0  ;;  %v10010_v27 = vpop.f32.mrf.mxu1 }
 0x1b5   :  { %11722 = vst [vmem:[#allocation39_spill] sm:$0xff] %v10010_v27  ;;  %v10013_v49 = vadd.f32 %v7440_v43, %v9834_v35 }
 0x1b6   :  { %v10015_v12 = vpop.f32.mrf.mxu0  ;;  %v10017_v31 = vpop.f32.mrf.mxu1 }
 0x1b7   :  { %11723 = vst [vmem:[#allocation40_spill] sm:$0xff] %v10013_v49  ;;  %11724 = vst [vmem:[#allocation41_spill] sm:$0xff] %v10017_v31 }
 0x1b8   :  { %v7443_v14 = vpop.f32.mrf.mxu0  ;;  %v10019_v3 = vpop.f32.mrf.mxu1 }
 0x1b9   :  { %11725 = vst [vmem:[#allocation42_spill] sm:$0xff] %v10019_v3  ;;  %v10022_v54 = vadd.f32 %v7443_v14, %v9847_v37 }
 0x1ba   :  { %v10024_v38 = vpop.f32.mrf.mxu0  ;;  %v10026_v30 = vpop.f32.mrf.mxu1 }
 0x1bb   :  { %11726 = vst [vmem:[#allocation43_spill] sm:$0xff] %v10022_v54  ;;  %11727 = vst [vmem:[#allocation44_spill] sm:$0xff] %v10026_v30 }
 0x1bc   :  { %v7446_v20 = vpop.f32.mrf.mxu0  ;;  %v10028_v7 = vpop.f32.mrf.mxu1 }
 0x1bd   :  { %11728 = vst [vmem:[#allocation45_spill] sm:$0xff] %v10028_v7  ;;  %v10031_v35 = vadd.f32 %v7446_v20, %v9858_v16 }
 0x1be   :  { %v10033_v43 = vpop.f32.mrf.mxu0  ;;  %v10035_v27 = vpop.f32.mrf.mxu1 }
 0x1bf   :  { %11729 = vst [vmem:[#allocation46_spill] sm:$0xff] %v10031_v35  ;;  %11730 = vst [vmem:[#allocation47_spill] sm:$0xff] %v10035_v27 }
 0x1c0   :  { %v7449_v31 = vpop.f32.mrf.mxu0  ;;  %v10037_v49 = vpop.f32.mrf.mxu1 }
 0x1c1   :  { %11731 = vst [vmem:[#allocation48_spill] sm:$0xff] %v10037_v49  ;;  %v10040_v37 = vadd.f32 %v7449_v31, %v9869_v60 }
 0x1c2   :  { %v10042_v14 = vpop.f32.mrf.mxu0  ;;  %v10044_v3 = vpop.f32.mrf.mxu1 }
 0x1c3   :  { %11732 = vst [vmem:[#allocation49_spill] sm:$0xff] %v10040_v37  ;;  %11733 = vst [vmem:[#allocation50_spill] sm:$0xff] %v10044_v3 }
 0x1c4   :  { %v7452_v30 = vpop.f32.mrf.mxu0  ;;  %v10046_v54 = vpop.f32.mrf.mxu1 }
 0x1c5   :  { %11734 = vst [vmem:[#allocation51_spill] sm:$0xff] %v10046_v54  ;;  %v10049_v16 = vadd.f32 %v7452_v30, %v9880_v61 }
 0x1c6   :  { %v10051_v20 = vpop.f32.mrf.mxu0  ;;  %v10053_v7 = vpop.f32.mrf.mxu1 }
 0x1c7   :  { %11735 = vst [vmem:[#allocation52_spill] sm:$0xff] %v10053_v7 }
 0x1c8   :  { %v7455_v27 = vpop.f32.mrf.mxu0  ;;  %v10055_v35 = vpop.f32.mrf.mxu1 }
 0x1c9   :  { %11736 = vst [vmem:[#allocation53_spill] sm:$0xff] %v10055_v35  ;;  %v10058_v60 = vadd.f32 %v7455_v27, %v9898_v45  ;;  %v3796_v35 = vld [vmem:[%s11532_s4] sm:$0xf] }
 0x1ca   :  { %v10060_v31 = vpop.f32.mrf.mxu0  ;;  %v10062_v49 = vpop.f32.mrf.mxu1  ;;  %7691 = vmatprep.subr.msk.mxu1 %vm589_vm0, %v3796_v35 }
 0x1cb   :  { %11737 = vst [vmem:[#allocation54_spill] sm:$0xff] %v10058_v60  ;;  %11738 = vst [vmem:[#allocation55_spill] sm:$0xff] %v10062_v49  ;;  %7692 = vmatpush3.msk.msra.mxu1 %vm589_vm0, %v3796_v35 }
 0x1cc   :  { %v7458_v3 = vpop.f32.mrf.mxu0  ;;  %v10064_v37 = vpop.f32.mrf.mxu1 }
 0x1cd   :  { %11739 = vst [vmem:[#allocation56_spill] sm:$0xff] %v10064_v37  ;;  %v10067_v61 = vadd.f32 %v7458_v3, %v9911_v59 }
 0x1ce   :  { %v10069_v30 = vpop.f32.mrf.mxu0  ;;  %v10071_v54 = vpop.f32.mrf.mxu1 }
 0x1cf   :  { %11740 = vst [vmem:[#allocation57_spill] sm:$0xff] %v10067_v61  ;;  %11741 = vst [vmem:[#allocation58_spill] sm:$0xff] %v10071_v54 }
 0x1d0   :  { %v7461_v45 = vpop.f32.mrf.mxu0  ;;  %v10076_v27 = vpop.f32.mrf.mxu1 }
 0x1d1   :  { %11742 = vst [vmem:[#allocation59_spill] sm:$0xff] %v10076_v27  ;;  %v10080_v49 = vadd.f32 %v7461_v45, %v9922_v58 }
 0x1d2   :  { %v10083_v59 = vpop.f32.mrf.mxu0  ;;  %v10085_v3 = vpop.f32.mrf.mxu1 }
 0x1d3   :  { %11743 = vst [vmem:[#allocation60_spill] sm:$0xff] %v10080_v49  ;;  %11744 = vst [vmem:[#allocation61_spill] sm:$0xff] %v10083_v59 }
 0x1d4   :  { %11745 = vst [vmem:[#allocation62_spill] sm:$0xff] %v10085_v3  ;;  %v7464_v37 = vpop.f32.mrf.mxu0  ;;  %v10087_v54 = vpop.f32.mrf.mxu1 }
 0x1d5   :  { %11746 = vst [vmem:[#allocation63_spill] sm:$0xff] %v10087_v54  ;;  %v10090_v61 = vadd.f32 %v7464_v37, %v9932_v40 }
 0x1d6   :  { %v10092_v7 = vpop.f32.mrf.mxu0  ;;  %v10094_v27 = vpop.f32.mrf.mxu1 }
 0x1d7   :  { %11747 = vst [vmem:[#allocation64_spill] sm:$0xff] %v10090_v61  ;;  %11748 = vst [vmem:[#allocation65_spill] sm:$0xff] %v10092_v7  ;;  %v6630_v7 = vld [vmem:[%s11532_s4 + $0x10] sm:$0xf] }
 0x1d8   :  { %11749 = vst [vmem:[#allocation66_spill] sm:$0xff] %v10094_v27  ;;  %v10096_v60 = vpop.f32.mrf.mxu0  ;;  %v10100_v45 = vpop.f32.mrf.mxu1  ;;  %7769 = vmatprep.subr.msk.mxu0 %vm589_vm0, %v6630_v7 }
 0x1d9   :  { %11750 = vst [vmem:[#allocation67_spill] sm:$0xff] %v10100_v45  ;;  %v6612_v45 = vld [vmem:[%s11532_s4 + $0xc] sm:$0xf]  ;;  %7770 = vmatpush3.msk.msra.mxu0 %vm589_vm0, %v6630_v7 }
 0x1da   :  { %v10098_v58 = vpop.f32.mrf.mxu0  ;;  %v10106_v3 = vpop.f32.mrf.mxu1  ;;  %7743 = vmatprep.subr.msk.mxu1 %vm589_vm0, %v6612_v45 }
 0x1db   :  { %11753 = vst [vmem:[#allocation70_spill] sm:$0xff] %v10106_v3 }
 0x1dc   :  { %v10102_v35 = vpop.f32.mrf.mxu0  ;;  %v10112_v37 = vpop.f32.mrf.mxu1 }
 0x1dd   :  { %11751 = vst [vmem:[#allocation68_spill] sm:$0xff] %v10102_v35  ;;  %11756 = vst [vmem:[#allocation73_spill] sm:$0xff] %v10112_v37 }
 0x1de   :  { %v10104_v49 = vpop.f32.mrf.mxu0 }
 0x1df   :  { %11752 = vst [vmem:[#allocation69_spill] sm:$0xff] %v10104_v49 }
 0x1e0   :  { %v10108_v59 = vpop.f32.mrf.mxu0 }
 0x1e1   :  { %11754 = vst [vmem:[#allocation71_spill] sm:$0xff] %v10108_v59 }
 0x1e2   :  { %v10110_v40 = vpop.f32.mrf.mxu0 }
 0x1e3   :  { %11755 = vst [vmem:[#allocation72_spill] sm:$0xff] %v10110_v40  ;;  %v10127_v40 = vpop.f32.mrf.mxu1 }
 0x1e4   :  { %v10114_v61 = vpop.f32.mrf.mxu0  ;;  %11759 = vst [vmem:[#allocation76_spill] sm:$0xff] %v10127_v40 }
 0x1e5   :  { %11757 = vst [vmem:[#allocation74_spill] sm:$0xff] %v10114_v61  ;;  %v10133_v59 = vpop.f32.mrf.mxu1 }
 0x1e6   :  { %v10124_v3 = vpop.f32.mrf.mxu0  ;;  %11762 = vst [vmem:[#allocation79_spill] sm:$0xff] %v10133_v59 }
 0x1e7   :  { %11758 = vst [vmem:[#allocation75_spill] sm:$0xff] %v10124_v3  ;;  %v10139_v35 = vpop.f32.mrf.mxu1 }
 0x1e8   :  { %v10129_v37 = vpop.f32.mrf.mxu0  ;;  %11765 = vst [vmem:[#allocation82_spill] sm:$0xff] %v10139_v35 }
 0x1e9   :  { %11760 = vst [vmem:[#allocation77_spill] sm:$0xff] %v10129_v37  ;;  %v10145_v3 = vpop.f32.mrf.mxu1 }
 0x1ea   :  { %v10131_v61 = vpop.f32.mrf.mxu0  ;;  %11768 = vst [vmem:[#allocation85_spill] sm:$0xff] %v10145_v3 }
 0x1eb   :  { %11761 = vst [vmem:[#allocation78_spill] sm:$0xff] %v10131_v61  ;;  %v10151_v37 = vpop.f32.mrf.mxu1 }
 0x1ec   :  { %v10135_v27 = vpop.f32.mrf.mxu0 }
 0x1ed   :  { %11763 = vst [vmem:[#allocation80_spill] sm:$0xff] %v10135_v27  ;;  %v10157_v27 = vpop.f32.mrf.mxu1 }
 0x1ee   :  { %v10137_v49 = vpop.f32.mrf.mxu0 }
 0x1ef   :  { %11764 = vst [vmem:[#allocation81_spill] sm:$0xff] %v10137_v49 }
 0x1f0   :  { %v10141_v54 = vpop.f32.mrf.mxu0 }
 0x1f1   :  { %11766 = vst [vmem:[#allocation83_spill] sm:$0xff] %v10141_v54  ;;  %v10163_v54 = vpop.f32.mrf.mxu1 }
 0x1f2   :  { %v10143_v45 = vpop.f32.mrf.mxu0 }
 0x1f3   :  { %11767 = vst [vmem:[#allocation84_spill] sm:$0xff] %v10143_v45 }
 0x1f4   :  { %v10147_v7 = vpop.f32.mrf.mxu0 }
 0x1f5   :  { %11769 = vst [vmem:[#allocation86_spill] sm:$0xff] %v10147_v7  ;;  %v10169_v7 = vpop.f32.mrf.mxu1 }
 0x1f6   :  { %v10149_v40 = vpop.f32.mrf.mxu0 }
 0x1f7   :  { %11770 = vst [vmem:[#allocation87_spill] sm:$0xff] %v10149_v40  ;;  %v1042_v40 = vadd.f32 %v9645_v34, %v9655_v52  ;;  %v1092_v34 = vadd.f32 %v9715_v6, %v9723_v15  ;;  %v1102_v52 = vadd.f32 %v9725_v47, %v9733_v39  ;;  %v10204_v15 = vpop.f32.mrf.mxu1  ;;  %v11777_v47 = vld [vmem:[#allocation6_spill] sm:$0xff] }
 0x1f8   :  { %v10153_v61 = vpop.f32.mrf.mxu0  ;;  %v1849_v39 = vadd.f32 %v11777_v47, %v9781_v55 }
 0x1f9   :  { %11771 = vst [vmem:[#allocation88_spill] sm:$0xff] %v10153_v61  ;;  %v1062_v61 = vadd.f32 %v9669_v17, %v9683_v36  ;;  %v1503_v17 = vadd.f32 %v9854_v50, %v1042_v40 }
 0x1fa   :  { %v10155_v59 = vpop.f32.mrf.mxu0 }
 0x1fb   :  { %11772 = vst [vmem:[#allocation89_spill] sm:$0xff] %v10155_v59  ;;  %v1052_v59 = vadd.f32 %v9657_v33, %v9667_v63  ;;  %v1843_v33 = vadd.f32 %v9735_v48, %v9745_v44  ;;  %v1845_v63 = vadd.f32 %v9742_v62, %v9757_v1  ;;  %v11778_v48 = vld [vmem:[#allocation7_spill] sm:$0xff]  ;;  %v1513_v44 = vadd.f32 %v9918_v5, %v1092_v34 }
 0x1fc   :  { %v10159_v49 = vpop.f32.mrf.mxu0  ;;  %v1851_v62 = vadd.f32 %v11778_v48, %v9795_v32  ;;  %v1515_v1 = vadd.f32 %v9928_v21, %v1102_v52 }
 0x1fd   :  { %11773 = vst [vmem:[#allocation90_spill] sm:$0xff] %v10159_v49  ;;  %v1505_v36 = vadd.f32 %v9865_v56, %v1052_v59  ;;  %v1857_v56 = vadd.f32 %v9818_v4, %v9832_v9  ;;  %v2265_v55 = vadd.f32 %v9939_v29, %v1843_v33  ;;  %v11783_v59 = vld [vmem:[#allocation12_spill] sm:$0xff]  ;;  %v10232_v9 = vpop.f32.mrf.mxu1  ;;  %v11788_v33 = vld [vmem:[#allocation17_spill] sm:$0xff] }
 0x1fe   :  { %v10161_v35 = vpop.f32.mrf.mxu0  ;;  %v11787_v29 = vld [vmem:[#allocation16_spill] sm:$0xff] }
 0x1ff   :  { %11774 = vst [vmem:[#allocation91_spill] sm:$0xff] %v10161_v35  ;;  %v6666_v35 = vld [vmem:[%s11532_s4 + $0x18] sm:$0xf]  ;;  %v1863_v21 = vadd.f32 %v11783_v59, %v1505_v36  ;;  %v10235_v52 = vadd.f32 %v11787_v29, %v1513_v44  ;;  %v11789_v36 = vld [vmem:[#allocation31_spill] sm:$0xff]  ;;  %v11794_v44 = vld [vmem:[#allocation24_spill] sm:$0xff] }
 0x200   :  { %v10165_v45 = vpop.f32.mrf.mxu0  ;;  %7821 = vmatprep.subr.msk.mxu0 %vm589_vm0, %v6666_v35 }
 0x201   :  { %11775 = vst [vmem:[#allocation92_spill] sm:$0xff] %v10165_v45  ;;  %v1082_v45 = vadd.f32 %v9702_v46, %v9713_v57  ;;  %v1507_v46 = vadd.f32 %v9876_v24, %v1062_v61  ;;  %v11780_v24 = vld [vmem:[#allocation11_spill] sm:$0xff]  ;;  %v11782_v61 = vld [vmem:[#allocation10_spill] sm:$0xff] }
 0x202   :  { %v10167_v3 = vpop.f32.mrf.mxu0  ;;  %v1861_v5 = vadd.f32 %v11782_v61, %v1503_v17  ;;  %v10238_v17 = vadd.f32 %v11788_v33, %v1515_v1  ;;  %v11796_v1 = vld [vmem:[#allocation22_spill] sm:$0xff]  ;;  %v11799_v33 = vld [vmem:[#allocation25_spill] sm:$0xff] }
 0x203   :  { %11776 = vst [vmem:[#allocation93_spill] sm:$0xff] %v10167_v3  ;;  %v1072_v3 = vadd.f32 %v9685_v25, %v9700_v8  ;;  %v1847_v8 = vadd.f32 %v9754_v10, %v9769_v22  ;;  %v1511_v6 = vadd.f32 %v9906_v51, %v1082_v45  ;;  %v11779_v10 = vld [vmem:[#allocation8_spill] sm:$0xff]  ;;  %v1855_v51 = vadd.f32 %v9806_v53, %v9821_v26  ;;  %v11785_v45 = vld [vmem:[#allocation14_spill] sm:$0xff]  ;;  %v11786_v26 = vld [vmem:[#allocation15_spill] sm:$0xff] }
 0x204   :  { %v10177_v49 = vpop.f32.mrf.mxu0  ;;  %v1853_v22 = vadd.f32 %v11779_v10, %v9809_v41  ;;  %v11784_v41 = vld [vmem:[#allocation13_spill] sm:$0xff] }
 0x205   :  { %v1509_v57 = vadd.f32 %v9892_v11, %v1072_v3  ;;  %v11781_v11 = vld [vmem:[#allocation9_spill] sm:$0xff]  ;;  %v2267_v3 = vadd.f32 %v9948_v19, %v1845_v63  ;;  %v1865_v40 = vadd.f32 %v11784_v41, %v1507_v46  ;;  %v1869_v34 = vadd.f32 %v11786_v26, %v1511_v6  ;;  %v11790_v63 = vld [vmem:[#allocation35_spill] sm:$0xff] }
 0x206   :  { %v10197_v25 = vpop.f32.mrf.mxu0  ;;  %v1859_v32 = vadd.f32 %v11781_v11, %v11780_v24  ;;  %v2269_v4 = vadd.f32 %v9957_v2, %v1847_v8  ;;  %v2271_v19 = vadd.f32 %v11789_v36, %v1849_v39  ;;  %v2273_v47 = vadd.f32 %v11790_v63, %v1851_v62  ;;  %v11791_v46 = vld [vmem:[#allocation21_spill] sm:$0xff]  ;;  %v11793_v6 = vld [vmem:[#allocation19_spill] sm:$0xff]  ;;  %v11795_v11 = vld [vmem:[#allocation20_spill] sm:$0xff]  ;;  %v10266_v36 = vpop.f32.mrf.mxu1 }
 0x207   :  { %v1867_v53 = vadd.f32 %v11785_v45, %v1509_v57  ;;  %v11792_v57 = vld [vmem:[#allocation18_spill] sm:$0xff]  ;;  %v2671_v24 = vadd.f32 %v11793_v6, %v2265_v55  ;;  %v2275_v2 = vadd.f32 %v9989_v18, %v1853_v22  ;;  %v2277_v8 = vadd.f32 %v10006_v0, %v1855_v51  ;;  %v11797_v45 = vld [vmem:[#allocation27_spill] sm:$0xff]  ;;  %v11805_v63 = vld [vmem:[#allocation32_spill] sm:$0xff] }
 0x208   :  { %v10212_v50 = vpop.f32.mrf.mxu0  ;;  %v2672_v10 = vadd.f32 %v11792_v57, %v11791_v46  ;;  %v2674_v61 = vadd.f32 %v11795_v11, %v11794_v44  ;;  %v2673_v59 = vadd.f32 %v11796_v1, %v2267_v3  ;;  %v2279_v39 = vadd.f32 %v10015_v12, %v1857_v56  ;;  %v11798_v26 = vld [vmem:[#allocation23_spill] sm:$0xff]  ;;  %v11800_v18 = vld [vmem:[#allocation30_spill] sm:$0xff]  ;;  %v11802_v3 = vld [vmem:[#allocation28_spill] sm:$0xff] }
 0x209   :  { %v2281_v62 = vadd.f32 %v10024_v38, %v1859_v32  ;;  %v2676_v29 = vadd.f32 %v11798_v26, %v11797_v45  ;;  %v10259_v55 = vadd.f32 %v11799_v33, %v2269_v4  ;;  %v11801_v22 = vld [vmem:[#allocation26_spill] sm:$0xff]  ;;  %v2283_v51 = vadd.f32 %v10033_v43, %v1861_v5  ;;  %v11804_v56 = vld [vmem:[#allocation29_spill] sm:$0xff]  ;;  %v11808_v44 = vld [vmem:[#allocation36_spill] sm:$0xff] }
 0x20a   :  { %v10226_v35 = vpop.f32.mrf.mxu0  ;;  %v10263_v0 = vadd.f32 %v11801_v22, %v11800_v18  ;;  %v10269_v12 = vadd.f32 %v11802_v3, %v2271_v19  ;;  %v11803_v38 = vld [vmem:[#allocation34_spill] sm:$0xff]  ;;  %v10276_v46 = vadd.f32 %v11805_v63, %v2273_v47  ;;  %v11806_v4 = vld [vmem:[#allocation33_spill] sm:$0xff]  ;;  %v10285_v43 = vadd.f32 %v11808_v44, %v2275_v2  ;;  %v3781_v47 = vld [vmem:[#allocation5 + $0x78] sm:$0xff] }
 0x20b   :  { %v10273_v32 = vadd.f32 %v11804_v56, %v11803_v38  ;;  %v10280_v57 = vadd.f32 %v11806_v4, %v9985_v42  ;;  %v10289_v5 = vadd.f32 %v9979_v23, %v10004_v28  ;;  %v10292_v19 = vadd.f32 %v9991_v13, %v2277_v8  ;;  %v3782_v1 = vld [vmem:[#allocation5 + $0x80] sm:$0xff]  ;;  %v11810_v26 = vld [vmem:[#allocation37_spill] sm:$0xff]  ;;  %v11811_v33 = vld [vmem:[#allocation38_spill] sm:$0xff]  ;;  %v10320_v4 = vpop.f32.mrf.mxu1 }
 0x20c   :  { %v10242_v48 = vpop.f32.mrf.mxu0  ;;  %v2285_v11 = vadd.f32 %v10042_v14, %v1863_v21  ;;  %v11809_v45 = vld [vmem:[#allocation40_spill] sm:$0xff]  ;;  %v10300_v18 = vadd.f32 %v11811_v33, %v2279_v39  ;;  %v11812_v2 = vld [vmem:[#allocation43_spill] sm:$0xff]  ;;  %v11814_v23 = vld [vmem:[#allocation41_spill] sm:$0xff]  ;;  %v2287_v63 = vadd.f32 %v10051_v20, %v1865_v40  ;;  %v2946_v39 = vadd.f32 %v10096_v60, %v2672_v10 }
 0x20d   :  { %v10297_v42 = vadd.f32 %v11810_v26, %v11809_v45  ;;  %v11813_v22 = vld [vmem:[#allocation39_spill] sm:$0xff]  ;;  %v10307_v28 = vadd.f32 %v11814_v23, %v2281_v62  ;;  %v11816_v8 = vld [vmem:[#allocation46_spill] sm:$0xff]  ;;  %v11818_v38 = vld [vmem:[#allocation44_spill] sm:$0xff]  ;;  %v2289_v33 = vadd.f32 %v10060_v31, %v1867_v53  ;;  %v3842_v23 = vrot.slane %v3782_v1, 1 }
 0x20e   :  { %v10254_v41 = vpop.f32.mrf.mxu0  ;;  %v10304_v3 = vadd.f32 %v11813_v22, %v11812_v2  ;;  %v11817_v14 = vld [vmem:[#allocation42_spill] sm:$0xff]  ;;  %v10316_v56 = vadd.f32 %v11818_v38, %v2283_v51  ;;  %v3783_v44 = vld [vmem:[#allocation5 + $0x88] sm:$0x3]  ;;  %v3841_v22 = vrot.slane %v3781_v47, 1  ;;  %v2945_v20 = vadd.f32 %v10098_v58, %v2671_v24  ;;  %v11823_v10 = vld [vmem:[#allocation48_spill] sm:$0xff] }
 0x20f   :  { %v10313_v21 = vadd.f32 %v11817_v14, %v11816_v8  ;;  %v11819_v45 = vld [vmem:[#allocation49_spill] sm:$0xff]  ;;  %v11822_v8 = vld [vmem:[#allocation47_spill] sm:$0xff]  ;;  %v4243_v40 = vrot.slane %v3781_v47, 2  ;;  %v4244_v60 = vrot.slane %v3782_v1, 2  ;;  %v10335_v14 = vadd.f32 %v11823_v10, %v10049_v16  ;;  %v11829_v47 = vld [vmem:[#allocation68_spill] sm:$0xff] }
 0x210   :  { %v10282_v6 = vpop.f32.mrf.mxu0  ;;  %v11820_v26 = vld [vmem:[#allocation45_spill] sm:$0xff]  ;;  %v10330_v51 = vadd.f32 %v11822_v8, %v2285_v11  ;;  %v2291_v38 = vadd.f32 %v10069_v30, %v1869_v34  ;;  %v3844_v31 = vrot.slane %v3783_v44, 1  ;;  %v4246_v53 = vrot.slane %v3783_v44, 2  ;;  %v11827_v11 = vld [vmem:[#allocation51_spill] sm:$0xff]  ;;  %v11830_v16 = vld [vmem:[#allocation52_spill] sm:$0xff] }
 0x211   :  { %11807 = vst [vmem:[#allocation6_spill] sm:$0xff] %v10282_v6  ;;  %v10324_v62 = vadd.f32 %v11820_v26, %v11819_v45  ;;  %v11825_v26 = vld [vmem:[#allocation50_spill] sm:$0xff]  ;;  %v11828_v58 = vld [vmem:[#allocation63_spill] sm:$0xff]  ;;  %v2948_v1 = vadd.f32 %v11829_v47, %v2674_v61  ;;  %v10349_v6 = vpop.f32.mrf.mxu1  ;;  %v10352_v10 = vadd.f32 %v11830_v16, %v2289_v33  ;;  %v11831_v30 = vld [vmem:[#allocation61_spill] sm:$0xff]  ;;  %v10368_v47 = vsel %vm1110_vm4, %v4243_v40, %v4244_v60 }
 0x212   :  { %v10309_v13 = vpop.f32.mrf.mxu0  ;;  %v3228_v24 = vadd.f32 %v11828_v58, %v2946_v39  ;;  %v2293_v34 = vadd.f32 %v11831_v30, %v10235_v52  ;;  %v11832_v44 = vld [vmem:[#allocation69_spill] sm:$0xff]  ;;  %v10363_v39 = vsel %vm442_vm3, %v3841_v22, %v3842_v23  ;;  %v11834_v61 = vld [vmem:[#allocation66_spill] sm:$0xff]  ;;  %11836 = vst [vmem:[#allocation10_spill] sm:$0xff] %v10368_v47  ;;  %v11839_v30 = vld [vmem:[#allocation55_spill] sm:$0xff] }
 0x213   :  { %11815 = vst [vmem:[#allocation7_spill] sm:$0xff] %v10309_v13  ;;  %v11826_v13 = vld [vmem:[#allocation54_spill] sm:$0xff]  ;;  %11833 = vst [vmem:[#allocation9_spill] sm:$0xff] %v10363_v39  ;;  %v11837_v52 = vld [vmem:[#allocation57_spill] sm:$0xff] }
 0x214   :  { %v10327_v2 = vpop.f32.mrf.mxu0  ;;  %v10345_v8 = vadd.f32 %v11827_v11, %v11826_v13  ;;  %v10360_v13 = vld [vmem:[%s11533_s2] ss:$0 sm:$0xff]  ;;  %v11835_v11 = vld [vmem:[#allocation71_spill] sm:$0xff]  ;;  %v11838_v16 = vld [vmem:[#allocation53_spill] sm:$0xff] }
 0x215   :  { %11821 = vst [vmem:[#allocation8_spill] sm:$0xff] %v10327_v2  ;;  %v10341_v2 = vadd.f32 %v11825_v26, %v2287_v63  ;;  %v3227_v26 = vadd.f32 %v11834_v61, %v2945_v20  ;;  %v2950_v58 = vadd.f32 %v11835_v11, %v2676_v29  ;;  %v10380_v22 = vld [vmem:[%s11534_s3] ss:$0 sm:$0xff]  ;;  %v10383_v20 = vsel %vm442_vm3, %v3842_v23, %v3844_v31  ;;  %v11842_v40 = vld [vmem:[#allocation60_spill] sm:$0xff]  ;;  %v11845_v61 = vld [vmem:[#allocation67_spill] sm:$0xff] }
 0x216   :  { %v10338_v45 = vpop.f32.mrf.mxu0  ;;  %11840 = vst [vmem:[#allocation12_spill] sm:$0xff] %v10383_v20  ;;  %v10386_v29 = vsel %vm1110_vm4, %v4244_v60, %v4246_v53  ;;  %v3230_v11 = vadd.f32 %v11845_v61, %v2948_v1  ;;  %v11848_v23 = vld [vmem:[#allocation65_spill] sm:$0xff]  ;;  %v11849_v60 = vld [vmem:[#allocation70_spill] sm:$0xff] }
 0x217   :  { %11824 = vst [vmem:[#allocation11_spill] sm:$0xff] %v10338_v45  ;;  %v2947_v45 = vadd.f32 %v11832_v44, %v2673_v59  ;;  %v10372_v59 = vadd.f32 %v11838_v16, %v11837_v52  ;;  %v10375_v44 = vadd.f32 %v11839_v30, %v2291_v38  ;;  %11841 = vst [vmem:[#allocation13_spill] sm:$0xff] %v10386_v29  ;;  %v10393_v38 = vpop.f32.mrf.mxu1  ;;  %v11846_v30 = vld [vmem:[#allocation58_spill] sm:$0xff]  ;;  %v11850_v29 = vld [vmem:[#allocation72_spill] sm:$0xff] }
 0x218   :  { %v7619_v63 = vpop.f32.mrf.mxu0  ;;  %v10397_v47 = vadd.f32 %v11846_v30, %v2293_v34  ;;  %v10401_v31 = vadd.f32 %v11848_v23, %v10238_v17  ;;  %v11851_v20 = vld [vmem:[#allocation73_spill] sm:$0xff]  ;;  %v11852_v34 = vld [vmem:[#allocation74_spill] sm:$0xff]  ;;  %v11853_v30 = vld [vmem:[#allocation75_spill] sm:$0xff] }
 0x219   :  { %v3508_v33 = vadd.f32 %v7619_v63, %v3228_v24  ;;  %v11843_v24 = vld [vmem:[#allocation56_spill] sm:$0xff]  ;;  %v3229_v53 = vadd.f32 %v11849_v60, %v2947_v45  ;;  %v3232_v1 = vadd.f32 %v11851_v20, %v2950_v58  ;;  %v2951_v17 = vadd.f32 %v11853_v30, %v10269_v12  ;;  %v11854_v23 = vld [vmem:[#allocation77_spill] sm:$0xff]  ;;  %v11855_v60 = vld [vmem:[#allocation78_spill] sm:$0xff] }
 0x21a   :  { %v3348_v39 = vpop.f32.mrf.mxu0  ;;  %v10390_v63 = vadd.f32 %v11843_v24, %v11842_v40  ;;  %11847 = vst [vmem:[#allocation15_spill] sm:$0xff] %v10397_v47  ;;  %v2949_v40 = vadd.f32 %v11850_v29, %v10259_v55  ;;  %v2954_v45 = vadd.f32 %v11854_v23, %v10273_v32  ;;  %v2953_v55 = vadd.f32 %v11855_v60, %v10276_v46  ;;  %v10417_v47 = vpop.f32.mrf.mxu1  ;;  %v11859_v30 = vld [vmem:[#allocation83_spill] sm:$0xff] }
 0x21b   :  { %v3547_v52 = vmul.f32 %v10360_v13, %v3508_v33  ;;  %v3507_v16 = vadd.f32 %v3348_v39, %v3227_v26  ;;  %v2952_v26 = vadd.f32 %v11852_v34, %v10263_v0  ;;  %v11858_v34 = vld [vmem:[#allocation81_spill] sm:$0xff]  ;;  %v2958_v46 = vadd.f32 %v11859_v30, %v10289_v5  ;;  %v11860_v60 = vld [vmem:[#allocation79_spill] sm:$0xff] }
 0x21c   :  { %11844 = vst [vmem:[#allocation14_spill] sm:$0xff] %v10390_v63  ;;  %v7622_v24 = vpop.f32.mrf.mxu0  ;;  %v2955_v32 = vadd.f32 %v11858_v34, %v10285_v43  ;;  %v3235_v43 = vadd.f32 %v10151_v37, %v2953_v55  ;;  %v7599_v63 = vpop.f32.mrf.mxu1 }
 0x21d   :  { %v3586_v61 = vadd.f32 %v10380_v22, %v3547_v52  ;;  %v3546_v33 = vmul.f32 %v10360_v13, %v3507_v16  ;;  %v3510_v39 = vadd.f32 %v7622_v24, %v3230_v11  ;;  %v11856_v16 = vld [vmem:[#allocation76_spill] sm:$0xff]  ;;  %v10445_v37 = vadd.f32 %v10169_v7, %v2958_v46  ;;  %v11867_v7 = vld [vmem:[#allocation89_spill] sm:$0xff] }
 0x21e   :  { %v3358_v29 = vpop.f32.mrf.mxu0  ;;  %v3231_v0 = vadd.f32 %v11856_v16, %v2949_v40  ;;  %v11857_v24 = vld [vmem:[#allocation80_spill] sm:$0xff]  ;;  %v3234_v40 = vadd.f32 %v11860_v60, %v2952_v26  ;;  %v10440_v26 = vadd.f32 %v10163_v54, %v2955_v32  ;;  %v11865_v54 = vld [vmem:[#allocation87_spill] sm:$0xff]  ;;  %v2961_v46 = vadd.f32 %v11867_v7, %v10307_v28 }
 0x21f   :  { %v3618_v58 = vmax.f32 %v3586_v61, 0.0  ;;  %v3585_v20 = vadd.f32 %v10380_v22, %v3546_v33  ;;  %v3549_v11 = vmul.f32 %v10360_v13, %v3510_v39  ;;  %v3509_v52 = vadd.f32 %v3358_v29, %v3229_v53  ;;  %v11861_v29 = vld [vmem:[#allocation82_spill] sm:$0xff] }
 0x220   :  { %v2956_v12 = vadd.f32 %v11857_v24, %v10280_v57  ;;  %v7625_v23 = vpop.f32.mrf.mxu0  ;;  %v3233_v16 = vadd.f32 %v11861_v29, %v2951_v17  ;;  %v11862_v57 = vld [vmem:[#allocation85_spill] sm:$0xff]  ;;  %v11863_v17 = vld [vmem:[#allocation84_spill] sm:$0xff]  ;;  %v2959_v32 = vadd.f32 %v11865_v54, %v10300_v18  ;;  %v11868_v18 = vld [vmem:[#allocation90_spill] sm:$0xff] }
 0x221   :  { %3704 = vst.msk [vmem:[#allocation4 + $0x9] sm:$0xff] %vm29_vm1, %v3618_v58  ;;  %v3617_v61 = vmax.f32 %v3585_v20, 0.0  ;;  %v3588_v33 = vadd.f32 %v10380_v22, %v3549_v11  ;;  %v3548_v39 = vmul.f32 %v10360_v13, %v3509_v52  ;;  %v3512_v53 = vadd.f32 %v7625_v23, %v3232_v1 }
 0x222   :  { %v3236_v24 = vadd.f32 %v11862_v57, %v2954_v45  ;;  %v3368_v34 = vpop.f32.mrf.mxu0  ;;  %v3238_v1 = vadd.f32 %v10157_v27, %v2956_v12  ;;  %v2957_v45 = vadd.f32 %v11863_v17, %v10292_v19  ;;  %v11864_v27 = vld [vmem:[#allocation86_spill] sm:$0xff]  ;;  %v11866_v19 = vld [vmem:[#allocation88_spill] sm:$0xff]  ;;  %v11869_v57 = vld [vmem:[#allocation91_spill] sm:$0xff] }
 0x223   :  { %3703 = vst.msk [vmem:[#allocation4 + $0x1] sm:$0xff] %vm29_vm1, %v3617_v61  ;;  %v3620_v5 = vmax.f32 %v3588_v33, 0.0  ;;  %v3587_v58 = vadd.f32 %v10380_v22, %v3548_v39  ;;  %v3551_v20 = vmul.f32 %v10360_v13, %v3512_v53  ;;  %v3511_v11 = vadd.f32 %v3368_v34, %v3231_v0  ;;  %v10458_v39 = vpop.f32.mrf.mxu1  ;;  %v11870_v34 = vld [vmem:[#allocation92_spill] sm:$0xff] }
 0x224   :  { %v7628_v55 = vpop.f32.mrf.mxu0  ;;  %v2960_v12 = vadd.f32 %v11864_v27, %v10297_v42  ;;  %v2962_v61 = vadd.f32 %v11866_v19, %v10304_v3  ;;  %v10464_v29 = vadd.f32 %v10204_v15, %v2957_v45  ;;  %v2964_v3 = vadd.f32 %v11868_v18, %v10313_v21 }
 0x225   :  { %3709 = vst.msk [vmem:[#allocation5 + $0x21] sm:$0xff] %vm29_vm1, %v3620_v5  ;;  %v3619_v52 = vmax.f32 %v3587_v58, 0.0  ;;  %v3590_v30 = vadd.f32 %v10380_v22, %v3551_v20  ;;  %v3550_v23 = vmul.f32 %v10360_v13, %v3511_v11  ;;  %v3514_v0 = vadd.f32 %v7628_v55, %v3234_v40  ;;  %v10487_v55 = vpop.f32.mrf.mxu1 }
 0x226   :  { %v3378_v33 = vpop.f32.mrf.mxu0  ;;  %v2963_v28 = vadd.f32 %v11869_v57, %v10316_v56  ;;  %v2966_v5 = vadd.f32 %v11870_v34, %v10324_v62  ;;  %v10476_v15 = vadd.f32 %v10232_v9, %v2960_v12  ;;  %v10479_v21 = vadd.f32 %v10266_v36, %v2959_v32 }
 0x227   :  { %3708 = vst.msk [vmem:[#allocation5 + $0x19] sm:$0xff] %vm29_vm1, %v3619_v52  ;;  %v3622_v53 = vmax.f32 %v3590_v30, 0.0  ;;  %v3589_v60 = vadd.f32 %v10380_v22, %v3550_v23  ;;  %v3553_v40 = vmul.f32 %v10360_v13, %v3514_v0  ;;  %v3513_v42 = vadd.f32 %v3378_v33, %v3233_v16  ;;  %v11871_v0 = vld [vmem:[#allocation93_spill] sm:$0xff] }
 0x228   :  { %v7631_v58 = vpop.f32.mrf.mxu0  ;;  %v10482_v56 = vadd.f32 %v10320_v4, %v2962_v61  ;;  %v10485_v62 = vadd.f32 %v10349_v6, %v2961_v46  ;;  %v10497_v4 = vadd.f32 %v10393_v38, %v2964_v3  ;;  %v10500_v6 = vadd.f32 %v10417_v47, %v2963_v28 }
 0x229   :  { %3714 = vst.msk [vmem:[#allocation4 + $0x21] sm:$0xff] %vm29_vm1, %v3622_v53  ;;  %v3621_v20 = vmax.f32 %v3589_v60, 0.0  ;;  %v3592_v11 = vadd.f32 %v10380_v22, %v3553_v40  ;;  %v3552_v16 = vmul.f32 %v10360_v13, %v3513_v42  ;;  %v3516_v17 = vadd.f32 %v7631_v58, %v3236_v24  ;;  %v10515_v60 = vpop.f32.mrf.mxu1 }
 0x22a   :  { %v3388_v45 = vpop.f32.mrf.mxu0  ;;  %v10492_v23 = vld [vmem:[#allocation4] sm:$0xff]  ;;  %v10494_v36 = vld [vmem:[#allocation4 + $0x8] sm:$0xff]  ;;  %v2965_v27 = vadd.f32 %v11871_v0, %v10330_v51  ;;  %v10504_v12 = vadd.f32 %v7599_v63, %v2966_v5 }
 0x22b   :  { %3713 = vst.msk [vmem:[#allocation4 + $0x19] sm:$0xff] %vm29_vm1, %v3621_v20  ;;  %v3624_v52 = vmax.f32 %v3592_v11, 0.0  ;;  %v3591_v24 = vadd.f32 %v10380_v22, %v3552_v16  ;;  %v3555_v9 = vmul.f32 %v10360_v13, %v3516_v17  ;;  %v3515_v30 = vadd.f32 %v3388_v45, %v3235_v43 }
 0x22c   :  { %v7634_v54 = vpop.f32.mrf.mxu0  ;;  %v3771_v32 = vld [vmem:[#allocation5 + $0x28] sm:$0x3]  ;;  %v4921_v51 = vrot.slane %v10492_v23, 2  ;;  %v4922_v63 = vrot.slane %v10494_v36, 2 }
 0x22d   :  { %3719 = vst.msk [vmem:[#allocation5 + $0x39] sm:$0xff] %vm29_vm1, %v3624_v52  ;;  %v3623_v43 = vmax.f32 %v3591_v24, 0.0  ;;  %v3594_v19 = vadd.f32 %v10380_v22, %v3555_v9  ;;  %v3554_v61 = vmul.f32 %v10360_v13, %v3515_v30  ;;  %v3518_v7 = vadd.f32 %v7634_v54, %v3238_v1  ;;  %v10541_v9 = vpop.f32.mrf.mxu1 }
 0x22e   :  { %v3398_v38 = vpop.f32.mrf.mxu0  ;;  %v10509_v46 = vld [vmem:[#allocation5 + $0x18] sm:$0xff]  ;;  %v10511_v47 = vld [vmem:[#allocation5 + $0x20] sm:$0xff]  ;;  %v3829_v33 = vrot.slane %v3771_v32, 1  ;;  %v4231_v53 = vrot.slane %v3771_v32, 2  ;;  %v10551_v32 = vld [vmem:[#allocation4 + $0x10] sm:$0x3] }
 0x22f   :  { %3718 = vst.msk [vmem:[#allocation5 + $0x31] sm:$0xff] %vm29_vm1, %v3623_v43  ;;  %v3626_v40 = vmax.f32 %v3594_v19, 0.0  ;;  %v3593_v42 = vadd.f32 %v10380_v22, %v3554_v61  ;;  %v3557_v1 = vmul.f32 %v10360_v13, %v3518_v7  ;;  %v3517_v18 = vadd.f32 %v3398_v38, %v10440_v26 }
 0x230   :  { %v7637_v3 = vpop.f32.mrf.mxu0  ;;  %v3826_v57 = vrot.slane %v10509_v46, 1  ;;  %v3827_v28 = vrot.slane %v10511_v47, 1  ;;  %v4228_v34 = vrot.slane %v10509_v46, 2  ;;  %v4229_v5 = vrot.slane %v10511_v47, 2 }
 0x231   :  { %3724 = vst.msk [vmem:[#allocation4 + $0x39] sm:$0xff] %vm29_vm1, %v3626_v40  ;;  %v3625_v58 = vmax.f32 %v3593_v42, 0.0  ;;  %v3596_v20 = vadd.f32 %v10380_v22, %v3557_v1  ;;  %v3556_v11 = vmul.f32 %v10360_v13, %v3517_v18  ;;  %v3520_v16 = vadd.f32 %v7637_v3, %v10445_v37  ;;  %v10580_v18 = vpop.f32.mrf.mxu1 }
 0x232   :  { %v3408_v17 = vpop.f32.mrf.mxu0  ;;  %v10530_v26 = vsel %vm442_vm3, %v3826_v57, %v3827_v28  ;;  %v10533_v45 = vsel %vm1110_vm4, %v4228_v34, %v4229_v5  ;;  %v10536_v52 = vsel %vm442_vm3, %v3827_v28, %v3829_v33  ;;  %v10539_v24 = vsel %vm1110_vm4, %v4229_v5, %v4231_v53 }
 0x233   :  { %11872 = vst [vmem:[#allocation16_spill] sm:$0xff] %v10530_v26  ;;  %11873 = vst [vmem:[#allocation17_spill] sm:$0xff] %v10536_v52  ;;  %v3628_v30 = vmax.f32 %v3596_v20, 0.0  ;;  %v3595_v37 = vadd.f32 %v10380_v22, %v3556_v11  ;;  %v3559_v0 = vmul.f32 %v10360_v13, %v3520_v16  ;;  %v3519_v54 = vadd.f32 %v3408_v17, %v10464_v29 }
 0x234   :  { %3723 = vst.msk [vmem:[#allocation4 + $0x31] sm:$0xff] %vm29_vm1, %v3625_v58  ;;  %7670 = vmatprep.mubr.msk.f32.mxu1 %vm29_vm1, %v10530_v26  ;;  %7722 = vmatprep.mubr.msk.f32.mxu0 %vm29_vm1, %v10533_v45  ;;  %v2968_v43 = vadd.f32 %v10177_v49, %v10335_v14  ;;  %v10556_v19 = vadd.f32 %v10458_v39, %v2965_v27  ;;  %v7640_v29 = vpop.f32.mrf.mxu0  ;;  %v3774_v61 = vld [vmem:[#allocation5 + $0x40] sm:$0x3]  ;;  %v4924_v1 = vrot.slane %v10551_v32, 2 }
 0x235   :  { %7671 = vmatmul.mubr.msk.f32.gmra.mxu1 %vm29_vm1, %v10536_v52  ;;  %7723 = vmatmul.mubr.msk.f32.gmra.mxu0 %vm29_vm1, %v10539_v24  ;;  %v10565_v7 = vsel %vm1110_vm4, %v4921_v51, %v4922_v63  ;;  %3729 = vst.msk [vmem:[#allocation5 + $0x51] sm:$0xff] %vm29_vm1, %v3628_v30  ;;  %v3627_v38 = vmax.f32 %v3595_v37, 0.0  ;;  %v3598_v49 = vadd.f32 %v10380_v22, %v3559_v0  ;;  %v3834_v51 = vrot.slane %v3774_v61, 1 }
 0x236   :  { %v3558_v14 = vmul.f32 %v10360_v13, %v3519_v54  ;;  %v3522_v39 = vadd.f32 %v7640_v29, %v10476_v15  ;;  %v10573_v27 = vadd.f32 %v10197_v25, %v10341_v2  ;;  %v3418_v33 = vpop.f32.mrf.mxu0  ;;  %v10575_v53 = vld [vmem:[#allocation5 + $0x30] sm:$0xff]  ;;  %v10577_v40 = vld [vmem:[#allocation5 + $0x38] sm:$0xff]  ;;  %v4236_v42 = vrot.slane %v3774_v61, 2  ;;  %v10606_v29 = vpop.f32.mrf.mxu1 }
 0x237   :  { %3728 = vst.msk [vmem:[#allocation5 + $0x49] sm:$0xff] %vm29_vm1, %v3627_v38  ;;  %v3630_v3 = vmax.f32 %v3598_v49, 0.0  ;;  %v3521_v25 = vadd.f32 %v3418_v33, %v10479_v21  ;;  %v3831_v28 = vrot.slane %v10575_v53, 1  ;;  %v3832_v34 = vrot.slane %v10577_v40, 1 }
 0x238   :  { %v3597_v15 = vadd.f32 %v10380_v22, %v3558_v14  ;;  %v3561_v57 = vmul.f32 %v10360_v13, %v3522_v39  ;;  %v7643_v2 = vpop.f32.mrf.mxu0  ;;  %v4233_v5 = vrot.slane %v10575_v53, 2  ;;  %v4234_v58 = vrot.slane %v10577_v40, 2 }
 0x239   :  { %3734 = vst.msk [vmem:[#allocation4 + $0x51] sm:$0xff] %vm29_vm1, %v3630_v3  ;;  %v3560_v16 = vmul.f32 %v10360_v13, %v3521_v25  ;;  %v3524_v17 = vadd.f32 %v7643_v2, %v10482_v56  ;;  %v10595_v21 = vsel %vm442_vm3, %v3831_v28, %v3832_v34  ;;  %v10601_v0 = vsel %vm442_vm3, %v3832_v34, %v3834_v51  ;;  %v3198_v2 = vpop.f32.mrf.mxu1 }
 0x23a   :  { %v3629_v20 = vmax.f32 %v3597_v15, 0.0  ;;  %v3600_v11 = vadd.f32 %v10380_v22, %v3561_v57  ;;  %v3428_v30 = vpop.f32.mrf.mxu0  ;;  %11874 = vst [vmem:[#allocation31_spill] sm:$0xff] %v10595_v21  ;;  %v10598_v37 = vsel %vm1110_vm4, %v4233_v5, %v4234_v58  ;;  %11875 = vst [vmem:[#allocation35_spill] sm:$0xff] %v10601_v0  ;;  %v10604_v54 = vsel %vm1110_vm4, %v4234_v58, %v4236_v42 }
 0x23b   :  { %v3599_v56 = vadd.f32 %v10380_v22, %v3560_v16  ;;  %v3563_v38 = vmul.f32 %v10360_v13, %v3524_v17  ;;  %v3523_v49 = vadd.f32 %v3428_v30, %v10485_v62  ;;  %7673 = vmatprep.mubr.msk.f32.mxu1 %vm29_vm1, %v10595_v21  ;;  %7725 = vmatprep.mubr.msk.f32.mxu0 %vm29_vm1, %v10598_v37 }
 0x23c   :  { %3733 = vst.msk [vmem:[#allocation4 + $0x49] sm:$0xff] %vm29_vm1, %v3629_v20  ;;  %v3632_v61 = vmax.f32 %v3600_v11, 0.0  ;;  %v3250_v14 = vadd.f32 %v10487_v55, %v2968_v43  ;;  %v2970_v39 = vadd.f32 %v10212_v50, %v10345_v8  ;;  %7674 = vmatmul.mubr.msk.f32.gmra.mxu1 %vm29_vm1, %v10601_v0  ;;  %7726 = vmatmul.mubr.msk.f32.gmra.mxu0 %vm29_vm1, %v10604_v54  ;;  %v7646_v33 = vpop.f32.mrf.mxu0  ;;  %v3777_v51 = vld [vmem:[#allocation5 + $0x58] sm:$0x3] }
 0x23d   :  { %v10626_v62 = vsel %vm1110_vm4, %v4922_v63, %v4924_v1  ;;  %v3631_v42 = vmax.f32 %v3599_v56, 0.0  ;;  %v3602_v55 = vadd.f32 %v10380_v22, %v3563_v38  ;;  %v3562_v50 = vmul.f32 %v10360_v13, %v3523_v49  ;;  %v7611_v49 = vpop.f32.mrf.mxu1 }
 0x23e   :  { %3739 = vst.msk [vmem:[#allocation5 + $0x69] sm:$0xff] %vm29_vm1, %v3632_v61  ;;  %v3526_v8 = vadd.f32 %v7646_v33, %v10497_v4  ;;  %v2969_v43 = vadd.f32 %v10226_v35, %v10352_v10  ;;  %v2972_v3 = vadd.f32 %v10242_v48, %v10372_v59  ;;  %v3438_v15 = vpop.f32.mrf.mxu0  ;;  %v10636_v57 = vld [vmem:[#allocation5 + $0x48] sm:$0xff]  ;;  %v10638_v63 = vld [vmem:[#allocation5 + $0x50] sm:$0xff]  ;;  %v3839_v1 = vrot.slane %v3777_v51, 1 }
 0x23f   :  { %v4241_v25 = vrot.slane %v3777_v51, 2  ;;  %3738 = vst.msk [vmem:[#allocation5 + $0x61] sm:$0xff] %vm29_vm1, %v3631_v42  ;;  %v3634_v28 = vmax.f32 %v3602_v55, 0.0  ;;  %v3601_v34 = vadd.f32 %v10380_v22, %v3562_v50  ;;  %v3525_v35 = vadd.f32 %v3438_v15, %v10500_v6  ;;  %v11878_v55 = vld [vmem:[#allocation64_spill] sm:$0xff]  ;;  %v11879_v50 = vld [vmem:[#allocation59_spill] sm:$0xff] }
 0x240   :  { %v3565_v4 = vmul.f32 %v10360_v13, %v3526_v8  ;;  %v7649_v10 = vpop.f32.mrf.mxu0  ;;  %v3836_v48 = vrot.slane %v10636_v57, 1  ;;  %v3837_v59 = vrot.slane %v10638_v63, 1  ;;  %v4238_v5 = vrot.slane %v10636_v57, 2 }
 0x241   :  { %v4239_v58 = vrot.slane %v10638_v63, 2  ;;  %3706 = vst.msk [vmem:[#allocation4 + $0x69] sm:$0xff] %vm29_vm1, %v3634_v28  ;;  %v3633_v20 = vmax.f32 %v3601_v34, 0.0  ;;  %v3564_v16 = vmul.f32 %v10360_v13, %v3525_v35  ;;  %v3528_v17 = vadd.f32 %v7649_v10, %v10504_v12  ;;  %v11880_v35 = vld [vmem:[#allocation9_spill] sm:$0xff] }
 0x242   :  { %v3604_v11 = vadd.f32 %v10380_v22, %v3565_v4  ;;  %v3448_v30 = vpop.f32.mrf.mxu0  ;;  %v10653_v6 = vsel %vm442_vm3, %v3836_v48, %v3837_v59  ;;  %v10659_v56 = vsel %vm442_vm3, %v3837_v59, %v3839_v1  ;;  %v2702_v8 = vadd.f32 %v11879_v50, %v11878_v55 }
 0x243   :  { %11876 = vst [vmem:[#allocation21_spill] sm:$0xff] %v10653_v6  ;;  %v10656_v61 = vsel %vm1110_vm4, %v4238_v5, %v4239_v58  ;;  %11877 = vst [vmem:[#allocation18_spill] sm:$0xff] %v10659_v56  ;;  %v10662_v38 = vsel %vm1110_vm4, %v4239_v58, %v4241_v25  ;;  %v3603_v51 = vadd.f32 %v10380_v22, %v3564_v16  ;;  %7676 = vmatprep.mubr.msk.f32.mxu1 %vm29_vm1, %v10653_v6  ;;  %v3208_v5 = vpop.f32.mrf.mxu1  ;;  %v10697_v16 = vld [vmem:[#allocation4 + $0x30] sm:$0xff] }
 0x244   :  { %3705 = vst.msk [vmem:[#allocation4 + $0x61] sm:$0xff] %vm29_vm1, %v3633_v20  ;;  %v3636_v33 = vmax.f32 %v3604_v11, 0.0  ;;  %v3567_v12 = vmul.f32 %v10360_v13, %v3528_v17  ;;  %v3527_v42 = vadd.f32 %v3448_v30, %v10556_v19  ;;  %7728 = vmatprep.mubr.msk.f32.mxu0 %vm29_vm1, %v10656_v61  ;;  %v3249_v15 = vadd.f32 %v10515_v60, %v10573_v27  ;;  %v7652_v19 = vpop.f32.mrf.mxu0  ;;  %v11881_v60 = vld [vmem:[#allocation10_spill] sm:$0xff]  ;;  %v10699_v17 = vld [vmem:[#allocation4 + $0x38] sm:$0xff] }
 0x245   :  { %v2971_v1 = vadd.f32 %v10254_v41, %v10375_v44  ;;  %7677 = vmatmul.mubr.msk.f32.gmra.mxu1 %vm29_vm1, %v10659_v56  ;;  %7729 = vmatmul.mubr.msk.f32.gmra.mxu0 %vm29_vm1, %v10662_v38  ;;  %v3635_v25 = vmax.f32 %v3603_v51, 0.0  ;;  %v3530_v4 = vadd.f32 %v7652_v19, %v3250_v14  ;;  %v11882_v41 = vld [vmem:[#allocation62_spill] sm:$0xff]  ;;  %v3252_v27 = vadd.f32 %v10541_v9, %v2970_v39  ;;  %v11887_v51 = vld [vmem:[#allocation12_spill] sm:$0xff] }
 0x246   :  { %3711 = vst.msk [vmem:[#allocation5 + $0x99] sm:$0xff] %vm29_vm1, %v3636_v33  ;;  %v3606_v28 = vadd.f32 %v10380_v22, %v3567_v12  ;;  %v3566_v34 = vmul.f32 %v10360_v13, %v3527_v42  ;;  %7679 = vmatprep.mubr.msk.f32.mxu1 %vm29_vm1, %v11880_v35  ;;  %7731 = vmatprep.mubr.msk.f32.mxu0 %vm29_vm1, %v11881_v60  ;;  %v3458_v59 = vpop.f32.mrf.mxu0  ;;  %v11883_v9 = vld [vmem:[#allocation14_spill] sm:$0xff]  ;;  %v11888_v12 = vld [vmem:[#allocation13_spill] sm:$0xff]  ;;  %v11889_v19 = vld [vmem:[#allocation8_spill] sm:$0xff] }
 0x247   :  { %v2701_v44 = vadd.f32 %v11882_v41, %v10401_v31  ;;  %v3251_v10 = vadd.f32 %v10580_v18, %v2969_v43  ;;  %v3254_v48 = vadd.f32 %v10606_v29, %v2972_v3  ;;  %3710 = vst.msk [vmem:[#allocation5 + $0x91] sm:$0xff] %vm29_vm1, %v3635_v25  ;;  %v3569_v20 = vmul.f32 %v10360_v13, %v3530_v4  ;;  %v10701_v31 = vld [vmem:[#allocation4 + $0x40] sm:$0x3]  ;;  %v11884_v18 = vld [vmem:[#allocation6_spill] sm:$0xff]  ;;  %v11885_v43 = vld [vmem:[#allocation15_spill] sm:$0xff]  ;;  %v7614_v4 = vpop.f32.mrf.mxu1 }
 0x248   :  { %v3638_v14 = vmax.f32 %v3606_v28, 0.0  ;;  %v3605_v58 = vadd.f32 %v10380_v22, %v3566_v34  ;;  %v3529_v11 = vadd.f32 %v3458_v59, %v3249_v15  ;;  %v2974_v39 = vadd.f32 %v11884_v18, %v11883_v9  ;;  %v11886_v3 = vld [vmem:[#allocation7_spill] sm:$0xff]  ;;  %v7655_v33 = vpop.f32.mrf.mxu0 }
 0x249   :  { %v3253_v29 = vadd.f32 %v3198_v2, %v2971_v1  ;;  %v2973_v30 = vadd.f32 %v11886_v3, %v11885_v43  ;;  %7680 = vmatmul.mubr.msk.f32.gmra.mxu1 %vm29_vm1, %v11887_v51  ;;  %7732 = vmatmul.mubr.msk.f32.gmra.mxu0 %vm29_vm1, %v11888_v12  ;;  %v3608_v55 = vadd.f32 %v10380_v22, %v3569_v20  ;;  %v4931_v25 = vrot.slane %v10697_v16, 2 }
 0x24a   :  { %3716 = vst.msk [vmem:[#allocation4 + $0x81] sm:$0xff] %vm29_vm1, %v3638_v14  ;;  %v3637_v42 = vmax.f32 %v3605_v58, 0.0  ;;  %v3568_v50 = vmul.f32 %v10360_v13, %v3529_v11  ;;  %v3532_v15 = vadd.f32 %v7655_v33, %v3252_v27  ;;  %v2976_v2 = vadd.f32 %v11889_v19, %v2702_v8  ;;  %v3468_v1 = vpop.f32.mrf.mxu0  ;;  %v11890_v33 = vld [vmem:[#allocation11_spill] sm:$0xff] }
 0x24b   :  { %v4932_v28 = vrot.slane %v10699_v17, 2  ;;  %v4934_v34 = vrot.slane %v10701_v31, 2  ;;  %v3640_v35 = vmax.f32 %v3608_v55, 0.0  ;;  %v3531_v59 = vadd.f32 %v3468_v1, %v3251_v10 }
 0x24c   :  { %3715 = vst.msk [vmem:[#allocation4 + $0x79] sm:$0xff] %vm29_vm1, %v3637_v42  ;;  %v3607_v60 = vadd.f32 %v10380_v22, %v3568_v50  ;;  %v3571_v41 = vmul.f32 %v10360_v13, %v3532_v15  ;;  %v3256_v14 = vadd.f32 %v7611_v49, %v2974_v39  ;;  %v3255_v27 = vadd.f32 %v3208_v5, %v2973_v30  ;;  %v7658_v58 = vpop.f32.mrf.mxu0 }
 0x24d   :  { %v3786_v8 = vld [vmem:[#allocation5 + $0xa0] sm:$0x3]  ;;  %v10722_v20 = vsel %vm1110_vm4, %v4931_v25, %v4932_v28  ;;  %v10725_v11 = vsel %vm1110_vm4, %v4932_v28, %v4934_v34  ;;  %3721 = vst.msk [vmem:[#allocation5 + $0xb1] sm:$0xff] %vm29_vm1, %v3640_v35  ;;  %v3570_v43 = vmul.f32 %v10360_v13, %v3531_v59  ;;  %v3534_v3 = vadd.f32 %v7658_v58, %v3254_v48  ;;  %v3218_v25 = vpop.f32.mrf.mxu1 }
 0x24e   :  { %v3639_v9 = vmax.f32 %v3607_v60, 0.0  ;;  %v3610_v18 = vadd.f32 %v10380_v22, %v3571_v41  ;;  %v2975_v10 = vadd.f32 %v11890_v33, %v2701_v44  ;;  %v3258_v49 = vadd.f32 %v7614_v4, %v2976_v2  ;;  %v3478_v5 = vpop.f32.mrf.mxu0  ;;  %v10731_v39 = vld [vmem:[#allocation5 + $0x90] sm:$0xff]  ;;  %v10733_v30 = vld [vmem:[#allocation5 + $0x98] sm:$0xff] }
 0x24f   :  { %v3849_v51 = vrot.slane %v3786_v8, 1  ;;  %v4251_v12 = vrot.slane %v3786_v8, 2  ;;  %v3609_v55 = vadd.f32 %v10380_v22, %v3570_v43  ;;  %v3573_v50 = vmul.f32 %v10360_v13, %v3534_v3 }
 0x250   :  { %3720 = vst.msk [vmem:[#allocation5 + $0xa9] sm:$0xff] %vm29_vm1, %v3639_v9  ;;  %v3642_v42 = vmax.f32 %v3610_v18, 0.0  ;;  %v3533_v15 = vadd.f32 %v3478_v5, %v3253_v29  ;;  %v7661_v19 = vpop.f32.mrf.mxu0  ;;  %v3846_v48 = vrot.slane %v10731_v39, 1  ;;  %v3847_v44 = vrot.slane %v10733_v30, 1 }
 0x251   :  { %v4248_v2 = vrot.slane %v10731_v39, 2  ;;  %v4249_v1 = vrot.slane %v10733_v30, 2  ;;  %v3641_v28 = vmax.f32 %v3609_v55, 0.0  ;;  %v3612_v34 = vadd.f32 %v10380_v22, %v3573_v50 }
 0x252   :  { %3726 = vst.msk [vmem:[#allocation4 + $0x99] sm:$0xff] %vm29_vm1, %v3642_v42  ;;  %v3572_v4 = vmul.f32 %v10360_v13, %v3533_v15  ;;  %v3536_v35 = vadd.f32 %v7661_v19, %v3256_v14  ;;  %v3488_v60 = vpop.f32.mrf.mxu0  ;;  %v10746_v29 = vsel %vm442_vm3, %v3846_v48, %v3847_v44  ;;  %v10752_v59 = vsel %vm442_vm3, %v3847_v44, %v3849_v51  ;;  %v10775_v19 = vld [vmem:[#allocation4 + $0x48] sm:$0xff] }
 0x253   :  { %11891 = vst [vmem:[#allocation19_spill] sm:$0xff] %v10746_v29  ;;  %v10749_v41 = vsel %vm1110_vm4, %v4248_v2, %v4249_v1  ;;  %11893 = vst [vmem:[#allocation20_spill] sm:$0xff] %v10752_v59  ;;  %v10755_v58 = vsel %vm1110_vm4, %v4249_v1, %v4251_v12  ;;  %v3644_v8 = vmax.f32 %v3612_v34, 0.0  ;;  %v3535_v18 = vadd.f32 %v3488_v60, %v3255_v27 }
 0x254   :  { %11892 = vst [vmem:[#allocation24_spill] sm:$0xff] %v10749_v41  ;;  %11894 = vst [vmem:[#allocation22_spill] sm:$0xff] %v10755_v58  ;;  %v3611_v9 = vadd.f32 %v10380_v22, %v3572_v4  ;;  %v3575_v14 = vmul.f32 %v10360_v13, %v3536_v35  ;;  %7682 = vmatprep.mubr.msk.f32.mxu1 %vm29_vm1, %v10746_v29  ;;  %7734 = vmatprep.mubr.msk.f32.mxu0 %vm29_vm1, %v10749_v41  ;;  %v7664_v3 = vpop.f32.mrf.mxu0  ;;  %v3789_v33 = vld [vmem:[#allocation5 + $0xb8] sm:$0x3] }
 0x255   :  { %3725 = vst.msk [vmem:[#allocation4 + $0x91] sm:$0xff] %vm29_vm1, %v3641_v28  ;;  %v3257_v43 = vadd.f32 %v3218_v25, %v2975_v10  ;;  %7683 = vmatmul.mubr.msk.f32.gmra.mxu1 %vm29_vm1, %v10752_v59  ;;  %7735 = vmatmul.mubr.msk.f32.gmra.mxu0 %vm29_vm1, %v10755_v58  ;;  %3731 = vst.msk [vmem:[#allocation5 + $0xc9] sm:$0xff] %vm29_vm1, %v3644_v8  ;;  %v3574_v51 = vmul.f32 %v10360_v13, %v3535_v18  ;;  %v3854_v50 = vrot.slane %v3789_v33, 1  ;;  %v10787_v8 = vld [vmem:[#allocation4 + $0x50] sm:$0xff]  ;;  %v10905_v58 = vld [vmem:[#allocation4 + $0x28] sm:$0x3] }
 0x256   :  { %v3643_v5 = vmax.f32 %v3611_v9, 0.0  ;;  %v3614_v27 = vadd.f32 %v10380_v22, %v3575_v14  ;;  %v3538_v12 = vadd.f32 %v7664_v3, %v3258_v49  ;;  %v3498_v42 = vpop.f32.mrf.mxu0  ;;  %v4256_v15 = vrot.slane %v3789_v33, 2  ;;  %v10789_v9 = vld [vmem:[#allocation4 + $0x58] sm:$0x3] }
 0x257   :  { %v10771_v55 = vld [vmem:[#allocation5 + $0xa8] sm:$0xff]  ;;  %v10773_v10 = vld [vmem:[#allocation5 + $0xb0] sm:$0xff]  ;;  %v3613_v44 = vadd.f32 %v10380_v22, %v3574_v51  ;;  %v3537_v1 = vadd.f32 %v3498_v42, %v3257_v43  ;;  %v4936_v14 = vrot.slane %v10775_v19, 2  ;;  %v4683_v51 = vrot.slane %v10492_v23, 1 }
 0x258   :  { %3730 = vst.msk [vmem:[#allocation5 + $0xc1] sm:$0xff] %vm29_vm1, %v3643_v5  ;;  %v3646_v48 = vmax.f32 %v3614_v27, 0.0  ;;  %v3577_v2 = vmul.f32 %v10360_v13, %v3538_v12  ;;  %v3851_v25 = vrot.slane %v10771_v55, 1  ;;  %v3852_v49 = vrot.slane %v10773_v10, 1 }
 0x259   :  { %v4253_v28 = vrot.slane %v10771_v55, 2  ;;  %v4254_v34 = vrot.slane %v10773_v10, 2  ;;  %v3645_v4 = vmax.f32 %v3613_v44, 0.0  ;;  %v3576_v60 = vmul.f32 %v10360_v13, %v3537_v1  ;;  %v10822_v44 = vld [vmem:[#allocation4 + $0x68] sm:$0xff]  ;;  %v10870_v52 = vld [vmem:[#allocation4 + $0xa0] sm:$0x3] }
 0x25a   :  { %3736 = vst.msk [vmem:[#allocation4 + $0xb1] sm:$0xff] %vm29_vm1, %v3646_v48  ;;  %v3616_v35 = vadd.f32 %v10380_v22, %v3577_v2  ;;  %v10793_v18 = vsel %vm442_vm3, %v3851_v25, %v3852_v49  ;;  %v10799_v3 = vsel %vm442_vm3, %v3852_v49, %v3854_v50  ;;  %v4686_v12 = vrot.slane %v10551_v32, 1  ;;  %v10820_v48 = vld [vmem:[#allocation4 + $0x60] sm:$0xff]  ;;  %v10824_v2 = vld [vmem:[#allocation4 + $0x70] sm:$0x3] }
 0x25b   :  { %11895 = vst [vmem:[#allocation27_spill] sm:$0xff] %v10793_v18  ;;  %v10796_v43 = vsel %vm1110_vm4, %v4253_v28, %v4254_v34  ;;  %11897 = vst [vmem:[#allocation25_spill] sm:$0xff] %v10799_v3  ;;  %v10802_v33 = vsel %vm1110_vm4, %v4254_v34, %v4256_v15  ;;  %v3615_v5 = vadd.f32 %v10380_v22, %v3576_v60  ;;  %7685 = vmatprep.mubr.msk.f32.mxu1 %vm29_vm1, %v10793_v18  ;;  %v10830_v28 = vld [vmem:[#allocation4 + $0x18] sm:$0xff]  ;;  %v10847_v18 = vld [vmem:[#allocation4 + $0x80] sm:$0xff] }
 0x25c   :  { %11896 = vst [vmem:[#allocation23_spill] sm:$0xff] %v10796_v43  ;;  %11898 = vst [vmem:[#allocation30_spill] sm:$0xff] %v10802_v33  ;;  %v3648_v13 = vmax.f32 %v3616_v35, 0.0  ;;  %7737 = vmatprep.mubr.msk.f32.mxu0 %vm29_vm1, %v10796_v43  ;;  %7686 = vmatmul.mubr.msk.f32.gmra.mxu1 %vm29_vm1, %v10799_v3  ;;  %v3792_v27 = vld [vmem:[#allocation5 + $0xd0] sm:$0x3]  ;;  %v4937_v42 = vrot.slane %v10787_v8, 2 }
 0x25d   :  { %3735 = vst.msk [vmem:[#allocation4 + $0xa9] sm:$0xff] %vm29_vm1, %v3645_v4  ;;  %7738 = vmatmul.mubr.msk.f32.gmra.mxu0 %vm29_vm1, %v10802_v33  ;;  %v4939_v22 = vrot.slane %v10789_v9, 2  ;;  %v3647_v50 = vmax.f32 %v3615_v5, 0.0  ;;  %v4684_v15 = vrot.slane %v10494_v36, 1  ;;  %v3859_v32 = vrot.slane %v3792_v27, 1  ;;  %v10843_v3 = vld [vmem:[#allocation4 + $0x20] sm:$0xff] }
 0x25e   :  { %3741 = vst.msk [vmem:[#allocation5 + $0xe1] sm:$0xff] %vm29_vm1, %v3648_v13  ;;  %v4261_v49 = vrot.slane %v3792_v27, 2  ;;  %v10833_v34 = vsel %vm1110_vm4, %v4936_v14, %v4937_v42  ;;  %v10845_v27 = vld [vmem:[#allocation4 + $0x78] sm:$0xff]  ;;  %v10849_v14 = vld [vmem:[#allocation4 + $0x88] sm:$0x3]  ;;  %v10866_v0 = vld [vmem:[#allocation4 + $0x90] sm:$0xff] }
 0x25f   :  { %v10826_v1 = vld [vmem:[#allocation5 + $0xc0] sm:$0xff]  ;;  %v10828_v25 = vld [vmem:[#allocation5 + $0xc8] sm:$0xff]  ;;  %v10836_v4 = vsel %vm1110_vm4, %v4937_v42, %v4939_v22  ;;  %3740 = vst.msk [vmem:[#allocation5 + $0xd9] sm:$0xff] %vm29_vm1, %v3647_v50  ;;  %v4941_v42 = vrot.slane %v10820_v48, 2  ;;  %v4942_v22 = vrot.slane %v10822_v44, 2  ;;  %v4944_v50 = vrot.slane %v10824_v2, 2 }
 0x260   :  { %v3856_v35 = vrot.slane %v10826_v1, 1  ;;  %v3857_v60 = vrot.slane %v10828_v25, 1  ;;  %v4258_v13 = vrot.slane %v10826_v1, 2  ;;  %v4259_v5 = vrot.slane %v10828_v25, 2  ;;  %v10868_v21 = vld [vmem:[#allocation4 + $0x98] sm:$0xff] }
 0x261   :  { %v4687_v43 = vsel %vm442_vm3, %v4684_v15, %v4686_v12 }
 0x262   :  { %v10855_v59 = vsel %vm442_vm3, %v3856_v35, %v3857_v60  ;;  %v10858_v29 = vsel %vm1110_vm4, %v4258_v13, %v4259_v5  ;;  %v10861_v56 = vsel %vm442_vm3, %v3857_v60, %v3859_v32  ;;  %v10864_v6 = vsel %vm1110_vm4, %v4259_v5, %v4261_v49 }
 0x263   :  { %11899 = vst [vmem:[#allocation26_spill] sm:$0xff] %v10855_v59  ;;  %11900 = vst [vmem:[#allocation28_spill] sm:$0xff] %v10858_v29  ;;  %7688 = vmatprep.mubr.msk.f32.mxu1 %vm29_vm1, %v10855_v59  ;;  %7740 = vmatprep.mubr.msk.f32.mxu0 %vm29_vm1, %v10858_v29  ;;  %v4688_v35 = vrot.slane %v10830_v28, 1  ;;  %v10880_v32 = vsel %vm1110_vm4, %v4941_v42, %v4942_v22  ;;  %v10883_v49 = vsel %vm1110_vm4, %v4942_v22, %v4944_v50  ;;  %v10894_v29 = vld [vmem:[#allocation4 + $0xb8] sm:$0x3]  ;;  %v7960_v50 = vld [vmem:[#allocation5] sm:$0xff] }
 0x264   :  { %11901 = vst [vmem:[#allocation34_spill] sm:$0xff] %v10861_v56  ;;  %11902 = vst [vmem:[#allocation29_spill] sm:$0xff] %v10864_v6  ;;  %v10877_v13 = vld [vmem:[#allocation4 + $0xa8] sm:$0xff]  ;;  %v4946_v60 = vrot.slane %v10845_v27, 2  ;;  %7689 = vmatmul.mubr.msk.f32.gmra.mxu1 %vm29_vm1, %v10861_v56  ;;  %7741 = vmatmul.mubr.msk.f32.gmra.mxu0 %vm29_vm1, %v10864_v6  ;;  %v4685_v5 = vsel %vm442_vm3, %v4683_v51, %v4684_v15  ;;  %v4689_v59 = vrot.slane %v10843_v3, 1  ;;  %v10892_v26 = vld [vmem:[#allocation4 + $0xb0] sm:$0xff] }
 0x265   :  { %11903 = vst [vmem:[#allocation32_spill] sm:$0xff] %v10880_v32  ;;  %11904 = vst [vmem:[#allocation33_spill] sm:$0xff] %v10883_v49  ;;  %v4947_v42 = vrot.slane %v10847_v18, 2  ;;  %v4949_v22 = vrot.slane %v10849_v14, 2  ;;  %7771 = vmatprep.mubr.msk.f32.mxu0 %vm29_vm1, %v4685_v5  ;;  %7693 = vmatprep.mubr.msk.f32.mxu1 %vm29_vm1, %v7960_v50  ;;  %v4951_v56 = vrot.slane %v10866_v0, 2  ;;  %v4952_v6 = vrot.slane %v10868_v21, 2 }
 0x266   :  { %v4954_v51 = vrot.slane %v10870_v52, 2  ;;  %v4956_v33 = vrot.slane %v10877_v13, 2  ;;  %v10916_v50 = vld [vmem:[%s11532_s4 + $0x14] sm:$0xf]  ;;  %v4957_v12 = vrot.slane %v10892_v26, 2  ;;  %v4959_v15 = vrot.slane %v10894_v29, 2 }
 0x267   :  { %v10908_v49 = vsel %vm1110_vm4, %v4946_v60, %v4947_v42  ;;  %v10911_v5 = vsel %vm1110_vm4, %v4947_v42, %v4949_v22  ;;  %v10919_v41 = vsel %vm1110_vm4, %v4951_v56, %v4952_v6  ;;  %v7961_v60 = vld [vmem:[#allocation5 + $0x8] sm:$0xff]  ;;  %v4693_v42 = vrot.slane %v10697_v16, 1  ;;  %v7962_v56 = vld [vmem:[%s11532_s4 + $0xc] sm:$0xf] }
 0x268   :  { %v10922_v32 = vsel %vm1110_vm4, %v4952_v6, %v4954_v51  ;;  %7694 = vmatmul.mubr.msk.f32.vlgmr.msra.gmra.mxu1 %vm29_vm1, %v7961_v60  ;;  %7772 = vmatmul.mubr.msk.f32.vlgmr.msra.gmra.mxu0 %vm29_vm1, %v4687_v43  ;;  %v4694_v22 = vrot.slane %v10699_v17, 1  ;;  %v4690_v6 = vsel %vm442_vm3, %v4688_v35, %v4689_v59  ;;  %v4691_v51 = vrot.slane %v10905_v58, 1 }
 0x269   :  { %11905 = vst [vmem:[#allocation36_spill] sm:$0xff] %v10922_v32  ;;  %7744 = vmatpush3.msk.msra.mxu1 %vm589_vm0, %v7962_v56  ;;  %7696 = vmatprep.mubr.msk.f32.mxu1 %vm29_vm1, %v10509_v46  ;;  %v10939_v60 = vsel %vm1110_vm4, %v4956_v33, %v4957_v12  ;;  %v10942_v43 = vsel %vm1110_vm4, %v4957_v12, %v4959_v15  ;;  %v7963_v32 = vld [vmem:[%s11532_s4 + $0x18] sm:$0xf]  ;;  %v10955_v33 = vld [vmem:[%s11532_s4 + $0x20] sm:$0xf]  ;;  %v4699_v12 = vrot.slane %v10787_v8, 1 }
 0x26a   :  { %7774 = vmatprep.mubr.msk.f32.mxu0 %vm29_vm1, %v4690_v6  ;;  %7795 = vmatprep.subr.msk.mxu1 %vm589_vm0, %v10916_v50  ;;  %v4692_v56 = vsel %vm442_vm3, %v4689_v59, %v4691_v51  ;;  %v4695_v35 = vsel %vm442_vm3, %v4693_v42, %v4694_v22  ;;  %v4698_v59 = vrot.slane %v10775_v19, 1  ;;  %v4703_v6 = vrot.slane %v10820_v48, 1 }
 0x26b   :  { %7822 = vmatpush3.msk.msra.mxu0 %vm589_vm0, %v7963_v32  ;;  %v4696_v32 = vrot.slane %v10701_v31, 1  ;;  %v4704_v51 = vrot.slane %v10822_v44, 1  ;;  %v4701_v31 = vrot.slane %v10789_v9, 1  ;;  %v4706_v9 = vrot.slane %v10824_v2, 1 }
 0x26c   :  { %7697 = vmatmul.mubr.msk.f32.gmra.mxu1 %vm29_vm1, %v10511_v47  ;;  %7775 = vmatmul.mubr.msk.f32.gmra.mxu0 %vm29_vm1, %v4692_v56  ;;  %v4700_v42 = vsel %vm442_vm3, %v4698_v59, %v4699_v12  ;;  %v4709_v59 = vrot.slane %v10847_v18, 1  ;;  %v4711_v2 = vrot.slane %v10849_v14, 1  ;;  %v4716_v14 = vrot.slane %v10870_v52, 1  ;;  %v6684_v52 = vld [vmem:[%s11532_s4 + $0x1c] sm:$0xf] }
 0x26d   :  { %7699 = vmatprep.mubr.msk.f32.mxu1 %vm29_vm1, %v10575_v53  ;;  %7777 = vmatprep.mubr.msk.f32.mxu0 %vm29_vm1, %v4695_v35  ;;  %v4697_v15 = vsel %vm442_vm3, %v4694_v22, %v4696_v32  ;;  %v4702_v22 = vsel %vm442_vm3, %v4699_v12, %v4701_v31  ;;  %v4705_v56 = vsel %vm442_vm3, %v4703_v6, %v4704_v51  ;;  %v4708_v35 = vrot.slane %v10845_v27, 1  ;;  %v7964_v32 = vld [vmem:[#allocation5 + $0x78] sm:$0xff] }
 0x26e   :  { %7873 = vmatprep.subr.msk.mxu0 %vm589_vm0, %v10955_v33  ;;  %v4707_v12 = vsel %vm442_vm3, %v4704_v51, %v4706_v9  ;;  %v4713_v6 = vrot.slane %v10866_v0, 1  ;;  %v4714_v31 = vrot.slane %v10868_v21, 1  ;;  %v4712_v51 = vsel %vm442_vm3, %v4709_v59, %v4711_v2  ;;  %v11214_v2 = vpop.f32.mrf.mxu0 }
 0x26f   :  { %v4721_v9 = vrot.slane %v10894_v29, 1 }
 0x270   :  { %7700 = vmatmul.mubr.msk.f32.gmra.mxu1 %vm29_vm1, %v10577_v40  ;;  %7778 = vmatmul.mubr.msk.f32.gmra.mxu0 %vm29_vm1, %v4697_v15  ;;  %v7965_v15 = vld [vmem:[#allocation5 + $0x80] sm:$0xff] }
 0x271   :  { %7702 = vmatprep.mubr.msk.f32.mxu1 %vm29_vm1, %v10636_v57  ;;  %7780 = vmatprep.mubr.msk.f32.mxu0 %vm29_vm1, %v4700_v42  ;;  %v4710_v42 = vsel %vm442_vm3, %v4708_v35, %v4709_v59  ;;  %v4719_v35 = vrot.slane %v10892_v26, 1  ;;  %v4717_v59 = vsel %vm442_vm3, %v4714_v31, %v4716_v14  ;;  %v11913_v29 = vld [vmem:[#allocation36_spill] sm:$0xff] }
 0x274   :  { %7703 = vmatmul.mubr.msk.f32.gmra.mxu1 %vm29_vm1, %v10638_v63  ;;  %7781 = vmatmul.mubr.msk.f32.gmra.mxu0 %vm29_vm1, %v4702_v22  ;;  %v4715_v22 = vsel %vm442_vm3, %v4713_v6, %v4714_v31  ;;  %v11212_v31 = vpop.f32.mrf.mxu1 }
 0x275   :  { %7783 = vmatprep.mubr.msk.f32.mxu0 %vm29_vm1, %v4705_v56  ;;  %7705 = vmatprep.mubr.msk.f32.mxu1 %vm29_vm1, %v7964_v32  ;;  %v4718_v56 = vrot.slane %v10877_v13, 1 }
 0x277   :  { %v4720_v32 = vsel %vm442_vm3, %v4718_v56, %v4719_v35 }
 0x278   :  { %7706 = vmatmul.mubr.msk.f32.gmra.mxu1 %vm29_vm1, %v7965_v15  ;;  %7784 = vmatmul.mubr.msk.f32.gmra.mxu0 %vm29_vm1, %v4707_v12  ;;  %v4722_v12 = vsel %vm442_vm3, %v4719_v35, %v4721_v9 }
 0x279   :  { %7708 = vmatprep.mubr.msk.f32.mxu1 %vm29_vm1, %v10731_v39  ;;  %7786 = vmatprep.mubr.msk.f32.mxu0 %vm29_vm1, %v4710_v42 }
 0x27c   :  { %7709 = vmatmul.mubr.msk.f32.gmra.mxu1 %vm29_vm1, %v10733_v30  ;;  %7787 = vmatmul.mubr.msk.f32.gmra.mxu0 %vm29_vm1, %v4712_v51  ;;  %v3964_v51 = vpop.f32.mrf.mxu1 }
 0x27d   :  { %7711 = vmatprep.mubr.msk.f32.mxu1 %vm29_vm1, %v10771_v55  ;;  %7789 = vmatprep.mubr.msk.f32.mxu0 %vm29_vm1, %v4715_v22  ;;  %v4366_v22 = vpop.f32.mrf.mxu0 }
 0x280   :  { %7712 = vmatmul.mubr.msk.f32.gmra.mxu1 %vm29_vm1, %v10773_v10  ;;  %7790 = vmatmul.mubr.msk.f32.gmra.mxu0 %vm29_vm1, %v4717_v59 }
 0x281   :  { %7714 = vmatprep.mubr.msk.f32.mxu1 %vm29_vm1, %v10826_v1  ;;  %7792 = vmatprep.mubr.msk.f32.mxu0 %vm29_vm1, %v4720_v32 }
 0x284   :  { %7715 = vmatmul.mubr.msk.f32.gmra.mxu1 %vm29_vm1, %v10828_v25  ;;  %7793 = vmatmul.mubr.msk.f32.gmra.mxu0 %vm29_vm1, %v4722_v12  ;;  %v6722_v12 = vld [vmem:[%s11535_s7 + $0x4] sm:$0xf] }
 0x285   :  { %7745 = vmatprep.mubr.msk.f32.mxu1 %vm29_vm1, %v10492_v23  ;;  %7823 = vmatprep.mubr.msk.f32.mxu0 %vm29_vm1, %v10509_v46  ;;  %v11056_v23 = vld [vmem:[#allocation5 + $0x60] sm:$0xff]  ;;  %v11092_v46 = vld [vmem:[#allocation5 + $0xd8] sm:$0xff] }
 0x288   :  { %7746 = vmatmul.mubr.msk.f32.vlgmr.msra.gmra.mxu1 %vm29_vm1, %v10494_v36  ;;  %7824 = vmatmul.mubr.msk.f32.vlgmr.msra.gmra.mxu0 %vm29_vm1, %v10511_v47  ;;  %v11062_v36 = vld [vmem:[#allocation5 + $0x68] sm:$0xff]  ;;  %v11098_v47 = vld [vmem:[#allocation5 + $0xe0] sm:$0xff] }
 0x289   :  { %7796 = vmatpush3.msk.msra.mxu1 %vm589_vm0, %v10916_v50  ;;  %7748 = vmatprep.mubr.msk.f32.mxu1 %vm29_vm1, %v10830_v28  ;;  %v11924_v50 = vld [vmem:[#allocation25_spill] sm:$0xff] }
 0x28a   :  { %7826 = vmatprep.mubr.msk.f32.mxu0 %vm29_vm1, %v10575_v53  ;;  %7847 = vmatprep.subr.msk.mxu1 %vm589_vm0, %v6684_v52  ;;  %v4926_v53 = vrot.slane %v10830_v28, 2 }
 0x28b   :  { %7874 = vmatpush3.msk.msra.mxu0 %vm589_vm0, %v10955_v33  ;;  %v11926_v33 = vld [vmem:[#allocation34_spill] sm:$0xff] }
 0x28c   :  { %7749 = vmatmul.mubr.msk.f32.gmra.mxu1 %vm29_vm1, %v10843_v3  ;;  %7827 = vmatmul.mubr.msk.f32.gmra.mxu0 %vm29_vm1, %v10577_v40  ;;  %v4927_v40 = vrot.slane %v10843_v3, 2  ;;  %v5339_v3 = vrot.slane %v11056_v23, 1 }
 0x28d   :  { %7751 = vmatprep.mubr.msk.f32.mxu1 %vm29_vm1, %v10697_v16  ;;  %7829 = vmatprep.mubr.msk.f32.mxu0 %vm29_vm1, %v10636_v57  ;;  %v11906_v57 = vld [vmem:[#allocation32_spill] sm:$0xff]  ;;  %v11910_v16 = vld [vmem:[#allocation23_spill] sm:$0xff] }
 0x290   :  { %7752 = vmatmul.mubr.msk.f32.gmra.mxu1 %vm29_vm1, %v10699_v17  ;;  %7830 = vmatmul.mubr.msk.f32.gmra.mxu0 %vm29_vm1, %v10638_v63  ;;  %v11907_v63 = vld [vmem:[#allocation24_spill] sm:$0xff]  ;;  %v5528_v17 = vrot.slane %v11092_v46, 2 }
 0x291   :  { %7754 = vmatprep.mubr.msk.f32.mxu1 %vm29_vm1, %v10775_v19  ;;  %7832 = vmatprep.mubr.msk.f32.mxu0 %vm29_vm1, %v11056_v23  ;;  %v11915_v19 = vld [vmem:[#allocation16_spill] sm:$0xff] }
 0x294   :  { %7755 = vmatmul.mubr.msk.f32.gmra.mxu1 %vm29_vm1, %v10787_v8  ;;  %7833 = vmatmul.mubr.msk.f32.gmra.mxu0 %vm29_vm1, %v11062_v36  ;;  %v11916_v8 = vld [vmem:[#allocation17_spill] sm:$0xff] }
 0x295   :  { %7757 = vmatprep.mubr.msk.f32.mxu1 %vm29_vm1, %v10820_v48  ;;  %7835 = vmatprep.mubr.msk.f32.mxu0 %vm29_vm1, %v10731_v39  ;;  %v11912_v39 = vld [vmem:[#allocation28_spill] sm:$0xff]  ;;  %v11918_v48 = vld [vmem:[#allocation35_spill] sm:$0xff] }
 0x298   :  { %7758 = vmatmul.mubr.msk.f32.gmra.mxu1 %vm29_vm1, %v10822_v44  ;;  %7836 = vmatmul.mubr.msk.f32.gmra.mxu0 %vm29_vm1, %v10733_v30  ;;  %v3795_v30 = vld [vmem:[#allocation5 + $0xe8] sm:$0x3]  ;;  %v5340_v44 = vrot.slane %v11062_v36, 1 }
 0x299   :  { %7760 = vmatprep.mubr.msk.f32.mxu1 %vm29_vm1, %v10845_v27  ;;  %7838 = vmatprep.mubr.msk.f32.mxu0 %vm29_vm1, %v10771_v55  ;;  %v11921_v27 = vld [vmem:[#allocation19_spill] sm:$0xff]  ;;  %v5347_v42 = vrot.slane %v3795_v30, 1 }
 0x29a   :  { %v5341_v28 = vsel %vm442_vm3, %v5339_v3, %v5340_v44 }
 0x29c   :  { %7761 = vmatmul.mubr.msk.f32.gmra.mxu1 %vm29_vm1, %v10847_v18  ;;  %7839 = vmatmul.mubr.msk.f32.gmra.mxu0 %vm29_vm1, %v10773_v10  ;;  %v5531_v10 = vrot.slane %v3795_v30, 2  ;;  %v11917_v18 = vld [vmem:[#allocation31_spill] sm:$0xff] }
 0x29d   :  { %7763 = vmatprep.mubr.msk.f32.mxu1 %vm29_vm1, %v10866_v0  ;;  %7841 = vmatprep.mubr.msk.f32.mxu0 %vm29_vm1, %v10826_v1  ;;  %v3780_v0 = vld [vmem:[#allocation5 + $0x70] sm:$0x3]  ;;  %v11919_v1 = vld [vmem:[#allocation21_spill] sm:$0xff] }
 0x2a0   :  { %7764 = vmatmul.mubr.msk.f32.gmra.mxu1 %vm29_vm1, %v10868_v21  ;;  %7842 = vmatmul.mubr.msk.f32.gmra.mxu0 %vm29_vm1, %v10828_v25  ;;  %v4929_v21 = vrot.slane %v10905_v58, 2  ;;  %v11914_v58 = vld [vmem:[#allocation29_spill] sm:$0xff]  ;;  %v11920_v25 = vld [vmem:[#allocation18_spill] sm:$0xff] }
 0x2a1   :  { %7766 = vmatprep.mubr.msk.f32.mxu1 %vm29_vm1, %v10877_v13  ;;  %7844 = vmatprep.mubr.msk.f32.mxu0 %vm29_vm1, %v11092_v46  ;;  %v11922_v13 = vld [vmem:[#allocation20_spill] sm:$0xff] }
 0x2a4   :  { %7767 = vmatmul.mubr.msk.f32.gmra.mxu1 %vm29_vm1, %v10892_v26  ;;  %7845 = vmatmul.mubr.msk.f32.gmra.mxu0 %vm29_vm1, %v11098_v47  ;;  %v4928_v26 = vsel %vm1110_vm4, %v4926_v53, %v4927_v40 }
 0x2a5   :  { %7797 = vmatprep.mubr.msk.f32.mxu1 %vm29_vm1, %v10565_v7  ;;  %7875 = vmatprep.mubr.msk.f32.mxu0 %vm29_vm1, %v10533_v45  ;;  %v4930_v7 = vsel %vm1110_vm4, %v4927_v40, %v4929_v21  ;;  %v5523_v45 = vrot.slane %v11056_v23, 2 }
 0x2a8   :  { %7798 = vmatmul.mubr.msk.f32.vlgmr.msra.gmra.mxu1 %vm29_vm1, %v10626_v62  ;;  %7876 = vmatmul.mubr.msk.f32.vlgmr.msra.gmra.mxu0 %vm29_vm1, %v10539_v24  ;;  %v5524_v24 = vrot.slane %v11062_v36, 2 }
 0x2a9   :  { %7848 = vmatpush3.msk.msra.mxu1 %vm589_vm0, %v6684_v52  ;;  %7800 = vmatprep.mubr.msk.f32.mxu1 %vm29_vm1, %v4928_v26 }
 0x2aa   :  { %7878 = vmatprep.mubr.msk.f32.mxu0 %vm29_vm1, %v10598_v37  ;;  %v5525_v37 = vsel %vm1110_vm4, %v5523_v45, %v5524_v24  ;;  %7899 = vmatprep.subr.msk.mxu1 %vm589_vm0, %v6722_v12 }
 0x2ac   :  { %7801 = vmatmul.mubr.msk.f32.gmra.mxu1 %vm29_vm1, %v4930_v7  ;;  %7879 = vmatmul.mubr.msk.f32.gmra.mxu0 %vm29_vm1, %v10604_v54  ;;  %v5526_v54 = vrot.slane %v3780_v0, 2 }
 0x2ad   :  { %7803 = vmatprep.mubr.msk.f32.mxu1 %vm29_vm1, %v10722_v20  ;;  %7881 = vmatprep.mubr.msk.f32.mxu0 %vm29_vm1, %v10656_v61  ;;  %v11908_v61 = vld [vmem:[#allocation33_spill] sm:$0xff]  ;;  %v11911_v20 = vld [vmem:[#allocation30_spill] sm:$0xff] }
 0x2ae   :  { %v5527_v62 = vsel %vm1110_vm4, %v5524_v24, %v5526_v54 }
 0x2b0   :  { %7804 = vmatmul.mubr.msk.f32.gmra.mxu1 %vm29_vm1, %v10725_v11  ;;  %7882 = vmatmul.mubr.msk.f32.gmra.mxu0 %vm29_vm1, %v10662_v38  ;;  %v11909_v38 = vld [vmem:[#allocation22_spill] sm:$0xff]  ;;  %v5529_v11 = vrot.slane %v11098_v47, 2 }
 0x2b1   :  { %7806 = vmatprep.mubr.msk.f32.mxu1 %vm29_vm1, %v10833_v34  ;;  %7884 = vmatprep.mubr.msk.f32.mxu0 %vm29_vm1, %v5525_v37  ;;  %v5342_v34 = vrot.slane %v3780_v0, 1 }
 0x2b2   :  { %v5530_v55 = vsel %vm1110_vm4, %v5528_v17, %v5529_v11 }
 0x2b4   :  { %7807 = vmatmul.mubr.msk.f32.gmra.mxu1 %vm29_vm1, %v10836_v4  ;;  %7885 = vmatmul.mubr.msk.f32.gmra.mxu0 %vm29_vm1, %v5527_v62  ;;  %v5343_v4 = vsel %vm442_vm3, %v5340_v44, %v5342_v34 }
 0x2b5   :  { %7809 = vmatprep.mubr.msk.f32.mxu1 %vm29_vm1, %v11906_v57  ;;  %7887 = vmatprep.mubr.msk.f32.mxu0 %vm29_vm1, %v11907_v63 }
 0x2b8   :  { %7810 = vmatmul.mubr.msk.f32.gmra.mxu1 %vm29_vm1, %v11908_v61  ;;  %7888 = vmatmul.mubr.msk.f32.gmra.mxu0 %vm29_vm1, %v11909_v38 }
 0x2b9   :  { %7812 = vmatprep.mubr.msk.f32.mxu1 %vm29_vm1, %v10908_v49  ;;  %7890 = vmatprep.mubr.msk.f32.mxu0 %vm29_vm1, %v11910_v16  ;;  %v11923_v49 = vld [vmem:[#allocation27_spill] sm:$0xff] }
 0x2bc   :  { %7813 = vmatmul.mubr.msk.f32.gmra.mxu1 %vm29_vm1, %v10911_v5  ;;  %7891 = vmatmul.mubr.msk.f32.gmra.mxu0 %vm29_vm1, %v11911_v20  ;;  %v5344_v5 = vrot.slane %v11092_v46, 1 }
 0x2bd   :  { %7815 = vmatprep.mubr.msk.f32.mxu1 %vm29_vm1, %v10919_v41  ;;  %7893 = vmatprep.mubr.msk.f32.mxu0 %vm29_vm1, %v11912_v39  ;;  %v5532_v41 = vsel %vm1110_vm4, %v5529_v11, %v5531_v10 }
 0x2c0   :  { %7816 = vmatmul.mubr.msk.f32.gmra.mxu1 %vm29_vm1, %v11913_v29  ;;  %7894 = vmatmul.mubr.msk.f32.gmra.mxu0 %vm29_vm1, %v11914_v58 }
 0x2c1   :  { %7818 = vmatprep.mubr.msk.f32.mxu1 %vm29_vm1, %v10939_v60  ;;  %7896 = vmatprep.mubr.msk.f32.mxu0 %vm29_vm1, %v5530_v55  ;;  %v5345_v60 = vrot.slane %v11098_v47, 1 }
 0x2c3   :  { %v5346_v15 = vsel %vm442_vm3, %v5344_v5, %v5345_v60  ;;  %v5348_v6 = vsel %vm442_vm3, %v5345_v60, %v5347_v42 }
 0x2c4   :  { %7819 = vmatmul.mubr.msk.f32.gmra.mxu1 %vm29_vm1, %v10942_v43  ;;  %7897 = vmatmul.mubr.msk.f32.gmra.mxu0 %vm29_vm1, %v5532_v41  ;;  %v11925_v43 = vld [vmem:[#allocation26_spill] sm:$0xff] }
 0x2c5   :  { %7849 = vmatprep.mubr.msk.f32.mxu1 %vm29_vm1, %v11915_v19 }
 0x2c8   :  { %7850 = vmatmul.mubr.msk.f32.vlgmr.msra.gmra.mxu1 %vm29_vm1, %v11916_v8 }
 0x2c9   :  { %7852 = vmatprep.mubr.msk.f32.mxu1 %vm29_vm1, %v11917_v18  ;;  %7900 = vmatpush3.msk.msra.mxu1 %vm589_vm0, %v6722_v12  ;;  %v11242_v18 = vld [vmem:[%s11535_s7] sm:$0xf] }
 0x2ca   :  { %7907 = vmatprep.subr.msk.mxu1 %vm589_vm0, %v11242_v18 }
 0x2cc   :  { %7853 = vmatmul.mubr.msk.f32.gmra.mxu1 %vm29_vm1, %v11918_v48 }
 0x2cd   :  { %7855 = vmatprep.mubr.msk.f32.mxu1 %vm29_vm1, %v11919_v1 }
 0x2d0   :  { %7856 = vmatmul.mubr.msk.f32.gmra.mxu1 %vm29_vm1, %v11920_v25 }
 0x2d1   :  { %7858 = vmatprep.mubr.msk.f32.mxu1 %vm29_vm1, %v5341_v28 }
 0x2d4   :  { %7859 = vmatmul.mubr.msk.f32.gmra.mxu1 %vm29_vm1, %v5343_v4 }
 0x2d5   :  { %7861 = vmatprep.mubr.msk.f32.mxu1 %vm29_vm1, %v11921_v27 }
 0x2d8   :  { %7862 = vmatmul.mubr.msk.f32.gmra.mxu1 %vm29_vm1, %v11922_v13 }
 0x2d9   :  { %7864 = vmatprep.mubr.msk.f32.mxu1 %vm29_vm1, %v11923_v49 }
 0x2dc   :  { %7865 = vmatmul.mubr.msk.f32.gmra.mxu1 %vm29_vm1, %v11924_v50 }
 0x2dd   :  { %7867 = vmatprep.mubr.msk.f32.mxu1 %vm29_vm1, %v11925_v43 }
 0x2e0   :  { %7868 = vmatmul.mubr.msk.f32.gmra.mxu1 %vm29_vm1, %v11926_v33 }
 0x2e1   :  { %7870 = vmatprep.mubr.msk.f32.mxu1 %vm29_vm1, %v5346_v15 }
 0x2e4   :  { %7871 = vmatmul.mubr.msk.f32.gmra.mxu1 %vm29_vm1, %v5348_v6 }
 0x2f5   :  { %v7672_v56 = vpop.f32.mrf.mxu1  ;;  %v7724_v35 = vpop.f32.mrf.mxu0 }
 0x2f7   :  { %v3974_v14 = vpop.f32.mrf.mxu1  ;;  %v4376_v59 = vpop.f32.mrf.mxu0 }
 0x2fc   :  { %v7675_v32 = vpop.f32.mrf.mxu1  ;;  %v7727_v9 = vpop.f32.mrf.mxu0 }
 0x2fe   :  { %v3984_v52 = vpop.f32.mrf.mxu1  ;;  %v4386_v23 = vpop.f32.mrf.mxu0 }
 0x305   :  { %v7678_v36 = vpop.f32.mrf.mxu1  ;;  %v7730_v46 = vpop.f32.mrf.mxu0 }
 0x307   :  { %v3994_v47 = vpop.f32.mrf.mxu1  ;;  %v4396_v53 = vpop.f32.mrf.mxu0 }
 0x309   :  { %v7681_v40 = vpop.f32.mrf.mxu1  ;;  %v7733_v26 = vpop.f32.mrf.mxu0 }
 0x30b   :  { %v4004_v21 = vpop.f32.mrf.mxu1  ;;  %v4406_v7 = vpop.f32.mrf.mxu0 }
 0x315   :  { %v7684_v45 = vpop.f32.mrf.mxu1  ;;  %v7736_v24 = vpop.f32.mrf.mxu0 }
 0x317   :  { %v4014_v0 = vpop.f32.mrf.mxu1  ;;  %v4416_v37 = vpop.f32.mrf.mxu0 }
 0x31c   :  { %v7687_v54 = vpop.f32.mrf.mxu1 }
 0x31d   :  { %v7739_v62 = vpop.f32.mrf.mxu0 }
 0x31e   :  { %v4024_v57 = vpop.f32.mrf.mxu1 }
 0x31f   :  { %v11221_v63 = vpop.f32.mrf.mxu0 }
 0x324   :  { %v7690_v61 = vpop.f32.mrf.mxu1  ;;  %v11223_v38 = vpop.f32.mrf.mxu0 }
 0x326   :  { %v11225_v16 = vpop.f32.mrf.mxu1  ;;  %v11227_v17 = vpop.f32.mrf.mxu0 }
 0x328   :  { %v7695_v20 = vpop.f32.mrf.mxu1  ;;  %v11229_v11 = vpop.f32.mrf.mxu0 }
 0x32a   :  { %v4144_v39 = vpop.f32.mrf.mxu1  ;;  %v11231_v30 = vpop.f32.mrf.mxu0 }
 0x32b   :  { %v4145_v29 = vadd.f32 %v4144_v39, %v3964_v51 }
 0x32c   :  { %v7698_v58 = vpop.f32.mrf.mxu1  ;;  %v11233_v55 = vpop.f32.mrf.mxu0 }
 0x32d   :  { %v4160_v10 = vadd.f32 %v7698_v58, %v7672_v56  ;;  %v11235_v41 = vadd.f32 %v4366_v22, %v4145_v29 }
 0x32e   :  { %v4154_v19 = vpop.f32.mrf.mxu1  ;;  %v11237_v8 = vpop.f32.mrf.mxu0 }
 0x32f   :  { %v4155_v3 = vadd.f32 %v4154_v19, %v3974_v14  ;;  %v11244_v48 = vadd.f32 %v7724_v35, %v4160_v10 }
 0x330   :  { %v7701_v44 = vpop.f32.mrf.mxu1  ;;  %v11248_v1 = vpop.f32.mrf.mxu0 }
 0x331   :  { %v4170_v25 = vadd.f32 %v7701_v44, %v7675_v32  ;;  %v11250_v28 = vadd.f32 %v4376_v59, %v4155_v3 }
 0x332   :  { %v4164_v34 = vpop.f32.mrf.mxu1  ;;  %v11252_v4 = vpop.f32.mrf.mxu0 }
 0x333   :  { %v4165_v27 = vadd.f32 %v4164_v34, %v3984_v52  ;;  %v4450_v13 = vadd.f32 %v7727_v9, %v4170_v25 }
 0x334   :  { %v7704_v49 = vpop.f32.mrf.mxu1  ;;  %v11254_v5 = vpop.f32.mrf.mxu0 }
 0x335   :  { %v4180_v50 = vadd.f32 %v7704_v49, %v7678_v36  ;;  %v4449_v60 = vadd.f32 %v4386_v23, %v4165_v27 }
 0x336   :  { %v4174_v43 = vpop.f32.mrf.mxu1  ;;  %v11256_v33 = vpop.f32.mrf.mxu0 }
 0x337   :  { %v4175_v15 = vadd.f32 %v4174_v43, %v3994_v47  ;;  %v4452_v42 = vadd.f32 %v7730_v46, %v4180_v50 }
 0x338   :  { %v7707_v6 = vpop.f32.mrf.mxu1  ;;  %v11258_v51 = vpop.f32.mrf.mxu0 }
 0x339   :  { %v4190_v22 = vadd.f32 %v7707_v6, %v7681_v40  ;;  %v4451_v56 = vadd.f32 %v4396_v53, %v4175_v15 }
 0x33a   :  { %v4184_v35 = vpop.f32.mrf.mxu1  ;;  %v11260_v14 = vpop.f32.mrf.mxu0 }
 0x33b   :  { %v4185_v59 = vadd.f32 %v4184_v35, %v4004_v21  ;;  %v4454_v32 = vadd.f32 %v7733_v26, %v4190_v22  ;;  %v4150_v26 = vadd.f32 %v7695_v20, %v11212_v31 }
 0x33c   :  { %v7710_v9 = vpop.f32.mrf.mxu1  ;;  %v11262_v12 = vpop.f32.mrf.mxu0 }
 0x33d   :  { %v4200_v52 = vadd.f32 %v7710_v9, %v7684_v45  ;;  %v4453_v23 = vadd.f32 %v4406_v7, %v4185_v59  ;;  %v4446_v27 = vadd.f32 %v11214_v2, %v4150_v26 }
 0x33e   :  { %v4194_v36 = vpop.f32.mrf.mxu1  ;;  %v11264_v39 = vpop.f32.mrf.mxu0 }
 0x33f   :  { %v4195_v47 = vadd.f32 %v4194_v36, %v4014_v0  ;;  %v11266_v46 = vadd.f32 %v7736_v24, %v4200_v52 }
 0x340   :  { %v7713_v29 = vpop.f32.mrf.mxu1  ;;  %v7791_v58 = vpop.f32.mrf.mxu0 }
 0x341   :  { %v4210_v40 = vadd.f32 %v7713_v29, %v7687_v54  ;;  %v11268_v53 = vadd.f32 %v4416_v37, %v4195_v47 }
 0x342   :  { %v4204_v10 = vpop.f32.mrf.mxu1  ;;  %v4886_v19 = vpop.f32.mrf.mxu0 }
 0x343   :  { %v4205_v21 = vadd.f32 %v4204_v10, %v4024_v57  ;;  %v4458_v3 = vadd.f32 %v7739_v62, %v4210_v40 }
 0x344   :  { %v7716_v44 = vpop.f32.mrf.mxu1  ;;  %v7794_v45 = vpop.f32.mrf.mxu0 }
 0x345   :  { %v4220_v7 = vadd.f32 %v7716_v44, %v7690_v61  ;;  %v4457_v25 = vadd.f32 %v11221_v63, %v4205_v21 }
 0x346   :  { %v4214_v34 = vpop.f32.mrf.mxu1  ;;  %v4896_v0 = vpop.f32.mrf.mxu0 }
 0x347   :  { %v4215_v24 = vadd.f32 %v4214_v34, %v11225_v16  ;;  %v4460_v37 = vadd.f32 %v11223_v38, %v4220_v7 }
 0x348   :  { %v7747_v54 = vpop.f32.mrf.mxu1  ;;  %v11275_v49 = vpop.f32.mrf.mxu0 }
 0x349   :  { %v4660_v50 = vadd.f32 %v7747_v54, %v4446_v27  ;;  %v4459_v31 = vadd.f32 %v11227_v17, %v4215_v24 }
 0x34a   :  { %v4580_v62 = vpop.f32.mrf.mxu1  ;;  %v11278_v57 = vpop.f32.mrf.mxu0 }
 0x34b   :  { %v4659_v61 = vadd.f32 %v4580_v62, %v11235_v41  ;;  %v11282_v63 = vadd.f32 %v11229_v11, %v4660_v50 }
 0x34c   :  { %v11284_v20 = vpop.f32.mrf.mxu1  ;;  %v11286_v16 = vpop.f32.mrf.mxu0 }
 0x34d   :  { %v11289_v2 = vadd.f32 %v11231_v30, %v4659_v61 }
 0x34e   :  { %v11291_v38 = vpop.f32.mrf.mxu1  ;;  %v11293_v43 = vpop.f32.mrf.mxu0 }
 0x350   :  { %v7753_v17 = vpop.f32.mrf.mxu1  ;;  %v11295_v15 = vpop.f32.mrf.mxu0 }
 0x351   :  { %v4664_v6 = vadd.f32 %v7753_v17, %v4450_v13 }
 0x352   :  { %v4600_v22 = vpop.f32.mrf.mxu1  ;;  %v11297_v41 = vpop.f32.mrf.mxu0 }
 0x353   :  { %v4663_v11 = vadd.f32 %v4600_v22, %v4449_v60  ;;  %v11300_v35 = vadd.f32 %v11248_v1, %v4664_v6 }
 0x354   :  { %v7756_v59 = vpop.f32.mrf.mxu1  ;;  %v11302_v9 = vpop.f32.mrf.mxu0 }
 0x355   :  { %11927 = vst [vmem:[#allocation40_spill] sm:$0xff] %v11302_v9  ;;  %v4666_v30 = vadd.f32 %v7756_v59, %v4452_v42  ;;  %v11305_v52 = vadd.f32 %v11252_v4, %v4663_v11 }
 0x356   :  { %v4610_v36 = vpop.f32.mrf.mxu1  ;;  %v11307_v47 = vpop.f32.mrf.mxu0 }
 0x357   :  { %11928 = vst [vmem:[#allocation37_spill] sm:$0xff] %v11307_v47  ;;  %v4665_v29 = vadd.f32 %v4610_v36, %v4451_v56  ;;  %v11310_v13 = vadd.f32 %v11254_v5, %v4666_v30 }
 0x358   :  { %v7759_v40 = vpop.f32.mrf.mxu1  ;;  %v11312_v10 = vpop.f32.mrf.mxu0 }
 0x359   :  { %v4668_v60 = vadd.f32 %v7759_v40, %v4454_v32  ;;  %v11315_v1 = vadd.f32 %v11256_v33, %v4665_v29 }
 0x35a   :  { %v4620_v26 = vpop.f32.mrf.mxu1  ;;  %v11317_v21 = vpop.f32.mrf.mxu0 }
 0x35b   :  { %v4667_v42 = vadd.f32 %v4620_v26, %v4453_v23  ;;  %v11320_v4 = vadd.f32 %v11258_v51, %v4668_v60 }
 0x35c   :  { %v11322_v44 = vpop.f32.mrf.mxu1  ;;  %v11324_v56 = vpop.f32.mrf.mxu0 }
 0x35d   :  { %v11327_v5 = vadd.f32 %v11260_v14, %v4667_v42 }
 0x35e   :  { %v11329_v7 = vpop.f32.mrf.mxu1  ;;  %v11331_v32 = vpop.f32.mrf.mxu0 }
 0x360   :  { %v7765_v33 = vpop.f32.mrf.mxu1  ;;  %v11335_v23 = vpop.f32.mrf.mxu0 }
 0x361   :  { %v4672_v34 = vadd.f32 %v7765_v33, %v4458_v3  ;;  %11929 = vst [vmem:[#allocation38_spill] sm:$0xff] %v11335_v23 }
 0x362   :  { %v4640_v24 = vpop.f32.mrf.mxu1  ;;  %v11341_v6 = vpop.f32.mrf.mxu0 }
 0x363   :  { %v4671_v27 = vadd.f32 %v4640_v24, %v4457_v25  ;;  %v11333_v54 = vadd.f32 %v7791_v58, %v4672_v34  ;;  %v4662_v24 = vadd.f32 %v11284_v20, %v11244_v48 }
 0x364   :  { %v7768_v51 = vpop.f32.mrf.mxu1  ;;  %v11345_v59 = vpop.f32.mrf.mxu0 }
 0x365   :  { %v4674_v50 = vadd.f32 %v7768_v51, %v4460_v37  ;;  %v11337_v62 = vadd.f32 %v4886_v19, %v4671_v27  ;;  %11932 = vst [vmem:[#allocation41_spill] sm:$0xff] %v11345_v59  ;;  %v4661_v51 = vadd.f32 %v11291_v38, %v11250_v28 }
 0x366   :  { %v4650_v61 = vpop.f32.mrf.mxu1  ;;  %v11347_v30 = vpop.f32.mrf.mxu0 }
 0x367   :  { %v4673_v17 = vadd.f32 %v4650_v61, %v4459_v31  ;;  %v11339_v14 = vadd.f32 %v7794_v45, %v4674_v50  ;;  %11933 = vst [vmem:[#allocation46_spill] sm:$0xff] %v11347_v30 }
 0x368   :  { %v7799_v22 = vpop.f32.mrf.mxu1  ;;  %v11353_v37 = vpop.f32.mrf.mxu0 }
 0x369   :  { %11930 = vst [vmem:[#allocation43_spill] sm:$0xff] %v11339_v14  ;;  %v11343_v11 = vadd.f32 %v4896_v0, %v4673_v17  ;;  %v4908_v17 = vadd.f32 %v11233_v55, %v4662_v24  ;;  %v4907_v14 = vadd.f32 %v11237_v8, %v4661_v51  ;;  %v11388_v8 = vld [vmem:[%s11536_s5] ss:$0 sm:$0xff] }
 0x36a   :  { %v5064_v3 = vpop.f32.mrf.mxu1  ;;  %v11359_v29 = vpop.f32.mrf.mxu0 }
 0x36b   :  { %11931 = vst [vmem:[#allocation39_spill] sm:$0xff] %v11343_v11 }
 0x36c   :  { %v7802_v58 = vpop.f32.mrf.mxu1  ;;  %v7880_v60 = vpop.f32.mrf.mxu0 }
 0x36d   :  { %v5146_v30 = vadd.f32 %v7802_v58, %v4908_v17 }
 0x36e   :  { %v5074_v25 = vpop.f32.mrf.mxu1  ;;  %v5622_v33 = vpop.f32.mrf.mxu0 }
 0x36f   :  { %v5145_v48 = vadd.f32 %v5074_v25, %v4907_v14  ;;  %v5324_v47 = vadd.f32 %v11286_v16, %v5146_v30  ;;  %v4670_v16 = vadd.f32 %v11322_v44, %v11266_v46  ;;  %v5143_v30 = vadd.f32 %v5064_v3, %v11289_v2 }
 0x370   :  { %v11349_v36 = vpop.f32.mrf.mxu1  ;;  %v11369_v50 = vpop.f32.mrf.mxu0  ;;  %v5144_v44 = vadd.f32 %v7799_v22, %v11282_v63 }
 0x371   :  { %11934 = vst [vmem:[#allocation42_spill] sm:$0xff] %v11369_v50 }
 0x372   :  { %v11351_v19 = vpop.f32.mrf.mxu1  ;;  %v11377_v11 = vpop.f32.mrf.mxu0  ;;  %v5322_v63 = vadd.f32 %v11275_v49, %v5144_v44 }
 0x374   :  { %v11355_v45 = vpop.f32.mrf.mxu1  ;;  %v11380_v9 = vpop.f32.mrf.mxu0 }
 0x376   :  { %v11357_v31 = vpop.f32.mrf.mxu1 }
 0x378   :  { %v7811_v0 = vpop.f32.mrf.mxu1 }
 0x37a   :  { %v5104_v40 = vpop.f32.mrf.mxu1 }
 0x37b   :  { %v5151_v3 = vadd.f32 %v5104_v40, %v11327_v5 }
 0x37c   :  { %v7814_v26 = vpop.f32.mrf.mxu1 }
 0x37e   :  { %v5114_v42 = vpop.f32.mrf.mxu1 }
 0x380   :  { %v11361_v34 = vpop.f32.mrf.mxu1 }
 0x382   :  { %v11365_v27 = vpop.f32.mrf.mxu1 }
 0x384   :  { %v11371_v61 = vpop.f32.mrf.mxu1 }
 0x385   :  { %11935 = vst [vmem:[#allocation44_spill] sm:$0xff] %v11371_v61  ;;  %v5323_v61 = vadd.f32 %v11293_v43, %v5145_v48  ;;  %v4669_v43 = vadd.f32 %v11329_v7, %v11268_v53  ;;  %v5321_v48 = vadd.f32 %v11278_v57, %v5143_v30  ;;  %v5152_v57 = vadd.f32 %v7811_v0, %v11320_v4 }
 0x386   :  { %v11374_v59 = vpop.f32.mrf.mxu1 }
 0x387   :  { %11936 = vst [vmem:[#allocation49_spill] sm:$0xff] %v11374_v59  ;;  %v11383_v59 = vpop.f32.mrf.mxu0  ;;  %v4915_v2 = vadd.f32 %v11264_v39, %v4669_v43  ;;  %v5147_v39 = vadd.f32 %v11351_v19, %v11305_v52 }
 0x388   :  { %v7851_v23 = vpop.f32.mrf.mxu1 }
 0x389   :  { %v5508_v40 = vadd.f32 %v7851_v23, %v5322_v63 }
 0x38a   :  { %v5428_v20 = vpop.f32.mrf.mxu1 }
 0x38b   :  { %v5507_v22 = vadd.f32 %v5428_v20, %v5321_v48 }
 0x38c   :  { %v7854_v28 = vpop.f32.mrf.mxu1 }
 0x38d   :  { %v5510_v38 = vadd.f32 %v7854_v28, %v5324_v47  ;;  %v5691_v52 = vadd.f32 %v11359_v29, %v5507_v22  ;;  %v11942_v22 = vld [vmem:[#allocation42_spill] sm:$0xff] }
 0x38e   :  { %v5438_v50 = vpop.f32.mrf.mxu1  ;;  %v11941_v63 = vld [vmem:[#allocation49_spill] sm:$0xff] }
 0x38f   :  { %v5694_v55 = vadd.f32 %v7880_v60, %v5510_v38  ;;  %v5509_v24 = vadd.f32 %v5438_v50, %v5323_v61  ;;  %v11401_v60 = vld [vmem:[%s11537_s6] ss:$0 sm:$0xff]  ;;  %v7889_v50 = vpop.f32.mrf.mxu0 }
 0x390   :  { %v11390_v14 = vpop.f32.mrf.mxu1 }
 0x391   :  { %v5717_v58 = vmul.f32 %v11388_v8, %v5694_v55  ;;  %v5693_v47 = vadd.f32 %v5622_v33, %v5509_v24  ;;  %v4916_v33 = vadd.f32 %v11262_v12, %v4670_v16  ;;  %v5652_v38 = vpop.f32.mrf.mxu0  ;;  %v11420_v12 = vld [vmem:[%s11535_s7 + $0x8] sm:$0xf] }
 0x392   :  { %v5448_v25 = vpop.f32.mrf.mxu1 }
 0x393   :  { %v5716_v51 = vmul.f32 %v11388_v8, %v5693_v47  ;;  %v5740_v61 = vadd.f32 %v11401_v60, %v5717_v58  ;;  %v5154_v17 = vadd.f32 %v7814_v26, %v4916_v33  ;;  %v5153_v58 = vadd.f32 %v5114_v42, %v4915_v2  ;;  %v7892_v20 = vpop.f32.mrf.mxu0 }
 0x394   :  { %v11405_v46 = vpop.f32.mrf.mxu1  ;;  %v5329_v26 = vadd.f32 %v11317_v21, %v5151_v3  ;;  %v5148_v42 = vadd.f32 %v11349_v36, %v11300_v35  ;;  %v5325_v21 = vadd.f32 %v11297_v41, %v5147_v39  ;;  %v5692_v35 = vadd.f32 %v11353_v37, %v5508_v40 }
 0x395   :  { %v5739_v53 = vadd.f32 %v11401_v60, %v5716_v51  ;;  %v5756_v55 = vmax.f32 %v5740_v61, 0.0  ;;  %v5332_v49 = vadd.f32 %v11324_v56, %v5154_v17  ;;  %v5331_v23 = vadd.f32 %v11331_v32, %v5153_v58  ;;  %v5662_v43 = vpop.f32.mrf.mxu0  ;;  %v11940_v58 = vld [vmem:[#allocation39_spill] sm:$0xff] }
 0x396   :  { %v11411_v7 = vpop.f32.mrf.mxu1  ;;  %v5330_v56 = vadd.f32 %v11312_v10, %v5152_v57  ;;  %v5326_v30 = vadd.f32 %v11295_v15, %v5148_v42  ;;  %v5511_v29 = vadd.f32 %v5448_v25, %v5325_v21  ;;  %v5714_v32 = vmul.f32 %v11388_v8, %v5691_v52 }
 0x397   :  { %v5755_v28 = vmax.f32 %v5739_v53, 0.0  ;;  %v5150_v33 = vadd.f32 %v11355_v45, %v11310_v13  ;;  %v5156_v37 = vadd.f32 %v11361_v34, %v11333_v54  ;;  %v5715_v15 = vmul.f32 %v11388_v8, %v5692_v35  ;;  %v7895_v3 = vpop.f32.mrf.mxu0  ;;  %v11937_v34 = vld [vmem:[#allocation40_spill] sm:$0xff]  ;;  %v11945_v35 = vld [vmem:[#allocation46_spill] sm:$0xff] }
 0x398   :  { %v7863_v24 = vpop.f32.mrf.mxu1  ;;  %v5512_v25 = vadd.f32 %v11390_v14, %v5326_v30  ;;  %v5695_v17 = vadd.f32 %v11377_v11, %v5511_v29  ;;  %v11938_v14 = vld [vmem:[#allocation37_spill] sm:$0xff]  ;;  %v5157_v11 = vadd.f32 %v11941_v63, %v11940_v58 }
 0x399   :  { %7901 = vmatprep.mubr.msk.f32.mxu1 %vm29_vm1, %v5755_v28  ;;  %v5516_v51 = vadd.f32 %v7863_v24, %v5330_v56  ;;  %v5328_v28 = vadd.f32 %v11937_v34, %v5150_v33 }
 0x39a   :  { %v5468_v5 = vpop.f32.mrf.mxu1  ;;  %7902 = vmatmul.mubr.msk.f32.vlgmr.msra.gmra.mxu1 %vm29_vm1, %v5756_v55  ;;  %v11939_v55 = vld [vmem:[#allocation38_spill] sm:$0xff]  ;;  %v5696_v39 = vadd.f32 %v11942_v22, %v5512_v25  ;;  %v5718_v40 = vmul.f32 %v11388_v8, %v5695_v17 }
 0x39b   :  { %7908 = vmatpush3.msk.msra.mxu1 %vm589_vm0, %v11242_v18  ;;  %v5515_v4 = vadd.f32 %v5468_v5, %v5329_v26  ;;  %v5155_v18 = vadd.f32 %v11365_v27, %v11337_v62  ;;  %v5149_v62 = vadd.f32 %v11357_v31, %v11315_v1  ;;  %v5700_v48 = vadd.f32 %v7889_v50, %v5516_v51  ;;  %v5672_v5 = vpop.f32.mrf.mxu0 }
 0x39c   :  { %v7866_v16 = vpop.f32.mrf.mxu1  ;;  %7915 = vmatprep.subr.msk.mxu1 %vm589_vm0, %v11420_v12  ;;  %v5737_v1 = vadd.f32 %v11401_v60, %v5714_v32  ;;  %v5334_v24 = vadd.f32 %v11939_v55, %v5156_v37  ;;  %v5738_v50 = vadd.f32 %v11401_v60, %v5715_v15 }
 0x39d   :  { %v5518_v19 = vadd.f32 %v7866_v16, %v5332_v49  ;;  %v5699_v44 = vadd.f32 %v5652_v38, %v5515_v4  ;;  %v5333_v2 = vadd.f32 %v11341_v6, %v5155_v18  ;;  %v5327_v38 = vadd.f32 %v11938_v14, %v5149_v62 }
 0x39e   :  { %v5478_v0 = vpop.f32.mrf.mxu1  ;;  %v5723_v26 = vmul.f32 %v11388_v8, %v5700_v48  ;;  %v5514_v18 = vadd.f32 %v11405_v46, %v5328_v28  ;;  %v6739_v46 = vld [vmem:[%s11535_s7 + $0xc] sm:$0xf] }
 0x39f   :  { %v5702_v36 = vadd.f32 %v7892_v20, %v5518_v19  ;;  %v5517_v47 = vadd.f32 %v5478_v0, %v5331_v23  ;;  %v5722_v45 = vmul.f32 %v11388_v8, %v5699_v44  ;;  %v5753_v20 = vmax.f32 %v5737_v1, 0.0  ;;  %v11943_v19 = vld [vmem:[#allocation43_spill] sm:$0xff]  ;;  %v11944_v23 = vld [vmem:[#allocation44_spill] sm:$0xff] }
 0x3a0   :  { %v7869_v61 = vpop.f32.mrf.mxu1  ;;  %v5513_v16 = vadd.f32 %v11411_v7, %v5327_v38  ;;  %v5158_v21 = vadd.f32 %v11944_v23, %v11943_v19  ;;  %v5754_v0 = vmax.f32 %v5738_v50, 0.0  ;;  %v5719_v7 = vmul.f32 %v11388_v8, %v5696_v39 }
 0x3a1   :  { %v5725_v41 = vmul.f32 %v11388_v8, %v5702_v36  ;;  %v5701_v10 = vadd.f32 %v5662_v43, %v5517_v47  ;;  %v5520_v42 = vadd.f32 %v7869_v61, %v5334_v24  ;;  %v5745_v52 = vadd.f32 %v11401_v60, %v5722_v45  ;;  %v7898_v47 = vpop.f32.mrf.mxu0 }
 0x3a2   :  { %v5488_v27 = vpop.f32.mrf.mxu1  ;;  %v5335_v36 = vadd.f32 %v11945_v35, %v5157_v11  ;;  %v5741_v43 = vadd.f32 %v11401_v60, %v5718_v40  ;;  %v5746_v30 = vadd.f32 %v11401_v60, %v5723_v26  ;;  %v5697_v51 = vadd.f32 %v11383_v59, %v5513_v16 }
 0x3a3   :  { %v5724_v53 = vmul.f32 %v11388_v8, %v5701_v10  ;;  %v5748_v13 = vadd.f32 %v11401_v60, %v5725_v41  ;;  %v5519_v31 = vadd.f32 %v5488_v27, %v5333_v2  ;;  %v5704_v29 = vadd.f32 %v7895_v3, %v5520_v42  ;;  %v11946_v41 = vld [vmem:[#allocation41_spill] sm:$0xff]  ;;  %v5682_v59 = vpop.f32.mrf.mxu0 }
 0x3a4   :  { %v7872_v6 = vpop.f32.mrf.mxu1  ;;  %v5761_v61 = vmax.f32 %v5745_v52, 0.0  ;;  %v5336_v10 = vadd.f32 %v11946_v41, %v5158_v21  ;;  %v5698_v33 = vadd.f32 %v11380_v9, %v5514_v18  ;;  %v5742_v62 = vadd.f32 %v11401_v60, %v5719_v7 }
 0x3a5   :  { %v5747_v54 = vadd.f32 %v11401_v60, %v5724_v53  ;;  %v5764_v49 = vmax.f32 %v5748_v13, 0.0  ;;  %v5703_v4 = vadd.f32 %v5672_v5, %v5519_v31  ;;  %v5762_v37 = vmax.f32 %v5746_v30, 0.0 }
 0x3a6   :  { %v5498_v56 = vpop.f32.mrf.mxu1  ;;  %v5727_v27 = vmul.f32 %v11388_v8, %v5704_v29  ;;  %v5522_v15 = vadd.f32 %v7872_v6, %v5336_v10  ;;  %v5757_v25 = vmax.f32 %v5741_v43, 0.0  ;;  %v5720_v53 = vmul.f32 %v11388_v8, %v5697_v51 }
 0x3a7   :  { %v5763_v57 = vmax.f32 %v5747_v54, 0.0  ;;  %v5726_v32 = vmul.f32 %v11388_v8, %v5703_v4  ;;  %v5521_v44 = vadd.f32 %v5498_v56, %v5335_v36  ;;  %v5721_v3 = vmul.f32 %v11388_v8, %v5698_v33 }
 0x3a8   :  { %v5750_v17 = vadd.f32 %v11401_v60, %v5727_v27  ;;  %v5706_v48 = vadd.f32 %v7898_v47, %v5522_v15  ;;  %v5743_v13 = vadd.f32 %v11401_v60, %v5720_v53 }
 0x3a9   :  { %7904 = vmatprep.mubr.msk.f32.mxu1 %vm29_vm1, %v5763_v57  ;;  %v5749_v2 = vadd.f32 %v11401_v60, %v5726_v32  ;;  %v5705_v9 = vadd.f32 %v5682_v59, %v5521_v44  ;;  %v5744_v54 = vadd.f32 %v11401_v60, %v5721_v3 }
 0x3aa   :  { %7905 = vmatmul.mubr.msk.f32.gmra.mxu1 %vm29_vm1, %v5764_v49  ;;  %v5766_v31 = vmax.f32 %v5750_v17, 0.0  ;;  %v5729_v34 = vmul.f32 %v11388_v8, %v5706_v48  ;;  %v5759_v28 = vmax.f32 %v5743_v13, 0.0 }
 0x3ab   :  { %7909 = vmatprep.mubr.msk.f32.mxu1 %vm29_vm1, %v5753_v20  ;;  %v5765_v1 = vmax.f32 %v5749_v2, 0.0  ;;  %v5728_v45 = vmul.f32 %v11388_v8, %v5705_v9  ;;  %v5760_v38 = vmax.f32 %v5744_v54, 0.0 }
 0x3ac   :  { %v5752_v55 = vadd.f32 %v11401_v60, %v5729_v34 }
 0x3ad   :  { %v5751_v14 = vadd.f32 %v11401_v60, %v5728_v45 }
 0x3ae   :  { %7910 = vmatmul.mubr.msk.f32.vlgmr.msra.gmra.mxu1 %vm29_vm1, %v5754_v0  ;;  %v5768_v6 = vmax.f32 %v5752_v55, 0.0 }
 0x3af   :  { %7916 = vmatpush3.msk.msra.mxu1 %vm589_vm0, %v11420_v12  ;;  %7912 = vmatprep.mubr.msk.f32.mxu1 %vm29_vm1, %v5761_v61  ;;  %v5758_v12 = vmax.f32 %v5742_v62, 0.0  ;;  %v5767_v24 = vmax.f32 %v5751_v14, 0.0 }
 0x3b0   :  { %7923 = vmatprep.subr.msk.mxu1 %vm589_vm0, %v6739_v46 }
 0x3b2   :  { %7913 = vmatmul.mubr.msk.f32.gmra.mxu1 %vm29_vm1, %v5762_v37 }
 0x3b3   :  { %7917 = vmatprep.mubr.msk.f32.mxu1 %vm29_vm1, %v5757_v25 }
 0x3b6   :  { %7918 = vmatmul.mubr.msk.f32.vlgmr.msra.gmra.mxu1 %vm29_vm1, %v5758_v12 }
 0x3b7   :  { %7924 = vmatpush3.msk.msra.mxu1 %vm589_vm0, %v6739_v46  ;;  %7920 = vmatprep.mubr.msk.f32.mxu1 %vm29_vm1, %v5765_v1 }
 0x3ba   :  { %7921 = vmatmul.mubr.msk.f32.gmra.mxu1 %vm29_vm1, %v5766_v31 }
 0x3bb   :  { %7925 = vmatprep.mubr.msk.f32.mxu1 %vm29_vm1, %v5759_v28 }
 0x3be   :  { %7926 = vmatmul.mubr.msk.f32.vlgmr.msra.gmra.mxu1 %vm29_vm1, %v5760_v38 }
 0x3bf   :  { %7928 = vmatprep.mubr.msk.f32.mxu1 %vm29_vm1, %v5767_v24 }
 0x3c2   :  { %7929 = vmatmul.mubr.msk.f32.gmra.mxu1 %vm29_vm1, %v5768_v6 }
 0x45a   :  { %v7903_v58 = vpop.f32.mrf.mxu1 }
 0x45c   :  { %v5853_v8 = vpop.f32.mrf.mxu1 }
 0x46a   :  { %v7906_v63 = vpop.f32.mrf.mxu1 }
 0x46c   :  { %v5863_v11 = vpop.f32.mrf.mxu1 }
 0x46e   :  { %v7911_v50 = vpop.f32.mrf.mxu1 }
 0x46f   :  { %v5959_v60 = vadd.f32 %v7911_v50, %v7903_v58 }
 0x470   :  { %v5953_v22 = vpop.f32.mrf.mxu1 }
 0x471   :  { %v5954_v42 = vadd.f32 %v5953_v22, %v5853_v8 }
 0x472   :  { %v7914_v39 = vpop.f32.mrf.mxu1 }
 0x473   :  { %v5969_v52 = vadd.f32 %v7914_v39, %v7906_v63 }
 0x474   :  { %v5963_v57 = vpop.f32.mrf.mxu1 }
 0x475   :  { %v5964_v21 = vadd.f32 %v5963_v57, %v5863_v11 }
 0x476   :  { %v7919_v5 = vpop.f32.mrf.mxu1 }
 0x477   :  { %v6075_v20 = vadd.f32 %v7919_v5, %v5959_v60 }
 0x478   :  { %v6055_v40 = vpop.f32.mrf.mxu1 }
 0x479   :  { %v6074_v4 = vadd.f32 %v6055_v40, %v5954_v42 }
 0x47a   :  { %v7922_v26 = vpop.f32.mrf.mxu1 }
 0x47b   :  { %v6077_v56 = vadd.f32 %v7922_v26, %v5969_v52 }
 0x47c   :  { %v6065_v49 = vpop.f32.mrf.mxu1 }
 0x47d   :  { %v6076_v35 = vadd.f32 %v6065_v49, %v5964_v21 }
 0x47e   :  { %v7927_v16 = vpop.f32.mrf.mxu1 }
 0x47f   :  { %v6181_v19 = vadd.f32 %v7927_v16, %v6075_v20 }
 0x480   :  { %v6161_v23 = vpop.f32.mrf.mxu1 }
 0x481   :  { %6185 = vst.msk [vmem:[%s11538_s8 + $0x8] sm:$0xff] %vm29_vm1, %v6181_v19  ;;  %v6180_v0 = vadd.f32 %v6161_v23, %v6074_v4 }
 0x482   :  { %v7930_v18 = vpop.f32.mrf.mxu1 }
 0x483   :  { %6184 = vst.msk [vmem:[%s11538_s8] sm:$0xff] %vm29_vm1, %v6180_v0  ;;  %v6183_v36 = vadd.f32 %v7930_v18, %v6077_v56 }
 0x484   :  { %v6171_v47 = vpop.f32.mrf.mxu1 }
 0x485   :  { %6187 = vst.msk [vmem:[%s11538_s8 + $0x18] sm:$0xff] %vm29_vm1, %v6183_v36  ;;  %v6182_v7 = vadd.f32 %v6171_v47, %v6076_v35 }
 0x487   :  { %6186 = vst.msk [vmem:[%s11538_s8 + $0x10] sm:$0xff] %vm29_vm1, %v6182_v7 }

</bundles_post_ra>
